<compile_context>
chip_gen: v7x
topology: tpu7x:2x2x1
jax: 0.10.0
libtpu: 0.0.40
codegen_flags: <defaults>
</compile_context>

<pallas_src>
import functools

import jax
import jax.numpy as jnp
from jax.experimental import pallas as pl
from jax.experimental.pallas import tpu as pltpu

# ------------------------- small synthetic config -------------------------
B = 2                 # batch
L = 8                 # text seq len
H = 32                # bert hidden size
BERT_HEADS = 2
BERT_LAYERS = 2
FF = 64               # bert intermediate
VOCAB = 50
MAX_POS = 16
TYPE_VOCAB = 2

IMG = 16              # image spatial size
PATCH = 8             # patch size -> 2x2 = 4 patches
IN_CH = 3
VDIM = 32             # vit embed dim
VIT_HEADS = 2
VIT_LAYERS = 2
VIT_MLP = 64
NUM_PATCHES = (IMG // PATCH) ** 2
T_PAD = 8             # vit tokens (1 cls + 4 patches) padded to a full sublane tile

FUSION_HIDDEN = 512
NUM_CLASSES = 3
PAD_CLASSES = 128     # lane-dense classifier output (sliced back to NUM_CLASSES outside)

CPP = IN_CH * PATCH * PATCH   # 192
DH_B = H // BERT_HEADS        # 16
DH_V = VDIM // VIT_HEADS      # 16
VEC_W = 128                   # lane width of the bias/LN vector blob


# --------------------- bias / LN vector blob layout (static) ---------------------

def _make_vec_entries():
    e = [("emb_ln_g", H), ("emb_ln_b", H)]
    for l in range(BERT_LAYERS):
        for h in range(BERT_HEADS):
            e += [(f"b{l}h{h}_bq", DH_B), (f"b{l}h{h}_bk", DH_B), (f"b{l}h{h}_bvo", H)]
        e += [(f"b{l}_bo", H), (f"b{l}_ln1g", H), (f"b{l}_ln1b", H),
              (f"b{l}_b1", FF), (f"b{l}_b2", H), (f"b{l}_ln2g", H), (f"b{l}_ln2b", H)]
    e.append(("pool_b", H))
    for l in range(VIT_LAYERS):
        for h in range(VIT_HEADS):
            e += [(f"v{l}h{h}_bq", DH_V), (f"v{l}h{h}_bk", DH_V), (f"v{l}h{h}_bvo", VDIM)]
        e += [(f"v{l}_bo", VDIM), (f"v{l}_ln1g", VDIM), (f"v{l}_ln1b", VDIM),
              (f"v{l}_b1", VIT_MLP), (f"v{l}_b2", VDIM), (f"v{l}_ln2g", VDIM),
              (f"v{l}_ln2b", VDIM)]
    e += [("v_norm_g", VDIM), ("v_norm_b", VDIM), ("vfc_b", H), ("f_b2", PAD_CLASSES)]
    return e


_VEC_ENTRIES = _make_vec_entries()
_VEC_ROW = {name: i for i, (name, _) in enumerate(_VEC_ENTRIES)}
_VEC_LEN = dict(_VEC_ENTRIES)
_VEC_ROWS_PADDED = -(-len(_VEC_ENTRIES) // 8) * 8   # sublane-pad the blob row count

# Fixed ordering of weight operands passed to the kernel (all full-block, VMEM-resident).
_PARAM_ORDER = (
    "vec_blob", "f_b1",
    "b_wq", "b_wk", "b_wvo", "b_w1", "b_w2", "pool_w",
    "patch_w",
    "v_wq", "v_wk", "v_wvo", "v_w1", "v_w2", "vfc_w",
    "f_w1t", "f_w1v", "f_w2",
)


# ------------------------------ the fused kernel ------------------------------

def _model_kernel(spb, xt_ref, mask_t_ref, patches_ref, mask_v_ref, pos_adj_ref, *rest):
    """Whole EarlyFusionModel forward for `spb` batch elements per grid step."""
    assert len(rest) == len(_PARAM_ORDER) + 1
    prm = dict(zip(_PARAM_ORDER, rest[:-1]))
    out_ref = rest[-1]

    f32, bf16 = jnp.float32, jnp.bfloat16
    blob = prm["vec_blob"]

    def vec(name):
        r = _VEC_ROW[name]
        return blob[r:r + 1, :_VEC_LEN[name]]            # (1, n) f32, static slice

    def mm(a, w):                                         # bf16 MXU matmul, f32 accumulate
        return jnp.dot(a.astype(bf16), w, preferred_element_type=f32)

    def mm_t(a, b):                                       # a @ b.T, no XLU transpose
        return jnp.einsum("qd,kd->qk", a.astype(bf16), b.astype(bf16),
                          preferred_element_type=f32)

    def ln(x, g, b, eps):                                 # LN math in f32
        x = x.astype(f32)
        mu = jnp.mean(x, axis=-1, keepdims=True)
        var = jnp.mean((x - mu) * (x - mu), axis=-1, keepdims=True)
        return (x - mu) * jax.lax.rsqrt(var + eps) * g + b

    def gelu(x):
        # TODO(synk): tanh-approx GELU (PyTorch nn.GELU default is exact erf; ~1e-3 diff).
        c = jnp.float32(0.7978845608028654)
        return 0.5 * x * (1.0 + jnp.tanh(c * (x + 0.044715 * (x * x) * x)))

    def cls_rows(x, n_tok):
        # Gather each sample's CLS row with one tiny 0/1-selection matmul (layout-robust).
        r = jax.lax.broadcasted_iota(jnp.int32, (spb, spb * n_tok), 0)
        c = jax.lax.broadcasted_iota(jnp.int32, (spb, spb * n_tok), 1)
        sel = (c == r * n_tok).astype(bf16)
        return mm(sel, x.astype(bf16))                    # (spb, dim)

    def mha(x, pfx, lay, wq_ref, wk_ref, wvo_ref, mask2d, n_heads):
        # Per-head Wq/Wk pre-sliced at pack time; Wv@Wo folded into Wvo; 1/sqrt(dh)
        # folded into Wq/bq.  mask2d is the already-broadcast (S, S) additive mask.
        xb = x.astype(bf16)                               # cast reused activation ONCE
        acc = None
        for h in range(n_heads):
            i = lay * n_heads + h
            q = mm(xb, wq_ref[i]) + vec(f"{pfx}{lay}h{h}_bq")      # (S, dh), pre-scaled
            k = mm(xb, wk_ref[i]) + vec(f"{pfx}{lay}h{h}_bk")      # (S, dh)
            vo = mm(xb, wvo_ref[i]) + vec(f"{pfx}{lay}h{h}_bvo")   # (S, D) = V @ Wo_h
            s = mm_t(q, k) + mask2d                                # (S, S)
            s = s - jnp.max(s, axis=-1, keepdims=True)
            p = jnp.exp(s)
            p = p * pl.reciprocal(jnp.sum(p, axis=-1, keepdims=True), approx=True)
            part = mm(p, vo.astype(bf16))                          # (S, D)
            acc = part if acc is None else acc + part
        return acc + vec(f"{pfx}{lay}_bo")

    # ----------------- BERT encoder (post-LN) + pooler -----------------
    x = ln(xt_ref[...], vec("emb_ln_g"), vec("emb_ln_b"), 1e-12)          # (spb*L, H)
    mask_t = mask_t_ref[0]                                                # (spb*L, spb*L)
    for l in range(BERT_LAYERS):
        attn = mha(x, "b", l, prm["b_wq"], prm["b_wk"], prm["b_wvo"], mask_t, BERT_HEADS)
        x = ln(x + attn, vec(f"b{l}_ln1g"), vec(f"b{l}_ln1b"), 1e-12)
        hh = gelu(mm(x, prm["b_w1"][l]) + vec(f"b{l}_b1"))
        hh = mm(hh, prm["b_w2"][l]) + vec(f"b{l}_b2")
        x = ln(x + hh, vec(f"b{l}_ln2g"), vec(f"b{l}_ln2b"), 1e-12)
    pooled = jnp.tanh(mm(cls_rows(x, L), prm["pool_w"][...]) + vec("pool_b"))   # (spb, H)

    # ----------------- ViT encoder (pre-LN) + final norm + vit_fc -----------------
    # pos_adj row 0 per sample is cls_token + pos[0]; patch rows hold pos + patch bias.
    xv = mm(patches_ref[...], prm["patch_w"][...]) + pos_adj_ref[...]     # (spb*T_PAD, VDIM)
    mask_v = mask_v_ref[0]                                                # (spb*T, spb*T)
    for l in range(VIT_LAYERS):
        xn = ln(xv, vec(f"v{l}_ln1g"), vec(f"v{l}_ln1b"), 1e-6)
        xv = xv + mha(xn, "v", l, prm["v_wq"], prm["v_wk"], prm["v_wvo"], mask_v, VIT_HEADS)
        xn = ln(xv, vec(f"v{l}_ln2g"), vec(f"v{l}_ln2b"), 1e-6)
        hh = gelu(mm(xn, prm["v_w1"][l]) + vec(f"v{l}_b1"))
        xv = xv + (mm(hh, prm["v_w2"][l]) + vec(f"v{l}_b2"))
    xv = ln(xv, vec("v_norm_g"), vec("v_norm_b"), 1e-6)
    vit_feat = mm(cls_rows(xv, T_PAD), prm["vfc_w"][...]) + vec("vfc_b")  # (spb, H)

    # -------- fusion head: Linear(2H,512) -> ReLU -> [Dropout] -> Linear(512,C) --------
    # concat(bert, vit) @ W1 == bert @ W1[:H] + vit @ W1[H:]
    hid = jnp.maximum(mm(pooled, prm["f_w1t"][...]) + mm(vit_feat, prm["f_w1v"][...])
                      + prm["f_b1"][...], 0.0)
    # TODO(synk): nn.Dropout(p=0.5) omitted (inference/eval semantics -> identity).
    logits = mm(hid, prm["f_w2"][...]) + vec("f_b2")                      # (spb, PAD_CLASSES)
    out_ref[0] = logits


# ------------------------------ wrapper / glue ------------------------------

def forward(packed, input_ids, attention_mask, token_type_ids, image, *, spb):
    """spb = samples per grid step (B on single-TC chips, 1 on dual-TC chips)."""
    assert B % spb == 0
    nblk = B // spb
    bf16, f32 = jnp.bfloat16, jnp.float32

    # TODO(synk): embedding gathers stay in XLA glue (no clean tiny-scale Pallas gather).
    xt = (jnp.take(packed["word_emb"], input_ids, axis=0)
          + packed["pos_emb"][jnp.arange(L)][None, :, :]
          + jnp.take(packed["type_emb"], token_type_ids, axis=0))
    xt = xt.reshape(B * L, H).astype(bf16)                      # pre-cast: half DMA bytes

    # Patchify NCHW image (pure layout glue); row 0 of each sample is the cls slot (zeros),
    # rows 5..7 are padding (masked as attention keys inside the kernel).
    nH = nW = IMG // PATCH
    patches = image.reshape(B, IN_CH, nH, PATCH, nW, PATCH).transpose(0, 2, 4, 1, 3, 5)
    patches = patches.reshape(B, nH * nW, CPP)
    patches = jnp.pad(patches, ((0, 0), (1, T_PAD - 1 - nH * nW), (0, 0)))
    patches = patches.reshape(B * T_PAD, CPP).astype(bf16)

    # Pre-broadcast additive (S, S) score masks; block-diagonal across the samples that
    # share one kernel invocation (so no in-kernel mask broadcasts at all).
    def score_mask(key_ok):                      # key_ok: (B, S) bool
        S = key_ok.shape[1]
        ids = jnp.arange(spb * S) // S
        same = (ids[:, None] == ids[None, :])[None]              # (1, spb*S, spb*S)
        ok = key_ok.reshape(nblk, spb * S)[:, None, :]           # (nblk, 1, spb*S)
        return jnp.where(same & ok, 0.0, -1e9).astype(f32)       # (nblk, spb*S, spb*S)

    mask_t = score_mask(attention_mask.astype(bool))
    vit_ok = jnp.broadcast_to(jnp.arange(T_PAD) < NUM_PATCHES + 1, (B, T_PAD))
    mask_v = score_mask(vit_ok)

    pos_adj = jnp.tile(packed["pos_adj"], (spb, 1))              # (spb*T_PAD, VDIM) f32

    def full_spec(arr):
        zeros = (0,) * arr.ndim
        return pl.BlockSpec(arr.shape, lambda g: zeros)

    St, Sv = spb * L, spb * T_PAD
    in_specs = ([pl.BlockSpec((St, H), lambda g: (g, 0)),          # text tokens per block
                 pl.BlockSpec((1, St, St), lambda g: (g, 0, 0)),   # text score mask
                 pl.BlockSpec((Sv, CPP), lambda g: (g, 0)),        # image patches per block
                 pl.BlockSpec((1, Sv, Sv), lambda g: (g, 0, 0)),   # vit score mask
                 full_spec(pos_adj)]                               # pos/cls adjustment
                + [full_spec(packed[k]) for k in _PARAM_ORDER])    # weights: VMEM-resident

    out_pad = pl.pallas_call(
        functools.partial(_model_kernel, spb),
        grid=(nblk,),
        in_specs=in_specs,
        out_specs=pl.BlockSpec((1, spb, PAD_CLASSES), lambda g: (g, 0, 0)),
        out_shape=jax.ShapeDtypeStruct((nblk, spb, PAD_CLASSES), jnp.float32),
        compiler_params=pltpu.CompilerParams(
            dimension_semantics=("parallel",) if nblk > 1 else ("arbitrary",)),
    )(xt, mask_t, patches, mask_v, pos_adj, *[packed[k] for k in _PARAM_ORDER])

    return out_pad.reshape(B, PAD_CLASSES)[:, :NUM_CLASSES]


def _samples_per_block():
    # Dual-TC chips: keep grid=(B,) "parallel" so the two samples shard across cores.
    # Single-TC chips (v5e/v6e): merge the batch into one grid step (less per-step
    # pipeline overhead, fuller sublane/MXU occupancy).
    try:
        kind = jax.devices()[0].device_kind.lower()
    except Exception:
        return B
    dual_tc = ("v7" in kind) or ("v5p" in kind) or ("v4" in kind)
    return 1 if dual_tc else B


# ------------------------------ parameter init / packing ------------------------------

def init_params(key):
    keys = iter(jax.random.split(key, 128))

    def nrm(shape, std=0.02):
        return jax.random.normal(next(keys), shape, jnp.float32) * std

    def attn_ffn_layer(dim, ff):
        return dict(
            wq=nrm((dim, dim)), bq=jnp.zeros((dim,), jnp.float32),
            wk=nrm((dim, dim)), bk=jnp.zeros((dim,), jnp.float32),
            wv=nrm((dim, dim)), bv=jnp.zeros((dim,), jnp.float32),
            wo=nrm((dim, dim)), bo=jnp.zeros((dim,), jnp.float32),
            ln1_g=jnp.ones((dim,), jnp.float32), ln1_b=jnp.zeros((dim,), jnp.float32),
            w1=nrm((dim, ff)), b1=jnp.zeros((ff,), jnp.float32),
            w2=nrm((ff, dim)), b2=jnp.zeros((dim,), jnp.float32),
            ln2_g=jnp.ones((dim,), jnp.float32), ln2_b=jnp.zeros((dim,), jnp.float32),
        )

    return dict(
        word_emb=nrm((VOCAB, H)), pos_emb=nrm((MAX_POS, H)), type_emb=nrm((TYPE_VOCAB, H)),
        emb_ln_g=jnp.ones((H,), jnp.float32), emb_ln_b=jnp.zeros((H,), jnp.float32),
        bert_layers=[attn_ffn_layer(H, FF) for _ in range(BERT_LAYERS)],
        pooler_w=nrm((H, H)), pooler_b=jnp.zeros((H,), jnp.float32),
        patch_w=nrm((CPP, VDIM)), patch_b=jnp.zeros((VDIM,), jnp.float32),
        cls_token=nrm((1, 1, VDIM)), vit_pos=nrm((1, NUM_PATCHES + 1, VDIM)),
        vit_layers=[attn_ffn_layer(VDIM, VIT_MLP) for _ in range(VIT_LAYERS)],
        vit_norm_g=jnp.ones((VDIM,), jnp.float32), vit_norm_b=jnp.zeros((VDIM,), jnp.float32),
        vit_fc_w=nrm((VDIM, H)), vit_fc_b=jnp.zeros((H,), jnp.float32),
        fus_w1=nrm((2 * H, FUSION_HIDDEN)), fus_b1=jnp.zeros((FUSION_HIDDEN,), jnp.float32),
        fus_w2=nrm((FUSION_HIDDEN, NUM_CLASSES)), fus_b2=jnp.zeros((NUM_CLASSES,), jnp.float32),
    )


def pack_params(p):
    """One-time packing: per-head Wq/Wk (scale folded), folded Wvo = Wv@Wo (+ bvo = bv@Wo),
    stacked bf16 weights, one (rows,128) f32 blob holding every small bias/LN vector,
    padded classifier, ViT pos/cls/pad precompute."""
    bf16, f32 = jnp.bfloat16, jnp.float32

    vecs = {}

    def setvec(name, v):
        vecs[name] = jnp.asarray(v, f32)

    setvec("emb_ln_g", p["emb_ln_g"]); setvec("emb_ln_b", p["emb_ln_b"])

    def pack_encoder(layers, prefix, dim, n_heads):
        dh = dim // n_heads
        scale = 1.0 / (dh ** 0.5)          # folded into Wq / bq (exact power of two)
        wq, wk, wvo, w1, w2 = [], [], [], [], []
        for l, lay in enumerate(layers):
            for h in range(n_heads):
                sl = slice(h * dh, (h + 1) * dh)
                wq.append(lay["wq"][:, sl] * scale)
                wk.append(lay["wk"][:, sl])
                wvo.append(lay["wv"][:, sl] @ lay["wo"][sl, :])     # fold Wv_h @ Wo_h
                setvec(f"{prefix}{l}h{h}_bq", lay["bq"][sl] * scale)
                setvec(f"{prefix}{l}h{h}_bk", lay["bk"][sl])
                setvec(f"{prefix}{l}h{h}_bvo", lay["bv"][sl] @ lay["wo"][sl, :])
            setvec(f"{prefix}{l}_bo", lay["bo"])
            setvec(f"{prefix}{l}_ln1g", lay["ln1_g"]); setvec(f"{prefix}{l}_ln1b", lay["ln1_b"])
            setvec(f"{prefix}{l}_b1", lay["b1"]); setvec(f"{prefix}{l}_b2", lay["b2"])
            setvec(f"{prefix}{l}_ln2g", lay["ln2_g"]); setvec(f"{prefix}{l}_ln2b", lay["ln2_b"])
            w1.append(lay["w1"]); w2.append(lay["w2"])
        return (jnp.stack(wq).astype(bf16), jnp.stack(wk).astype(bf16),
                jnp.stack(wvo).astype(bf16), jnp.stack(w1).astype(bf16),
                jnp.stack(w2).astype(bf16))

    b_wq, b_wk, b_wvo, b_w1, b_w2 = pack_encoder(p["bert_layers"], "b", H, BERT_HEADS)
    v_wq, v_wk, v_wvo, v_w1, v_w2 = pack_encoder(p["vit_layers"], "v", VDIM, VIT_HEADS)

    setvec("pool_b", p["pooler_b"])
    setvec("v_norm_g", p["vit_norm_g"]); setvec("v_norm_b", p["vit_norm_b"])
    setvec("vfc_b", p["vit_fc_b"])
    setvec("f_b2", jnp.pad(p["fus_b2"], (0, PAD_CLASSES - NUM_CLASSES)))

    blob = jnp.zeros((_VEC_ROWS_PADDED, VEC_W), f32)
    for name, n in _VEC_ENTRIES:
        blob = blob.at[_VEC_ROW[name], :n].set(vecs[name])

    T = NUM_PATCHES + 1
    pos = p["vit_pos"][0]                                   # (T, VDIM)
    pos_adj = jnp.concatenate([
        p["cls_token"].reshape(1, VDIM) + pos[0:1],          # cls slot: cls_token + pos
        pos[1:T] + p["patch_b"][None, :],                    # patches: pos + conv bias
        jnp.zeros((T_PAD - T, VDIM), f32)], axis=0)          # padding rows

    return dict(
        # used only in JAX glue (embedding gathers / wrapper tiling)
        word_emb=p["word_emb"], pos_emb=p["pos_emb"], type_emb=p["type_emb"],
        pos_adj=pos_adj,
        # kernel params
        vec_blob=blob,
        f_b1=p["fus_b1"][None, :].astype(f32),
        b_wq=b_wq, b_wk=b_wk, b_wvo=b_wvo, b_w1=b_w1, b_w2=b_w2,
        pool_w=p["pooler_w"].astype(bf16),
        patch_w=p["patch_w"].astype(bf16),
        v_wq=v_wq, v_wk=v_wk, v_wvo=v_wvo, v_w1=v_w1, v_w2=v_w2,
        vfc_w=p["vit_fc_w"].astype(bf16),
        f_w1t=p["fus_w1"][:H].astype(bf16), f_w1v=p["fus_w1"][H:].astype(bf16),
        f_w2=jnp.pad(p["fus_w2"], ((0, 0), (0, PAD_CLASSES - NUM_CLASSES))).astype(bf16),
    )


# ------------------------------ driver ------------------------------

if __name__ == "__main__":
    key = jax.random.PRNGKey(0)
    kp, kid, kim = jax.random.split(key, 3)

    packed = pack_params(init_params(kp))

    input_ids = jax.random.randint(kid, (B, L), 0, VOCAB, dtype=jnp.int32)
    attention_mask = jnp.ones((B, L), jnp.int32).at[1, 6:].set(0)
    token_type_ids = jnp.zeros((B, L), jnp.int32).at[:, 4:].set(1)
    image = jax.random.normal(kim, (B, IN_CH, IMG, IMG), jnp.float32)

    fwd = jax.jit(forward, static_argnames=("spb",))

    # Per-generation layout selection (gridded on dual-TC chips, batched on single-TC).
    spb_hw = _samples_per_block()
    out = jax.block_until_ready(
        fwd(packed, input_ids, attention_mask, token_type_ids, image, spb=spb_hw))
    assert out.shape == (B, NUM_CLASSES), out.shape
    assert bool(jnp.all(jnp.isfinite(out)))

    # Cross-check: the other layout (batched <-> gridded) must agree.
    spb_alt = B if spb_hw == 1 else 1
    out_alt = jax.block_until_ready(
        fwd(packed, input_ids, attention_mask, token_type_ids, image, spb=spb_alt))
    assert bool(jnp.all(jnp.isfinite(out_alt)))
    assert bool(jnp.allclose(out, out_alt, atol=5e-3, rtol=5e-2))

    print("KERNEL_OK")
</pallas_src>

<mosaic_0001>
module attributes {stable_mosaic.version = 11 : i64} {
  func.func @_model_kernel(%arg0: i32, %arg1: memref<16x32xbf16, #tpu.memory_space<vmem>>, %arg2: memref<1x16x16xf32, #tpu.memory_space<vmem>>, %arg3: memref<16x192xbf16, #tpu.memory_space<vmem>>, %arg4: memref<1x16x16xf32, #tpu.memory_space<vmem>>, %arg5: memref<16x32xf32, #tpu.memory_space<vmem>>, %arg6: memref<64x128xf32, #tpu.memory_space<vmem>>, %arg7: memref<1x512xf32, #tpu.memory_space<vmem>>, %arg8: memref<4x32x16xbf16, #tpu.memory_space<vmem>>, %arg9: memref<4x32x16xbf16, #tpu.memory_space<vmem>>, %arg10: memref<4x32x32xbf16, #tpu.memory_space<vmem>>, %arg11: memref<2x32x64xbf16, #tpu.memory_space<vmem>>, %arg12: memref<2x64x32xbf16, #tpu.memory_space<vmem>>, %arg13: memref<32x32xbf16, #tpu.memory_space<vmem>>, %arg14: memref<192x32xbf16, #tpu.memory_space<vmem>>, %arg15: memref<4x32x16xbf16, #tpu.memory_space<vmem>>, %arg16: memref<4x32x16xbf16, #tpu.memory_space<vmem>>, %arg17: memref<4x32x32xbf16, #tpu.memory_space<vmem>>, %arg18: memref<2x32x64xbf16, #tpu.memory_space<vmem>>, %arg19: memref<2x64x32xbf16, #tpu.memory_space<vmem>>, %arg20: memref<32x32xbf16, #tpu.memory_space<vmem>>, %arg21: memref<32x512xbf16, #tpu.memory_space<vmem>>, %arg22: memref<32x512xbf16, #tpu.memory_space<vmem>>, %arg23: memref<512x128xbf16, #tpu.memory_space<vmem>>, %arg24: memref<1x2x128xf32, #tpu.memory_space<vmem>>) attributes {dimension_semantics = [#tpu.dimension_semantics<arbitrary>], iteration_bounds = array<i64: 1>, scalar_prefetch = 0 : i64, scratch_operands = 0 : i64, tpu.core_type = #tpu.core_type<tc>, window_params = [{transform_indices = @transform_0, window_bounds = array<i64: 16, 32>}, {transform_indices = @transform_1, window_bounds = array<i64: 1, 16, 16>}, {transform_indices = @transform_2, window_bounds = array<i64: 16, 192>}, {transform_indices = @transform_3, window_bounds = array<i64: 1, 16, 16>}, {pipeline_mode = #tpu.pipeline_mode<synchronous>, transform_indices = @transform_4, window_bounds = array<i64: 16, 32>}, {pipeline_mode = #tpu.pipeline_mode<synchronous>, transform_indices = @transform_5, window_bounds = array<i64: 64, 128>}, {pipeline_mode = #tpu.pipeline_mode<synchronous>, transform_indices = @transform_6, window_bounds = array<i64: 1, 512>}, {pipeline_mode = #tpu.pipeline_mode<synchronous>, transform_indices = @transform_7, window_bounds = array<i64: 4, 32, 16>}, {pipeline_mode = #tpu.pipeline_mode<synchronous>, transform_indices = @transform_8, window_bounds = array<i64: 4, 32, 16>}, {pipeline_mode = #tpu.pipeline_mode<synchronous>, transform_indices = @transform_9, window_bounds = array<i64: 4, 32, 32>}, {pipeline_mode = #tpu.pipeline_mode<synchronous>, transform_indices = @transform_10, window_bounds = array<i64: 2, 32, 64>}, {pipeline_mode = #tpu.pipeline_mode<synchronous>, transform_indices = @transform_11, window_bounds = array<i64: 2, 64, 32>}, {pipeline_mode = #tpu.pipeline_mode<synchronous>, transform_indices = @transform_12, window_bounds = array<i64: 32, 32>}, {pipeline_mode = #tpu.pipeline_mode<synchronous>, transform_indices = @transform_13, window_bounds = array<i64: 192, 32>}, {pipeline_mode = #tpu.pipeline_mode<synchronous>, transform_indices = @transform_14, window_bounds = array<i64: 4, 32, 16>}, {pipeline_mode = #tpu.pipeline_mode<synchronous>, transform_indices = @transform_15, window_bounds = array<i64: 4, 32, 16>}, {pipeline_mode = #tpu.pipeline_mode<synchronous>, transform_indices = @transform_16, window_bounds = array<i64: 4, 32, 32>}, {pipeline_mode = #tpu.pipeline_mode<synchronous>, transform_indices = @transform_17, window_bounds = array<i64: 2, 32, 64>}, {pipeline_mode = #tpu.pipeline_mode<synchronous>, transform_indices = @transform_18, window_bounds = array<i64: 2, 64, 32>}, {pipeline_mode = #tpu.pipeline_mode<synchronous>, transform_indices = @transform_19, window_bounds = array<i64: 32, 32>}, {pipeline_mode = #tpu.pipeline_mode<synchronous>, transform_indices = @transform_20, window_bounds = array<i64: 32, 512>}, {pipeline_mode = #tpu.pipeline_mode<synchronous>, transform_indices = @transform_21, window_bounds = array<i64: 32, 512>}, {pipeline_mode = #tpu.pipeline_mode<synchronous>, transform_indices = @transform_22, window_bounds = array<i64: 512, 128>}, {transform_indices = @transform_23, window_bounds = array<i64: 1, 2, 128>}]} {
    %c0 = arith.constant 0 : index
    %c0_0 = arith.constant 0 : index
    %0 = vector.load %arg1[%c0, %c0_0] : memref<16x32xbf16, #tpu.memory_space<vmem>>, vector<16x32xbf16>
    %c0_1 = arith.constant 0 : index
    %c0_2 = arith.constant 0 : index
    %1 = vector.load %arg6[%c0_1, %c0_2] : memref<64x128xf32, #tpu.memory_space<vmem>>, vector<1x32xf32>
    %c1 = arith.constant 1 : index
    %c0_3 = arith.constant 0 : index
    %2 = vector.load %arg6[%c1, %c0_3] : memref<64x128xf32, #tpu.memory_space<vmem>>, vector<1x32xf32>
    %3 = arith.extf %0 : vector<16x32xbf16> to vector<16x32xf32>
    %cst = arith.constant dense<0.000000e+00> : vector<16xf32>
    %4 = vector.multi_reduction <add>, %3, %cst [1] : vector<16x32xf32> to vector<16xf32>
    %5 = vector.shape_cast %4 : vector<16xf32> to vector<16x1xf32>
    %cst_4 = arith.constant 3.200000e+01 : f32
    %6 = vector.broadcast %cst_4 : f32 to vector<16x1xf32>
    %7 = arith.divf %5, %6 : vector<16x1xf32>
    %8 = vector.broadcast %7 : vector<16x1xf32> to vector<16x32xf32>
    %9 = arith.subf %3, %8 : vector<16x32xf32>
    %10 = vector.broadcast %7 : vector<16x1xf32> to vector<16x32xf32>
    %11 = arith.subf %3, %10 : vector<16x32xf32>
    %12 = arith.mulf %9, %11 : vector<16x32xf32>
    %cst_5 = arith.constant dense<0.000000e+00> : vector<16xf32>
    %13 = vector.multi_reduction <add>, %12, %cst_5 [1] : vector<16x32xf32> to vector<16xf32>
    %14 = vector.shape_cast %13 : vector<16xf32> to vector<16x1xf32>
    %cst_6 = arith.constant 3.200000e+01 : f32
    %15 = vector.broadcast %cst_6 : f32 to vector<16x1xf32>
    %16 = arith.divf %14, %15 : vector<16x1xf32>
    %17 = vector.broadcast %7 : vector<16x1xf32> to vector<16x32xf32>
    %18 = arith.subf %3, %17 : vector<16x32xf32>
    %cst_7 = arith.constant 9.99999996E-13 : f32
    %19 = vector.broadcast %cst_7 : f32 to vector<16x1xf32>
    %20 = arith.addf %16, %19 : vector<16x1xf32>
    %21 = math.rsqrt %20 : vector<16x1xf32>
    %22 = vector.broadcast %21 : vector<16x1xf32> to vector<16x32xf32>
    %23 = arith.mulf %18, %22 : vector<16x32xf32>
    %24 = vector.broadcast %1 : vector<1x32xf32> to vector<16x32xf32>
    %25 = arith.mulf %23, %24 : vector<16x32xf32>
    %26 = vector.broadcast %2 : vector<1x32xf32> to vector<16x32xf32>
    %27 = arith.addf %25, %26 : vector<16x32xf32>
    %c0_8 = arith.constant 0 : index
    %c0_9 = arith.constant 0 : index
    %c0_10 = arith.constant 0 : index
    %28 = vector.load %arg2[%c0_8, %c0_9, %c0_10] : memref<1x16x16xf32, #tpu.memory_space<vmem>>, vector<1x16x16xf32>
    %29 = vector.shape_cast %28 : vector<1x16x16xf32> to vector<16x16xf32>
    %30 = arith.truncf %27 : vector<16x32xf32> to vector<16x32xbf16>
    %c0_11 = arith.constant 0 : index
    %c0_12 = arith.constant 0 : index
    %c0_13 = arith.constant 0 : index
    %31 = vector.load %arg8[%c0_11, %c0_12, %c0_13] : memref<4x32x16xbf16, #tpu.memory_space<vmem>>, vector<1x32x16xbf16>
    %32 = vector.shape_cast %31 : vector<1x32x16xbf16> to vector<32x16xbf16>
    %cst_14 = arith.constant dense<0.000000e+00> : vector<16x16xf32>
    %33 = tpu.matmul %30, %32, %cst_14 {dimension_numbers = #tpu.dot_dimension_numbers<[1], [0], [0], [1], [0, 0, 1, 1], [], []>} : vector<16x32xbf16>, vector<32x16xbf16>, vector<16x16xf32> -> vector<16x16xf32>
    %c2 = arith.constant 2 : index
    %c0_15 = arith.constant 0 : index
    %34 = vector.load %arg6[%c2, %c0_15] : memref<64x128xf32, #tpu.memory_space<vmem>>, vector<1x16xf32>
    %35 = vector.broadcast %34 : vector<1x16xf32> to vector<16x16xf32>
    %36 = arith.addf %33, %35 : vector<16x16xf32>
    %c0_16 = arith.constant 0 : index
    %c0_17 = arith.constant 0 : index
    %c0_18 = arith.constant 0 : index
    %37 = vector.load %arg9[%c0_16, %c0_17, %c0_18] : memref<4x32x16xbf16, #tpu.memory_space<vmem>>, vector<1x32x16xbf16>
    %38 = vector.shape_cast %37 : vector<1x32x16xbf16> to vector<32x16xbf16>
    %cst_19 = arith.constant dense<0.000000e+00> : vector<16x16xf32>
    %39 = tpu.matmul %30, %38, %cst_19 {dimension_numbers = #tpu.dot_dimension_numbers<[1], [0], [0], [1], [0, 0, 1, 1], [], []>} : vector<16x32xbf16>, vector<32x16xbf16>, vector<16x16xf32> -> vector<16x16xf32>
    %c3 = arith.constant 3 : index
    %c0_20 = arith.constant 0 : index
    %40 = vector.load %arg6[%c3, %c0_20] : memref<64x128xf32, #tpu.memory_space<vmem>>, vector<1x16xf32>
    %41 = vector.broadcast %40 : vector<1x16xf32> to vector<16x16xf32>
    %42 = arith.addf %39, %41 : vector<16x16xf32>
    %c0_21 = arith.constant 0 : index
    %c0_22 = arith.constant 0 : index
    %c0_23 = arith.constant 0 : index
    %43 = vector.load %arg10[%c0_21, %c0_22, %c0_23] : memref<4x32x32xbf16, #tpu.memory_space<vmem>>, vector<1x32x32xbf16>
    %44 = vector.shape_cast %43 : vector<1x32x32xbf16> to vector<32x32xbf16>
    %cst_24 = arith.constant dense<0.000000e+00> : vector<16x32xf32>
    %45 = tpu.matmul %30, %44, %cst_24 {dimension_numbers = #tpu.dot_dimension_numbers<[1], [0], [0], [1], [0, 0, 1, 1], [], []>} : vector<16x32xbf16>, vector<32x32xbf16>, vector<16x32xf32> -> vector<16x32xf32>
    %c4 = arith.constant 4 : index
    %c0_25 = arith.constant 0 : index
    %46 = vector.load %arg6[%c4, %c0_25] : memref<64x128xf32, #tpu.memory_space<vmem>>, vector<1x32xf32>
    %47 = vector.broadcast %46 : vector<1x32xf32> to vector<16x32xf32>
    %48 = arith.addf %45, %47 : vector<16x32xf32>
    %49 = arith.truncf %36 : vector<16x16xf32> to vector<16x16xbf16>
    %50 = arith.truncf %42 : vector<16x16xf32> to vector<16x16xbf16>
    "tpu.trace_start"() <{level = 10 : i32, message = "qd,kd->qk"}> : () -> ()
    %cst_26 = arith.constant dense<0.000000e+00> : vector<16x16xf32>
    %51 = tpu.matmul %49, %50, %cst_26 {dimension_numbers = #tpu.dot_dimension_numbers<[1], [1], [0], [0], [0, 0, 1, 0], [], []>} : vector<16x16xbf16>, vector<16x16xbf16>, vector<16x16xf32> -> vector<16x16xf32>
    "tpu.trace_stop"() : () -> ()
    %52 = arith.addf %51, %29 : vector<16x16xf32>
    %cst_27 = arith.constant dense<0xFF800000> : vector<16xf32>
    %53 = vector.multi_reduction <maximumf>, %52, %cst_27 [1] : vector<16x16xf32> to vector<16xf32>
    %54 = vector.shape_cast %53 : vector<16xf32> to vector<16x1xf32>
    %55 = vector.broadcast %54 : vector<16x1xf32> to vector<16x16xf32>
    %56 = arith.subf %52, %55 : vector<16x16xf32>
    %57 = math.exp %56 : vector<16x16xf32>
    %cst_28 = arith.constant dense<0.000000e+00> : vector<16xf32>
    %58 = vector.multi_reduction <add>, %57, %cst_28 [1] : vector<16x16xf32> to vector<16xf32>
    %59 = vector.shape_cast %58 : vector<16xf32> to vector<16x1xf32>
    %60 = tpu.reciprocal %59 {approx = true} : vector<16x1xf32> -> vector<16x1xf32>
    %61 = vector.broadcast %60 : vector<16x1xf32> to vector<16x16xf32>
    %62 = arith.mulf %57, %61 : vector<16x16xf32>
    %63 = arith.truncf %48 : vector<16x32xf32> to vector<16x32xbf16>
    %64 = arith.truncf %62 : vector<16x16xf32> to vector<16x16xbf16>
    %cst_29 = arith.constant dense<0.000000e+00> : vector<16x32xf32>
    %65 = tpu.matmul %64, %63, %cst_29 {dimension_numbers = #tpu.dot_dimension_numbers<[1], [0], [0], [1], [0, 0, 1, 1], [], []>} : vector<16x16xbf16>, vector<16x32xbf16>, vector<16x32xf32> -> vector<16x32xf32>
    %c1_30 = arith.constant 1 : index
    %c0_31 = arith.constant 0 : index
    %c0_32 = arith.constant 0 : index
    %66 = vector.load %arg8[%c1_30, %c0_31, %c0_32] : memref<4x32x16xbf16, #tpu.memory_space<vmem>>, vector<1x32x16xbf16>
    %67 = vector.shape_cast %66 : vector<1x32x16xbf16> to vector<32x16xbf16>
    %cst_33 = arith.constant dense<0.000000e+00> : vector<16x16xf32>
    %68 = tpu.matmul %30, %67, %cst_33 {dimension_numbers = #tpu.dot_dimension_numbers<[1], [0], [0], [1], [0, 0, 1, 1], [], []>} : vector<16x32xbf16>, vector<32x16xbf16>, vector<16x16xf32> -> vector<16x16xf32>
    %c5 = arith.constant 5 : index
    %c0_34 = arith.constant 0 : index
    %69 = vector.load %arg6[%c5, %c0_34] : memref<64x128xf32, #tpu.memory_space<vmem>>, vector<1x16xf32>
    %70 = vector.broadcast %69 : vector<1x16xf32> to vector<16x16xf32>
    %71 = arith.addf %68, %70 : vector<16x16xf32>
    %c1_35 = arith.constant 1 : index
    %c0_36 = arith.constant 0 : index
    %c0_37 = arith.constant 0 : index
    %72 = vector.load %arg9[%c1_35, %c0_36, %c0_37] : memref<4x32x16xbf16, #tpu.memory_space<vmem>>, vector<1x32x16xbf16>
    %73 = vector.shape_cast %72 : vector<1x32x16xbf16> to vector<32x16xbf16>
    %cst_38 = arith.constant dense<0.000000e+00> : vector<16x16xf32>
    %74 = tpu.matmul %30, %73, %cst_38 {dimension_numbers = #tpu.dot_dimension_numbers<[1], [0], [0], [1], [0, 0, 1, 1], [], []>} : vector<16x32xbf16>, vector<32x16xbf16>, vector<16x16xf32> -> vector<16x16xf32>
    %c6 = arith.constant 6 : index
    %c0_39 = arith.constant 0 : index
    %75 = vector.load %arg6[%c6, %c0_39] : memref<64x128xf32, #tpu.memory_space<vmem>>, vector<1x16xf32>
    %76 = vector.broadcast %75 : vector<1x16xf32> to vector<16x16xf32>
    %77 = arith.addf %74, %76 : vector<16x16xf32>
    %c1_40 = arith.constant 1 : index
    %c0_41 = arith.constant 0 : index
    %c0_42 = arith.constant 0 : index
    %78 = vector.load %arg10[%c1_40, %c0_41, %c0_42] : memref<4x32x32xbf16, #tpu.memory_space<vmem>>, vector<1x32x32xbf16>
    %79 = vector.shape_cast %78 : vector<1x32x32xbf16> to vector<32x32xbf16>
    %cst_43 = arith.constant dense<0.000000e+00> : vector<16x32xf32>
    %80 = tpu.matmul %30, %79, %cst_43 {dimension_numbers = #tpu.dot_dimension_numbers<[1], [0], [0], [1], [0, 0, 1, 1], [], []>} : vector<16x32xbf16>, vector<32x32xbf16>, vector<16x32xf32> -> vector<16x32xf32>
    %c7 = arith.constant 7 : index
    %c0_44 = arith.constant 0 : index
    %81 = vector.load %arg6[%c7, %c0_44] : memref<64x128xf32, #tpu.memory_space<vmem>>, vector<1x32xf32>
    %82 = vector.broadcast %81 : vector<1x32xf32> to vector<16x32xf32>
    %83 = arith.addf %80, %82 : vector<16x32xf32>
    %84 = arith.truncf %71 : vector<16x16xf32> to vector<16x16xbf16>
    %85 = arith.truncf %77 : vector<16x16xf32> to vector<16x16xbf16>
    "tpu.trace_start"() <{level = 10 : i32, message = "qd,kd->qk"}> : () -> ()
    %cst_45 = arith.constant dense<0.000000e+00> : vector<16x16xf32>
    %86 = tpu.matmul %84, %85, %cst_45 {dimension_numbers = #tpu.dot_dimension_numbers<[1], [1], [0], [0], [0, 0, 1, 0], [], []>} : vector<16x16xbf16>, vector<16x16xbf16>, vector<16x16xf32> -> vector<16x16xf32>
    "tpu.trace_stop"() : () -> ()
    %87 = arith.addf %86, %29 : vector<16x16xf32>
    %cst_46 = arith.constant dense<0xFF800000> : vector<16xf32>
    %88 = vector.multi_reduction <maximumf>, %87, %cst_46 [1] : vector<16x16xf32> to vector<16xf32>
    %89 = vector.shape_cast %88 : vector<16xf32> to vector<16x1xf32>
    %90 = vector.broadcast %89 : vector<16x1xf32> to vector<16x16xf32>
    %91 = arith.subf %87, %90 : vector<16x16xf32>
    %92 = math.exp %91 : vector<16x16xf32>
    %cst_47 = arith.constant dense<0.000000e+00> : vector<16xf32>
    %93 = vector.multi_reduction <add>, %92, %cst_47 [1] : vector<16x16xf32> to vector<16xf32>
    %94 = vector.shape_cast %93 : vector<16xf32> to vector<16x1xf32>
    %95 = tpu.reciprocal %94 {approx = true} : vector<16x1xf32> -> vector<16x1xf32>
    %96 = vector.broadcast %95 : vector<16x1xf32> to vector<16x16xf32>
    %97 = arith.mulf %92, %96 : vector<16x16xf32>
    %98 = arith.truncf %83 : vector<16x32xf32> to vector<16x32xbf16>
    %99 = arith.truncf %97 : vector<16x16xf32> to vector<16x16xbf16>
    %cst_48 = arith.constant dense<0.000000e+00> : vector<16x32xf32>
    %100 = tpu.matmul %99, %98, %cst_48 {dimension_numbers = #tpu.dot_dimension_numbers<[1], [0], [0], [1], [0, 0, 1, 1], [], []>} : vector<16x16xbf16>, vector<16x32xbf16>, vector<16x32xf32> -> vector<16x32xf32>
    %101 = arith.addf %65, %100 : vector<16x32xf32>
    %c8 = arith.constant 8 : index
    %c0_49 = arith.constant 0 : index
    %102 = vector.load %arg6[%c8, %c0_49] : memref<64x128xf32, #tpu.memory_space<vmem>>, vector<1x32xf32>
    %103 = vector.broadcast %102 : vector<1x32xf32> to vector<16x32xf32>
    %104 = arith.addf %101, %103 : vector<16x32xf32>
    %105 = arith.addf %27, %104 : vector<16x32xf32>
    %c9 = arith.constant 9 : index
    %c0_50 = arith.constant 0 : index
    %106 = vector.load %arg6[%c9, %c0_50] : memref<64x128xf32, #tpu.memory_space<vmem>>, vector<1x32xf32>
    %c10 = arith.constant 10 : index
    %c0_51 = arith.constant 0 : index
    %107 = vector.load %arg6[%c10, %c0_51] : memref<64x128xf32, #tpu.memory_space<vmem>>, vector<1x32xf32>
    %cst_52 = arith.constant dense<0.000000e+00> : vector<16xf32>
    %108 = vector.multi_reduction <add>, %105, %cst_52 [1] : vector<16x32xf32> to vector<16xf32>
    %109 = vector.shape_cast %108 : vector<16xf32> to vector<16x1xf32>
    %cst_53 = arith.constant 3.200000e+01 : f32
    %110 = vector.broadcast %cst_53 : f32 to vector<16x1xf32>
    %111 = arith.divf %109, %110 : vector<16x1xf32>
    %112 = vector.broadcast %111 : vector<16x1xf32> to vector<16x32xf32>
    %113 = arith.subf %105, %112 : vector<16x32xf32>
    %114 = vector.broadcast %111 : vector<16x1xf32> to vector<16x32xf32>
    %115 = arith.subf %105, %114 : vector<16x32xf32>
    %116 = arith.mulf %113, %115 : vector<16x32xf32>
    %cst_54 = arith.constant dense<0.000000e+00> : vector<16xf32>
    %117 = vector.multi_reduction <add>, %116, %cst_54 [1] : vector<16x32xf32> to vector<16xf32>
    %118 = vector.shape_cast %117 : vector<16xf32> to vector<16x1xf32>
    %cst_55 = arith.constant 3.200000e+01 : f32
    %119 = vector.broadcast %cst_55 : f32 to vector<16x1xf32>
    %120 = arith.divf %118, %119 : vector<16x1xf32>
    %121 = vector.broadcast %111 : vector<16x1xf32> to vector<16x32xf32>
    %122 = arith.subf %105, %121 : vector<16x32xf32>
    %cst_56 = arith.constant 9.99999996E-13 : f32
    %123 = vector.broadcast %cst_56 : f32 to vector<16x1xf32>
    %124 = arith.addf %120, %123 : vector<16x1xf32>
    %125 = math.rsqrt %124 : vector<16x1xf32>
    %126 = vector.broadcast %125 : vector<16x1xf32> to vector<16x32xf32>
    %127 = arith.mulf %122, %126 : vector<16x32xf32>
    %128 = vector.broadcast %106 : vector<1x32xf32> to vector<16x32xf32>
    %129 = arith.mulf %127, %128 : vector<16x32xf32>
    %130 = vector.broadcast %107 : vector<1x32xf32> to vector<16x32xf32>
    %131 = arith.addf %129, %130 : vector<16x32xf32>
    %c0_57 = arith.constant 0 : index
    %c0_58 = arith.constant 0 : index
    %c0_59 = arith.constant 0 : index
    %132 = vector.load %arg11[%c0_57, %c0_58, %c0_59] : memref<2x32x64xbf16, #tpu.memory_space<vmem>>, vector<1x32x64xbf16>
    %133 = vector.shape_cast %132 : vector<1x32x64xbf16> to vector<32x64xbf16>
    %134 = arith.truncf %131 : vector<16x32xf32> to vector<16x32xbf16>
    %cst_60 = arith.constant dense<0.000000e+00> : vector<16x64xf32>
    %135 = tpu.matmul %134, %133, %cst_60 {dimension_numbers = #tpu.dot_dimension_numbers<[1], [0], [0], [1], [0, 0, 1, 1], [], []>} : vector<16x32xbf16>, vector<32x64xbf16>, vector<16x64xf32> -> vector<16x64xf32>
    %c11 = arith.constant 11 : index
    %c0_61 = arith.constant 0 : index
    %136 = vector.load %arg6[%c11, %c0_61] : memref<64x128xf32, #tpu.memory_space<vmem>>, vector<1x64xf32>
    %137 = vector.broadcast %136 : vector<1x64xf32> to vector<16x64xf32>
    %138 = arith.addf %135, %137 : vector<16x64xf32>
    %cst_62 = arith.constant 5.000000e-01 : f32
    %139 = vector.broadcast %cst_62 : f32 to vector<16x64xf32>
    %140 = arith.mulf %139, %138 : vector<16x64xf32>
    %141 = arith.mulf %138, %138 : vector<16x64xf32>
    %cst_63 = arith.constant 4.471500e-02 : f32
    %142 = vector.broadcast %cst_63 : f32 to vector<16x64xf32>
    %143 = arith.mulf %142, %141 : vector<16x64xf32>
    %144 = arith.mulf %143, %138 : vector<16x64xf32>
    %145 = arith.addf %138, %144 : vector<16x64xf32>
    %cst_64 = arith.constant 0.797884583 : f32
    %146 = vector.broadcast %cst_64 : f32 to vector<16x64xf32>
    %147 = arith.mulf %146, %145 : vector<16x64xf32>
    %148 = math.tanh %147 : vector<16x64xf32>
    %cst_65 = arith.constant 1.000000e+00 : f32
    %149 = vector.broadcast %cst_65 : f32 to vector<16x64xf32>
    %150 = arith.addf %149, %148 : vector<16x64xf32>
    %151 = arith.mulf %140, %150 : vector<16x64xf32>
    %c0_66 = arith.constant 0 : index
    %c0_67 = arith.constant 0 : index
    %c0_68 = arith.constant 0 : index
    %152 = vector.load %arg12[%c0_66, %c0_67, %c0_68] : memref<2x64x32xbf16, #tpu.memory_space<vmem>>, vector<1x64x32xbf16>
    %153 = vector.shape_cast %152 : vector<1x64x32xbf16> to vector<64x32xbf16>
    %154 = arith.truncf %151 : vector<16x64xf32> to vector<16x64xbf16>
    %cst_69 = arith.constant dense<0.000000e+00> : vector<16x32xf32>
    %155 = tpu.matmul %154, %153, %cst_69 {dimension_numbers = #tpu.dot_dimension_numbers<[1], [0], [0], [1], [0, 0, 1, 1], [], []>} : vector<16x64xbf16>, vector<64x32xbf16>, vector<16x32xf32> -> vector<16x32xf32>
    %c12 = arith.constant 12 : index
    %c0_70 = arith.constant 0 : index
    %156 = vector.load %arg6[%c12, %c0_70] : memref<64x128xf32, #tpu.memory_space<vmem>>, vector<1x32xf32>
    %157 = vector.broadcast %156 : vector<1x32xf32> to vector<16x32xf32>
    %158 = arith.addf %155, %157 : vector<16x32xf32>
    %159 = arith.addf %131, %158 : vector<16x32xf32>
    %c13 = arith.constant 13 : index
    %c0_71 = arith.constant 0 : index
    %160 = vector.load %arg6[%c13, %c0_71] : memref<64x128xf32, #tpu.memory_space<vmem>>, vector<1x32xf32>
    %c14 = arith.constant 14 : index
    %c0_72 = arith.constant 0 : index
    %161 = vector.load %arg6[%c14, %c0_72] : memref<64x128xf32, #tpu.memory_space<vmem>>, vector<1x32xf32>
    %cst_73 = arith.constant dense<0.000000e+00> : vector<16xf32>
    %162 = vector.multi_reduction <add>, %159, %cst_73 [1] : vector<16x32xf32> to vector<16xf32>
    %163 = vector.shape_cast %162 : vector<16xf32> to vector<16x1xf32>
    %cst_74 = arith.constant 3.200000e+01 : f32
    %164 = vector.broadcast %cst_74 : f32 to vector<16x1xf32>
    %165 = arith.divf %163, %164 : vector<16x1xf32>
    %166 = vector.broadcast %165 : vector<16x1xf32> to vector<16x32xf32>
    %167 = arith.subf %159, %166 : vector<16x32xf32>
    %168 = vector.broadcast %165 : vector<16x1xf32> to vector<16x32xf32>
    %169 = arith.subf %159, %168 : vector<16x32xf32>
    %170 = arith.mulf %167, %169 : vector<16x32xf32>
    %cst_75 = arith.constant dense<0.000000e+00> : vector<16xf32>
    %171 = vector.multi_reduction <add>, %170, %cst_75 [1] : vector<16x32xf32> to vector<16xf32>
    %172 = vector.shape_cast %171 : vector<16xf32> to vector<16x1xf32>
    %cst_76 = arith.constant 3.200000e+01 : f32
    %173 = vector.broadcast %cst_76 : f32 to vector<16x1xf32>
    %174 = arith.divf %172, %173 : vector<16x1xf32>
    %175 = vector.broadcast %165 : vector<16x1xf32> to vector<16x32xf32>
    %176 = arith.subf %159, %175 : vector<16x32xf32>
    %cst_77 = arith.constant 9.99999996E-13 : f32
    %177 = vector.broadcast %cst_77 : f32 to vector<16x1xf32>
    %178 = arith.addf %174, %177 : vector<16x1xf32>
    %179 = math.rsqrt %178 : vector<16x1xf32>
    %180 = vector.broadcast %179 : vector<16x1xf32> to vector<16x32xf32>
    %181 = arith.mulf %176, %180 : vector<16x32xf32>
    %182 = vector.broadcast %160 : vector<1x32xf32> to vector<16x32xf32>
    %183 = arith.mulf %181, %182 : vector<16x32xf32>
    %184 = vector.broadcast %161 : vector<1x32xf32> to vector<16x32xf32>
    %185 = arith.addf %183, %184 : vector<16x32xf32>
    %186 = arith.truncf %185 : vector<16x32xf32> to vector<16x32xbf16>
    %c2_78 = arith.constant 2 : index
    %c0_79 = arith.constant 0 : index
    %c0_80 = arith.constant 0 : index
    %187 = vector.load %arg8[%c2_78, %c0_79, %c0_80] : memref<4x32x16xbf16, #tpu.memory_space<vmem>>, vector<1x32x16xbf16>
    %188 = vector.shape_cast %187 : vector<1x32x16xbf16> to vector<32x16xbf16>
    %cst_81 = arith.constant dense<0.000000e+00> : vector<16x16xf32>
    %189 = tpu.matmul %186, %188, %cst_81 {dimension_numbers = #tpu.dot_dimension_numbers<[1], [0], [0], [1], [0, 0, 1, 1], [], []>} : vector<16x32xbf16>, vector<32x16xbf16>, vector<16x16xf32> -> vector<16x16xf32>
    %c15 = arith.constant 15 : index
    %c0_82 = arith.constant 0 : index
    %190 = vector.load %arg6[%c15, %c0_82] : memref<64x128xf32, #tpu.memory_space<vmem>>, vector<1x16xf32>
    %191 = vector.broadcast %190 : vector<1x16xf32> to vector<16x16xf32>
    %192 = arith.addf %189, %191 : vector<16x16xf32>
    %c2_83 = arith.constant 2 : index
    %c0_84 = arith.constant 0 : index
    %c0_85 = arith.constant 0 : index
    %193 = vector.load %arg9[%c2_83, %c0_84, %c0_85] : memref<4x32x16xbf16, #tpu.memory_space<vmem>>, vector<1x32x16xbf16>
    %194 = vector.shape_cast %193 : vector<1x32x16xbf16> to vector<32x16xbf16>
    %cst_86 = arith.constant dense<0.000000e+00> : vector<16x16xf32>
    %195 = tpu.matmul %186, %194, %cst_86 {dimension_numbers = #tpu.dot_dimension_numbers<[1], [0], [0], [1], [0, 0, 1, 1], [], []>} : vector<16x32xbf16>, vector<32x16xbf16>, vector<16x16xf32> -> vector<16x16xf32>
    %c16 = arith.constant 16 : index
    %c0_87 = arith.constant 0 : index
    %196 = vector.load %arg6[%c16, %c0_87] : memref<64x128xf32, #tpu.memory_space<vmem>>, vector<1x16xf32>
    %197 = vector.broadcast %196 : vector<1x16xf32> to vector<16x16xf32>
    %198 = arith.addf %195, %197 : vector<16x16xf32>
    %c2_88 = arith.constant 2 : index
    %c0_89 = arith.constant 0 : index
    %c0_90 = arith.constant 0 : index
    %199 = vector.load %arg10[%c2_88, %c0_89, %c0_90] : memref<4x32x32xbf16, #tpu.memory_space<vmem>>, vector<1x32x32xbf16>
    %200 = vector.shape_cast %199 : vector<1x32x32xbf16> to vector<32x32xbf16>
    %cst_91 = arith.constant dense<0.000000e+00> : vector<16x32xf32>
    %201 = tpu.matmul %186, %200, %cst_91 {dimension_numbers = #tpu.dot_dimension_numbers<[1], [0], [0], [1], [0, 0, 1, 1], [], []>} : vector<16x32xbf16>, vector<32x32xbf16>, vector<16x32xf32> -> vector<16x32xf32>
    %c17 = arith.constant 17 : index
    %c0_92 = arith.constant 0 : index
    %202 = vector.load %arg6[%c17, %c0_92] : memref<64x128xf32, #tpu.memory_space<vmem>>, vector<1x32xf32>
    %203 = vector.broadcast %202 : vector<1x32xf32> to vector<16x32xf32>
    %204 = arith.addf %201, %203 : vector<16x32xf32>
    %205 = arith.truncf %192 : vector<16x16xf32> to vector<16x16xbf16>
    %206 = arith.truncf %198 : vector<16x16xf32> to vector<16x16xbf16>
    "tpu.trace_start"() <{level = 10 : i32, message = "qd,kd->qk"}> : () -> ()
    %cst_93 = arith.constant dense<0.000000e+00> : vector<16x16xf32>
    %207 = tpu.matmul %205, %206, %cst_93 {dimension_numbers = #tpu.dot_dimension_numbers<[1], [1], [0], [0], [0, 0, 1, 0], [], []>} : vector<16x16xbf16>, vector<16x16xbf16>, vector<16x16xf32> -> vector<16x16xf32>
    "tpu.trace_stop"() : () -> ()
    %208 = arith.addf %207, %29 : vector<16x16xf32>
    %cst_94 = arith.constant dense<0xFF800000> : vector<16xf32>
    %209 = vector.multi_reduction <maximumf>, %208, %cst_94 [1] : vector<16x16xf32> to vector<16xf32>
    %210 = vector.shape_cast %209 : vector<16xf32> to vector<16x1xf32>
    %211 = vector.broadcast %210 : vector<16x1xf32> to vector<16x16xf32>
    %212 = arith.subf %208, %211 : vector<16x16xf32>
    %213 = math.exp %212 : vector<16x16xf32>
    %cst_95 = arith.constant dense<0.000000e+00> : vector<16xf32>
    %214 = vector.multi_reduction <add>, %213, %cst_95 [1] : vector<16x16xf32> to vector<16xf32>
    %215 = vector.shape_cast %214 : vector<16xf32> to vector<16x1xf32>
    %216 = tpu.reciprocal %215 {approx = true} : vector<16x1xf32> -> vector<16x1xf32>
    %217 = vector.broadcast %216 : vector<16x1xf32> to vector<16x16xf32>
    %218 = arith.mulf %213, %217 : vector<16x16xf32>
    %219 = arith.truncf %204 : vector<16x32xf32> to vector<16x32xbf16>
    %220 = arith.truncf %218 : vector<16x16xf32> to vector<16x16xbf16>
    %cst_96 = arith.constant dense<0.000000e+00> : vector<16x32xf32>
    %221 = tpu.matmul %220, %219, %cst_96 {dimension_numbers = #tpu.dot_dimension_numbers<[1], [0], [0], [1], [0, 0, 1, 1], [], []>} : vector<16x16xbf16>, vector<16x32xbf16>, vector<16x32xf32> -> vector<16x32xf32>
    %c3_97 = arith.constant 3 : index
    %c0_98 = arith.constant 0 : index
    %c0_99 = arith.constant 0 : index
    %222 = vector.load %arg8[%c3_97, %c0_98, %c0_99] : memref<4x32x16xbf16, #tpu.memory_space<vmem>>, vector<1x32x16xbf16>
    %223 = vector.shape_cast %222 : vector<1x32x16xbf16> to vector<32x16xbf16>
    %cst_100 = arith.constant dense<0.000000e+00> : vector<16x16xf32>
    %224 = tpu.matmul %186, %223, %cst_100 {dimension_numbers = #tpu.dot_dimension_numbers<[1], [0], [0], [1], [0, 0, 1, 1], [], []>} : vector<16x32xbf16>, vector<32x16xbf16>, vector<16x16xf32> -> vector<16x16xf32>
    %c18 = arith.constant 18 : index
    %c0_101 = arith.constant 0 : index
    %225 = vector.load %arg6[%c18, %c0_101] : memref<64x128xf32, #tpu.memory_space<vmem>>, vector<1x16xf32>
    %226 = vector.broadcast %225 : vector<1x16xf32> to vector<16x16xf32>
    %227 = arith.addf %224, %226 : vector<16x16xf32>
    %c3_102 = arith.constant 3 : index
    %c0_103 = arith.constant 0 : index
    %c0_104 = arith.constant 0 : index
    %228 = vector.load %arg9[%c3_102, %c0_103, %c0_104] : memref<4x32x16xbf16, #tpu.memory_space<vmem>>, vector<1x32x16xbf16>
    %229 = vector.shape_cast %228 : vector<1x32x16xbf16> to vector<32x16xbf16>
    %cst_105 = arith.constant dense<0.000000e+00> : vector<16x16xf32>
    %230 = tpu.matmul %186, %229, %cst_105 {dimension_numbers = #tpu.dot_dimension_numbers<[1], [0], [0], [1], [0, 0, 1, 1], [], []>} : vector<16x32xbf16>, vector<32x16xbf16>, vector<16x16xf32> -> vector<16x16xf32>
    %c19 = arith.constant 19 : index
    %c0_106 = arith.constant 0 : index
    %231 = vector.load %arg6[%c19, %c0_106] : memref<64x128xf32, #tpu.memory_space<vmem>>, vector<1x16xf32>
    %232 = vector.broadcast %231 : vector<1x16xf32> to vector<16x16xf32>
    %233 = arith.addf %230, %232 : vector<16x16xf32>
    %c3_107 = arith.constant 3 : index
    %c0_108 = arith.constant 0 : index
    %c0_109 = arith.constant 0 : index
    %234 = vector.load %arg10[%c3_107, %c0_108, %c0_109] : memref<4x32x32xbf16, #tpu.memory_space<vmem>>, vector<1x32x32xbf16>
    %235 = vector.shape_cast %234 : vector<1x32x32xbf16> to vector<32x32xbf16>
    %cst_110 = arith.constant dense<0.000000e+00> : vector<16x32xf32>
    %236 = tpu.matmul %186, %235, %cst_110 {dimension_numbers = #tpu.dot_dimension_numbers<[1], [0], [0], [1], [0, 0, 1, 1], [], []>} : vector<16x32xbf16>, vector<32x32xbf16>, vector<16x32xf32> -> vector<16x32xf32>
    %c20 = arith.constant 20 : index
    %c0_111 = arith.constant 0 : index
    %237 = vector.load %arg6[%c20, %c0_111] : memref<64x128xf32, #tpu.memory_space<vmem>>, vector<1x32xf32>
    %238 = vector.broadcast %237 : vector<1x32xf32> to vector<16x32xf32>
    %239 = arith.addf %236, %238 : vector<16x32xf32>
    %240 = arith.truncf %227 : vector<16x16xf32> to vector<16x16xbf16>
    %241 = arith.truncf %233 : vector<16x16xf32> to vector<16x16xbf16>
    "tpu.trace_start"() <{level = 10 : i32, message = "qd,kd->qk"}> : () -> ()
    %cst_112 = arith.constant dense<0.000000e+00> : vector<16x16xf32>
    %242 = tpu.matmul %240, %241, %cst_112 {dimension_numbers = #tpu.dot_dimension_numbers<[1], [1], [0], [0], [0, 0, 1, 0], [], []>} : vector<16x16xbf16>, vector<16x16xbf16>, vector<16x16xf32> -> vector<16x16xf32>
    "tpu.trace_stop"() : () -> ()
    %243 = arith.addf %242, %29 : vector<16x16xf32>
    %cst_113 = arith.constant dense<0xFF800000> : vector<16xf32>
    %244 = vector.multi_reduction <maximumf>, %243, %cst_113 [1] : vector<16x16xf32> to vector<16xf32>
    %245 = vector.shape_cast %244 : vector<16xf32> to vector<16x1xf32>
    %246 = vector.broadcast %245 : vector<16x1xf32> to vector<16x16xf32>
    %247 = arith.subf %243, %246 : vector<16x16xf32>
    %248 = math.exp %247 : vector<16x16xf32>
    %cst_114 = arith.constant dense<0.000000e+00> : vector<16xf32>
    %249 = vector.multi_reduction <add>, %248, %cst_114 [1] : vector<16x16xf32> to vector<16xf32>
    %250 = vector.shape_cast %249 : vector<16xf32> to vector<16x1xf32>
    %251 = tpu.reciprocal %250 {approx = true} : vector<16x1xf32> -> vector<16x1xf32>
    %252 = vector.broadcast %251 : vector<16x1xf32> to vector<16x16xf32>
    %253 = arith.mulf %248, %252 : vector<16x16xf32>
    %254 = arith.truncf %239 : vector<16x32xf32> to vector<16x32xbf16>
    %255 = arith.truncf %253 : vector<16x16xf32> to vector<16x16xbf16>
    %cst_115 = arith.constant dense<0.000000e+00> : vector<16x32xf32>
    %256 = tpu.matmul %255, %254, %cst_115 {dimension_numbers = #tpu.dot_dimension_numbers<[1], [0], [0], [1], [0, 0, 1, 1], [], []>} : vector<16x16xbf16>, vector<16x32xbf16>, vector<16x32xf32> -> vector<16x32xf32>
    %257 = arith.addf %221, %256 : vector<16x32xf32>
    %c21 = arith.constant 21 : index
    %c0_116 = arith.constant 0 : index
    %258 = vector.load %arg6[%c21, %c0_116] : memref<64x128xf32, #tpu.memory_space<vmem>>, vector<1x32xf32>
    %259 = vector.broadcast %258 : vector<1x32xf32> to vector<16x32xf32>
    %260 = arith.addf %257, %259 : vector<16x32xf32>
    %261 = arith.addf %185, %260 : vector<16x32xf32>
    %c22 = arith.constant 22 : index
    %c0_117 = arith.constant 0 : index
    %262 = vector.load %arg6[%c22, %c0_117] : memref<64x128xf32, #tpu.memory_space<vmem>>, vector<1x32xf32>
    %c23 = arith.constant 23 : index
    %c0_118 = arith.constant 0 : index
    %263 = vector.load %arg6[%c23, %c0_118] : memref<64x128xf32, #tpu.memory_space<vmem>>, vector<1x32xf32>
    %cst_119 = arith.constant dense<0.000000e+00> : vector<16xf32>
    %264 = vector.multi_reduction <add>, %261, %cst_119 [1] : vector<16x32xf32> to vector<16xf32>
    %265 = vector.shape_cast %264 : vector<16xf32> to vector<16x1xf32>
    %cst_120 = arith.constant 3.200000e+01 : f32
    %266 = vector.broadcast %cst_120 : f32 to vector<16x1xf32>
    %267 = arith.divf %265, %266 : vector<16x1xf32>
    %268 = vector.broadcast %267 : vector<16x1xf32> to vector<16x32xf32>
    %269 = arith.subf %261, %268 : vector<16x32xf32>
    %270 = vector.broadcast %267 : vector<16x1xf32> to vector<16x32xf32>
    %271 = arith.subf %261, %270 : vector<16x32xf32>
    %272 = arith.mulf %269, %271 : vector<16x32xf32>
    %cst_121 = arith.constant dense<0.000000e+00> : vector<16xf32>
    %273 = vector.multi_reduction <add>, %272, %cst_121 [1] : vector<16x32xf32> to vector<16xf32>
    %274 = vector.shape_cast %273 : vector<16xf32> to vector<16x1xf32>
    %cst_122 = arith.constant 3.200000e+01 : f32
    %275 = vector.broadcast %cst_122 : f32 to vector<16x1xf32>
    %276 = arith.divf %274, %275 : vector<16x1xf32>
    %277 = vector.broadcast %267 : vector<16x1xf32> to vector<16x32xf32>
    %278 = arith.subf %261, %277 : vector<16x32xf32>
    %cst_123 = arith.constant 9.99999996E-13 : f32
    %279 = vector.broadcast %cst_123 : f32 to vector<16x1xf32>
    %280 = arith.addf %276, %279 : vector<16x1xf32>
    %281 = math.rsqrt %280 : vector<16x1xf32>
    %282 = vector.broadcast %281 : vector<16x1xf32> to vector<16x32xf32>
    %283 = arith.mulf %278, %282 : vector<16x32xf32>
    %284 = vector.broadcast %262 : vector<1x32xf32> to vector<16x32xf32>
    %285 = arith.mulf %283, %284 : vector<16x32xf32>
    %286 = vector.broadcast %263 : vector<1x32xf32> to vector<16x32xf32>
    %287 = arith.addf %285, %286 : vector<16x32xf32>
    %c1_124 = arith.constant 1 : index
    %c0_125 = arith.constant 0 : index
    %c0_126 = arith.constant 0 : index
    %288 = vector.load %arg11[%c1_124, %c0_125, %c0_126] : memref<2x32x64xbf16, #tpu.memory_space<vmem>>, vector<1x32x64xbf16>
    %289 = vector.shape_cast %288 : vector<1x32x64xbf16> to vector<32x64xbf16>
    %290 = arith.truncf %287 : vector<16x32xf32> to vector<16x32xbf16>
    %cst_127 = arith.constant dense<0.000000e+00> : vector<16x64xf32>
    %291 = tpu.matmul %290, %289, %cst_127 {dimension_numbers = #tpu.dot_dimension_numbers<[1], [0], [0], [1], [0, 0, 1, 1], [], []>} : vector<16x32xbf16>, vector<32x64xbf16>, vector<16x64xf32> -> vector<16x64xf32>
    %c24 = arith.constant 24 : index
    %c0_128 = arith.constant 0 : index
    %292 = vector.load %arg6[%c24, %c0_128] : memref<64x128xf32, #tpu.memory_space<vmem>>, vector<1x64xf32>
    %293 = vector.broadcast %292 : vector<1x64xf32> to vector<16x64xf32>
    %294 = arith.addf %291, %293 : vector<16x64xf32>
    %cst_129 = arith.constant 5.000000e-01 : f32
    %295 = vector.broadcast %cst_129 : f32 to vector<16x64xf32>
    %296 = arith.mulf %295, %294 : vector<16x64xf32>
    %297 = arith.mulf %294, %294 : vector<16x64xf32>
    %cst_130 = arith.constant 4.471500e-02 : f32
    %298 = vector.broadcast %cst_130 : f32 to vector<16x64xf32>
    %299 = arith.mulf %298, %297 : vector<16x64xf32>
    %300 = arith.mulf %299, %294 : vector<16x64xf32>
    %301 = arith.addf %294, %300 : vector<16x64xf32>
    %cst_131 = arith.constant 0.797884583 : f32
    %302 = vector.broadcast %cst_131 : f32 to vector<16x64xf32>
    %303 = arith.mulf %302, %301 : vector<16x64xf32>
    %304 = math.tanh %303 : vector<16x64xf32>
    %cst_132 = arith.constant 1.000000e+00 : f32
    %305 = vector.broadcast %cst_132 : f32 to vector<16x64xf32>
    %306 = arith.addf %305, %304 : vector<16x64xf32>
    %307 = arith.mulf %296, %306 : vector<16x64xf32>
    %c1_133 = arith.constant 1 : index
    %c0_134 = arith.constant 0 : index
    %c0_135 = arith.constant 0 : index
    %308 = vector.load %arg12[%c1_133, %c0_134, %c0_135] : memref<2x64x32xbf16, #tpu.memory_space<vmem>>, vector<1x64x32xbf16>
    %309 = vector.shape_cast %308 : vector<1x64x32xbf16> to vector<64x32xbf16>
    %310 = arith.truncf %307 : vector<16x64xf32> to vector<16x64xbf16>
    %cst_136 = arith.constant dense<0.000000e+00> : vector<16x32xf32>
    %311 = tpu.matmul %310, %309, %cst_136 {dimension_numbers = #tpu.dot_dimension_numbers<[1], [0], [0], [1], [0, 0, 1, 1], [], []>} : vector<16x64xbf16>, vector<64x32xbf16>, vector<16x32xf32> -> vector<16x32xf32>
    %c25 = arith.constant 25 : index
    %c0_137 = arith.constant 0 : index
    %312 = vector.load %arg6[%c25, %c0_137] : memref<64x128xf32, #tpu.memory_space<vmem>>, vector<1x32xf32>
    %313 = vector.broadcast %312 : vector<1x32xf32> to vector<16x32xf32>
    %314 = arith.addf %311, %313 : vector<16x32xf32>
    %315 = arith.addf %287, %314 : vector<16x32xf32>
    %c26 = arith.constant 26 : index
    %c0_138 = arith.constant 0 : index
    %316 = vector.load %arg6[%c26, %c0_138] : memref<64x128xf32, #tpu.memory_space<vmem>>, vector<1x32xf32>
    %c27 = arith.constant 27 : index
    %c0_139 = arith.constant 0 : index
    %317 = vector.load %arg6[%c27, %c0_139] : memref<64x128xf32, #tpu.memory_space<vmem>>, vector<1x32xf32>
    %cst_140 = arith.constant dense<0.000000e+00> : vector<16xf32>
    %318 = vector.multi_reduction <add>, %315, %cst_140 [1] : vector<16x32xf32> to vector<16xf32>
    %319 = vector.shape_cast %318 : vector<16xf32> to vector<16x1xf32>
    %cst_141 = arith.constant 3.200000e+01 : f32
    %320 = vector.broadcast %cst_141 : f32 to vector<16x1xf32>
    %321 = arith.divf %319, %320 : vector<16x1xf32>
    %322 = vector.broadcast %321 : vector<16x1xf32> to vector<16x32xf32>
    %323 = arith.subf %315, %322 : vector<16x32xf32>
    %324 = vector.broadcast %321 : vector<16x1xf32> to vector<16x32xf32>
    %325 = arith.subf %315, %324 : vector<16x32xf32>
    %326 = arith.mulf %323, %325 : vector<16x32xf32>
    %cst_142 = arith.constant dense<0.000000e+00> : vector<16xf32>
    %327 = vector.multi_reduction <add>, %326, %cst_142 [1] : vector<16x32xf32> to vector<16xf32>
    %328 = vector.shape_cast %327 : vector<16xf32> to vector<16x1xf32>
    %cst_143 = arith.constant 3.200000e+01 : f32
    %329 = vector.broadcast %cst_143 : f32 to vector<16x1xf32>
    %330 = arith.divf %328, %329 : vector<16x1xf32>
    %331 = vector.broadcast %321 : vector<16x1xf32> to vector<16x32xf32>
    %332 = arith.subf %315, %331 : vector<16x32xf32>
    %cst_144 = arith.constant 9.99999996E-13 : f32
    %333 = vector.broadcast %cst_144 : f32 to vector<16x1xf32>
    %334 = arith.addf %330, %333 : vector<16x1xf32>
    %335 = math.rsqrt %334 : vector<16x1xf32>
    %336 = vector.broadcast %335 : vector<16x1xf32> to vector<16x32xf32>
    %337 = arith.mulf %332, %336 : vector<16x32xf32>
    %338 = vector.broadcast %316 : vector<1x32xf32> to vector<16x32xf32>
    %339 = arith.mulf %337, %338 : vector<16x32xf32>
    %340 = vector.broadcast %317 : vector<1x32xf32> to vector<16x32xf32>
    %341 = arith.addf %339, %340 : vector<16x32xf32>
    %342 = tpu.iota {dimensions = array<i32: 0>} : vector<2x16xi32>
    %343 = tpu.iota {dimensions = array<i32: 1>} : vector<2x16xi32>
    %c8_i32 = arith.constant 8 : i32
    %344 = vector.broadcast %c8_i32 : i32 to vector<2x16xi32>
    %345 = arith.muli %342, %344 : vector<2x16xi32>
    %346 = arith.cmpi eq, %343, %345 : vector<2x16xi32>
    %347 = arith.extui %346 : vector<2x16xi1> to vector<2x16xi32>
    %348 = arith.sitofp %347 : vector<2x16xi32> to vector<2x16xf32>
    %349 = arith.truncf %348 : vector<2x16xf32> to vector<2x16xbf16>
    %350 = arith.truncf %341 : vector<16x32xf32> to vector<16x32xbf16>
    %cst_145 = arith.constant dense<0.000000e+00> : vector<2x32xf32>
    %351 = tpu.matmul %349, %350, %cst_145 {dimension_numbers = #tpu.dot_dimension_numbers<[1], [0], [0], [1], [0, 0, 1, 1], [], []>} : vector<2x16xbf16>, vector<16x32xbf16>, vector<2x32xf32> -> vector<2x32xf32>
    %c0_146 = arith.constant 0 : index
    %c0_147 = arith.constant 0 : index
    %352 = vector.load %arg13[%c0_146, %c0_147] : memref<32x32xbf16, #tpu.memory_space<vmem>>, vector<32x32xbf16>
    %353 = arith.truncf %351 : vector<2x32xf32> to vector<2x32xbf16>
    %cst_148 = arith.constant dense<0.000000e+00> : vector<2x32xf32>
    %354 = tpu.matmul %353, %352, %cst_148 {dimension_numbers = #tpu.dot_dimension_numbers<[1], [0], [0], [1], [0, 0, 1, 1], [], []>} : vector<2x32xbf16>, vector<32x32xbf16>, vector<2x32xf32> -> vector<2x32xf32>
    %c28 = arith.constant 28 : index
    %c0_149 = arith.constant 0 : index
    %355 = vector.load %arg6[%c28, %c0_149] : memref<64x128xf32, #tpu.memory_space<vmem>>, vector<1x32xf32>
    %356 = vector.broadcast %355 : vector<1x32xf32> to vector<2x32xf32>
    %357 = arith.addf %354, %356 : vector<2x32xf32>
    %358 = math.tanh %357 : vector<2x32xf32>
    %c0_150 = arith.constant 0 : index
    %c0_151 = arith.constant 0 : index
    %359 = vector.load %arg3[%c0_150, %c0_151] : memref<16x192xbf16, #tpu.memory_space<vmem>>, vector<16x192xbf16>
    %c0_152 = arith.constant 0 : index
    %c0_153 = arith.constant 0 : index
    %360 = vector.load %arg14[%c0_152, %c0_153] : memref<192x32xbf16, #tpu.memory_space<vmem>>, vector<192x32xbf16>
    %cst_154 = arith.constant dense<0.000000e+00> : vector<16x32xf32>
    %361 = tpu.matmul %359, %360, %cst_154 {dimension_numbers = #tpu.dot_dimension_numbers<[1], [0], [0], [1], [0, 0, 1, 1], [], []>} : vector<16x192xbf16>, vector<192x32xbf16>, vector<16x32xf32> -> vector<16x32xf32>
    %c0_155 = arith.constant 0 : index
    %c0_156 = arith.constant 0 : index
    %362 = vector.load %arg5[%c0_155, %c0_156] : memref<16x32xf32, #tpu.memory_space<vmem>>, vector<16x32xf32>
    %363 = arith.addf %361, %362 : vector<16x32xf32>
    %c0_157 = arith.constant 0 : index
    %c0_158 = arith.constant 0 : index
    %c0_159 = arith.constant 0 : index
    %364 = vector.load %arg4[%c0_157, %c0_158, %c0_159] : memref<1x16x16xf32, #tpu.memory_space<vmem>>, vector<1x16x16xf32>
    %365 = vector.shape_cast %364 : vector<1x16x16xf32> to vector<16x16xf32>
    %c36 = arith.constant 36 : index
    %c0_160 = arith.constant 0 : index
    %366 = vector.load %arg6[%c36, %c0_160] : memref<64x128xf32, #tpu.memory_space<vmem>>, vector<1x32xf32>
    %c37 = arith.constant 37 : index
    %c0_161 = arith.constant 0 : index
    %367 = vector.load %arg6[%c37, %c0_161] : memref<64x128xf32, #tpu.memory_space<vmem>>, vector<1x32xf32>
    %cst_162 = arith.constant dense<0.000000e+00> : vector<16xf32>
    %368 = vector.multi_reduction <add>, %363, %cst_162 [1] : vector<16x32xf32> to vector<16xf32>
    %369 = vector.shape_cast %368 : vector<16xf32> to vector<16x1xf32>
    %cst_163 = arith.constant 3.200000e+01 : f32
    %370 = vector.broadcast %cst_163 : f32 to vector<16x1xf32>
    %371 = arith.divf %369, %370 : vector<16x1xf32>
    %372 = vector.broadcast %371 : vector<16x1xf32> to vector<16x32xf32>
    %373 = arith.subf %363, %372 : vector<16x32xf32>
    %374 = vector.broadcast %371 : vector<16x1xf32> to vector<16x32xf32>
    %375 = arith.subf %363, %374 : vector<16x32xf32>
    %376 = arith.mulf %373, %375 : vector<16x32xf32>
    %cst_164 = arith.constant dense<0.000000e+00> : vector<16xf32>
    %377 = vector.multi_reduction <add>, %376, %cst_164 [1] : vector<16x32xf32> to vector<16xf32>
    %378 = vector.shape_cast %377 : vector<16xf32> to vector<16x1xf32>
    %cst_165 = arith.constant 3.200000e+01 : f32
    %379 = vector.broadcast %cst_165 : f32 to vector<16x1xf32>
    %380 = arith.divf %378, %379 : vector<16x1xf32>
    %381 = vector.broadcast %371 : vector<16x1xf32> to vector<16x32xf32>
    %382 = arith.subf %363, %381 : vector<16x32xf32>
    %cst_166 = arith.constant 9.99999997E-7 : f32
    %383 = vector.broadcast %cst_166 : f32 to vector<16x1xf32>
    %384 = arith.addf %380, %383 : vector<16x1xf32>
    %385 = math.rsqrt %384 : vector<16x1xf32>
    %386 = vector.broadcast %385 : vector<16x1xf32> to vector<16x32xf32>
    %387 = arith.mulf %382, %386 : vector<16x32xf32>
    %388 = vector.broadcast %366 : vector<1x32xf32> to vector<16x32xf32>
    %389 = arith.mulf %387, %388 : vector<16x32xf32>
    %390 = vector.broadcast %367 : vector<1x32xf32> to vector<16x32xf32>
    %391 = arith.addf %389, %390 : vector<16x32xf32>
    %392 = arith.truncf %391 : vector<16x32xf32> to vector<16x32xbf16>
    %c0_167 = arith.constant 0 : index
    %c0_168 = arith.constant 0 : index
    %c0_169 = arith.constant 0 : index
    %393 = vector.load %arg15[%c0_167, %c0_168, %c0_169] : memref<4x32x16xbf16, #tpu.memory_space<vmem>>, vector<1x32x16xbf16>
    %394 = vector.shape_cast %393 : vector<1x32x16xbf16> to vector<32x16xbf16>
    %cst_170 = arith.constant dense<0.000000e+00> : vector<16x16xf32>
    %395 = tpu.matmul %392, %394, %cst_170 {dimension_numbers = #tpu.dot_dimension_numbers<[1], [0], [0], [1], [0, 0, 1, 1], [], []>} : vector<16x32xbf16>, vector<32x16xbf16>, vector<16x16xf32> -> vector<16x16xf32>
    %c29 = arith.constant 29 : index
    %c0_171 = arith.constant 0 : index
    %396 = vector.load %arg6[%c29, %c0_171] : memref<64x128xf32, #tpu.memory_space<vmem>>, vector<1x16xf32>
    %397 = vector.broadcast %396 : vector<1x16xf32> to vector<16x16xf32>
    %398 = arith.addf %395, %397 : vector<16x16xf32>
    %c0_172 = arith.constant 0 : index
    %c0_173 = arith.constant 0 : index
    %c0_174 = arith.constant 0 : index
    %399 = vector.load %arg16[%c0_172, %c0_173, %c0_174] : memref<4x32x16xbf16, #tpu.memory_space<vmem>>, vector<1x32x16xbf16>
    %400 = vector.shape_cast %399 : vector<1x32x16xbf16> to vector<32x16xbf16>
    %cst_175 = arith.constant dense<0.000000e+00> : vector<16x16xf32>
    %401 = tpu.matmul %392, %400, %cst_175 {dimension_numbers = #tpu.dot_dimension_numbers<[1], [0], [0], [1], [0, 0, 1, 1], [], []>} : vector<16x32xbf16>, vector<32x16xbf16>, vector<16x16xf32> -> vector<16x16xf32>
    %c30 = arith.constant 30 : index
    %c0_176 = arith.constant 0 : index
    %402 = vector.load %arg6[%c30, %c0_176] : memref<64x128xf32, #tpu.memory_space<vmem>>, vector<1x16xf32>
    %403 = vector.broadcast %402 : vector<1x16xf32> to vector<16x16xf32>
    %404 = arith.addf %401, %403 : vector<16x16xf32>
    %c0_177 = arith.constant 0 : index
    %c0_178 = arith.constant 0 : index
    %c0_179 = arith.constant 0 : index
    %405 = vector.load %arg17[%c0_177, %c0_178, %c0_179] : memref<4x32x32xbf16, #tpu.memory_space<vmem>>, vector<1x32x32xbf16>
    %406 = vector.shape_cast %405 : vector<1x32x32xbf16> to vector<32x32xbf16>
    %cst_180 = arith.constant dense<0.000000e+00> : vector<16x32xf32>
    %407 = tpu.matmul %392, %406, %cst_180 {dimension_numbers = #tpu.dot_dimension_numbers<[1], [0], [0], [1], [0, 0, 1, 1], [], []>} : vector<16x32xbf16>, vector<32x32xbf16>, vector<16x32xf32> -> vector<16x32xf32>
    %c31 = arith.constant 31 : index
    %c0_181 = arith.constant 0 : index
    %408 = vector.load %arg6[%c31, %c0_181] : memref<64x128xf32, #tpu.memory_space<vmem>>, vector<1x32xf32>
    %409 = vector.broadcast %408 : vector<1x32xf32> to vector<16x32xf32>
    %410 = arith.addf %407, %409 : vector<16x32xf32>
    %411 = arith.truncf %398 : vector<16x16xf32> to vector<16x16xbf16>
    %412 = arith.truncf %404 : vector<16x16xf32> to vector<16x16xbf16>
    "tpu.trace_start"() <{level = 10 : i32, message = "qd,kd->qk"}> : () -> ()
    %cst_182 = arith.constant dense<0.000000e+00> : vector<16x16xf32>
    %413 = tpu.matmul %411, %412, %cst_182 {dimension_numbers = #tpu.dot_dimension_numbers<[1], [1], [0], [0], [0, 0, 1, 0], [], []>} : vector<16x16xbf16>, vector<16x16xbf16>, vector<16x16xf32> -> vector<16x16xf32>
    "tpu.trace_stop"() : () -> ()
    %414 = arith.addf %413, %365 : vector<16x16xf32>
    %cst_183 = arith.constant dense<0xFF800000> : vector<16xf32>
    %415 = vector.multi_reduction <maximumf>, %414, %cst_183 [1] : vector<16x16xf32> to vector<16xf32>
    %416 = vector.shape_cast %415 : vector<16xf32> to vector<16x1xf32>
    %417 = vector.broadcast %416 : vector<16x1xf32> to vector<16x16xf32>
    %418 = arith.subf %414, %417 : vector<16x16xf32>
    %419 = math.exp %418 : vector<16x16xf32>
    %cst_184 = arith.constant dense<0.000000e+00> : vector<16xf32>
    %420 = vector.multi_reduction <add>, %419, %cst_184 [1] : vector<16x16xf32> to vector<16xf32>
    %421 = vector.shape_cast %420 : vector<16xf32> to vector<16x1xf32>
    %422 = tpu.reciprocal %421 {approx = true} : vector<16x1xf32> -> vector<16x1xf32>
    %423 = vector.broadcast %422 : vector<16x1xf32> to vector<16x16xf32>
    %424 = arith.mulf %419, %423 : vector<16x16xf32>
    %425 = arith.truncf %410 : vector<16x32xf32> to vector<16x32xbf16>
    %426 = arith.truncf %424 : vector<16x16xf32> to vector<16x16xbf16>
    %cst_185 = arith.constant dense<0.000000e+00> : vector<16x32xf32>
    %427 = tpu.matmul %426, %425, %cst_185 {dimension_numbers = #tpu.dot_dimension_numbers<[1], [0], [0], [1], [0, 0, 1, 1], [], []>} : vector<16x16xbf16>, vector<16x32xbf16>, vector<16x32xf32> -> vector<16x32xf32>
    %c1_186 = arith.constant 1 : index
    %c0_187 = arith.constant 0 : index
    %c0_188 = arith.constant 0 : index
    %428 = vector.load %arg15[%c1_186, %c0_187, %c0_188] : memref<4x32x16xbf16, #tpu.memory_space<vmem>>, vector<1x32x16xbf16>
    %429 = vector.shape_cast %428 : vector<1x32x16xbf16> to vector<32x16xbf16>
    %cst_189 = arith.constant dense<0.000000e+00> : vector<16x16xf32>
    %430 = tpu.matmul %392, %429, %cst_189 {dimension_numbers = #tpu.dot_dimension_numbers<[1], [0], [0], [1], [0, 0, 1, 1], [], []>} : vector<16x32xbf16>, vector<32x16xbf16>, vector<16x16xf32> -> vector<16x16xf32>
    %c32 = arith.constant 32 : index
    %c0_190 = arith.constant 0 : index
    %431 = vector.load %arg6[%c32, %c0_190] : memref<64x128xf32, #tpu.memory_space<vmem>>, vector<1x16xf32>
    %432 = vector.broadcast %431 : vector<1x16xf32> to vector<16x16xf32>
    %433 = arith.addf %430, %432 : vector<16x16xf32>
    %c1_191 = arith.constant 1 : index
    %c0_192 = arith.constant 0 : index
    %c0_193 = arith.constant 0 : index
    %434 = vector.load %arg16[%c1_191, %c0_192, %c0_193] : memref<4x32x16xbf16, #tpu.memory_space<vmem>>, vector<1x32x16xbf16>
    %435 = vector.shape_cast %434 : vector<1x32x16xbf16> to vector<32x16xbf16>
    %cst_194 = arith.constant dense<0.000000e+00> : vector<16x16xf32>
    %436 = tpu.matmul %392, %435, %cst_194 {dimension_numbers = #tpu.dot_dimension_numbers<[1], [0], [0], [1], [0, 0, 1, 1], [], []>} : vector<16x32xbf16>, vector<32x16xbf16>, vector<16x16xf32> -> vector<16x16xf32>
    %c33 = arith.constant 33 : index
    %c0_195 = arith.constant 0 : index
    %437 = vector.load %arg6[%c33, %c0_195] : memref<64x128xf32, #tpu.memory_space<vmem>>, vector<1x16xf32>
    %438 = vector.broadcast %437 : vector<1x16xf32> to vector<16x16xf32>
    %439 = arith.addf %436, %438 : vector<16x16xf32>
    %c1_196 = arith.constant 1 : index
    %c0_197 = arith.constant 0 : index
    %c0_198 = arith.constant 0 : index
    %440 = vector.load %arg17[%c1_196, %c0_197, %c0_198] : memref<4x32x32xbf16, #tpu.memory_space<vmem>>, vector<1x32x32xbf16>
    %441 = vector.shape_cast %440 : vector<1x32x32xbf16> to vector<32x32xbf16>
    %cst_199 = arith.constant dense<0.000000e+00> : vector<16x32xf32>
    %442 = tpu.matmul %392, %441, %cst_199 {dimension_numbers = #tpu.dot_dimension_numbers<[1], [0], [0], [1], [0, 0, 1, 1], [], []>} : vector<16x32xbf16>, vector<32x32xbf16>, vector<16x32xf32> -> vector<16x32xf32>
    %c34 = arith.constant 34 : index
    %c0_200 = arith.constant 0 : index
    %443 = vector.load %arg6[%c34, %c0_200] : memref<64x128xf32, #tpu.memory_space<vmem>>, vector<1x32xf32>
    %444 = vector.broadcast %443 : vector<1x32xf32> to vector<16x32xf32>
    %445 = arith.addf %442, %444 : vector<16x32xf32>
    %446 = arith.truncf %433 : vector<16x16xf32> to vector<16x16xbf16>
    %447 = arith.truncf %439 : vector<16x16xf32> to vector<16x16xbf16>
    "tpu.trace_start"() <{level = 10 : i32, message = "qd,kd->qk"}> : () -> ()
    %cst_201 = arith.constant dense<0.000000e+00> : vector<16x16xf32>
    %448 = tpu.matmul %446, %447, %cst_201 {dimension_numbers = #tpu.dot_dimension_numbers<[1], [1], [0], [0], [0, 0, 1, 0], [], []>} : vector<16x16xbf16>, vector<16x16xbf16>, vector<16x16xf32> -> vector<16x16xf32>
    "tpu.trace_stop"() : () -> ()
    %449 = arith.addf %448, %365 : vector<16x16xf32>
    %cst_202 = arith.constant dense<0xFF800000> : vector<16xf32>
    %450 = vector.multi_reduction <maximumf>, %449, %cst_202 [1] : vector<16x16xf32> to vector<16xf32>
    %451 = vector.shape_cast %450 : vector<16xf32> to vector<16x1xf32>
    %452 = vector.broadcast %451 : vector<16x1xf32> to vector<16x16xf32>
    %453 = arith.subf %449, %452 : vector<16x16xf32>
    %454 = math.exp %453 : vector<16x16xf32>
    %cst_203 = arith.constant dense<0.000000e+00> : vector<16xf32>
    %455 = vector.multi_reduction <add>, %454, %cst_203 [1] : vector<16x16xf32> to vector<16xf32>
    %456 = vector.shape_cast %455 : vector<16xf32> to vector<16x1xf32>
    %457 = tpu.reciprocal %456 {approx = true} : vector<16x1xf32> -> vector<16x1xf32>
    %458 = vector.broadcast %457 : vector<16x1xf32> to vector<16x16xf32>
    %459 = arith.mulf %454, %458 : vector<16x16xf32>
    %460 = arith.truncf %445 : vector<16x32xf32> to vector<16x32xbf16>
    %461 = arith.truncf %459 : vector<16x16xf32> to vector<16x16xbf16>
    %cst_204 = arith.constant dense<0.000000e+00> : vector<16x32xf32>
    %462 = tpu.matmul %461, %460, %cst_204 {dimension_numbers = #tpu.dot_dimension_numbers<[1], [0], [0], [1], [0, 0, 1, 1], [], []>} : vector<16x16xbf16>, vector<16x32xbf16>, vector<16x32xf32> -> vector<16x32xf32>
    %463 = arith.addf %427, %462 : vector<16x32xf32>
    %c35 = arith.constant 35 : index
    %c0_205 = arith.constant 0 : index
    %464 = vector.load %arg6[%c35, %c0_205] : memref<64x128xf32, #tpu.memory_space<vmem>>, vector<1x32xf32>
    %465 = vector.broadcast %464 : vector<1x32xf32> to vector<16x32xf32>
    %466 = arith.addf %463, %465 : vector<16x32xf32>
    %467 = arith.addf %363, %466 : vector<16x32xf32>
    %c40 = arith.constant 40 : index
    %c0_206 = arith.constant 0 : index
    %468 = vector.load %arg6[%c40, %c0_206] : memref<64x128xf32, #tpu.memory_space<vmem>>, vector<1x32xf32>
    %c41 = arith.constant 41 : index
    %c0_207 = arith.constant 0 : index
    %469 = vector.load %arg6[%c41, %c0_207] : memref<64x128xf32, #tpu.memory_space<vmem>>, vector<1x32xf32>
    %cst_208 = arith.constant dense<0.000000e+00> : vector<16xf32>
    %470 = vector.multi_reduction <add>, %467, %cst_208 [1] : vector<16x32xf32> to vector<16xf32>
    %471 = vector.shape_cast %470 : vector<16xf32> to vector<16x1xf32>
    %cst_209 = arith.constant 3.200000e+01 : f32
    %472 = vector.broadcast %cst_209 : f32 to vector<16x1xf32>
    %473 = arith.divf %471, %472 : vector<16x1xf32>
    %474 = vector.broadcast %473 : vector<16x1xf32> to vector<16x32xf32>
    %475 = arith.subf %467, %474 : vector<16x32xf32>
    %476 = vector.broadcast %473 : vector<16x1xf32> to vector<16x32xf32>
    %477 = arith.subf %467, %476 : vector<16x32xf32>
    %478 = arith.mulf %475, %477 : vector<16x32xf32>
    %cst_210 = arith.constant dense<0.000000e+00> : vector<16xf32>
    %479 = vector.multi_reduction <add>, %478, %cst_210 [1] : vector<16x32xf32> to vector<16xf32>
    %480 = vector.shape_cast %479 : vector<16xf32> to vector<16x1xf32>
    %cst_211 = arith.constant 3.200000e+01 : f32
    %481 = vector.broadcast %cst_211 : f32 to vector<16x1xf32>
    %482 = arith.divf %480, %481 : vector<16x1xf32>
    %483 = vector.broadcast %473 : vector<16x1xf32> to vector<16x32xf32>
    %484 = arith.subf %467, %483 : vector<16x32xf32>
    %cst_212 = arith.constant 9.99999997E-7 : f32
    %485 = vector.broadcast %cst_212 : f32 to vector<16x1xf32>
    %486 = arith.addf %482, %485 : vector<16x1xf32>
    %487 = math.rsqrt %486 : vector<16x1xf32>
    %488 = vector.broadcast %487 : vector<16x1xf32> to vector<16x32xf32>
    %489 = arith.mulf %484, %488 : vector<16x32xf32>
    %490 = vector.broadcast %468 : vector<1x32xf32> to vector<16x32xf32>
    %491 = arith.mulf %489, %490 : vector<16x32xf32>
    %492 = vector.broadcast %469 : vector<1x32xf32> to vector<16x32xf32>
    %493 = arith.addf %491, %492 : vector<16x32xf32>
    %c0_213 = arith.constant 0 : index
    %c0_214 = arith.constant 0 : index
    %c0_215 = arith.constant 0 : index
    %494 = vector.load %arg18[%c0_213, %c0_214, %c0_215] : memref<2x32x64xbf16, #tpu.memory_space<vmem>>, vector<1x32x64xbf16>
    %495 = vector.shape_cast %494 : vector<1x32x64xbf16> to vector<32x64xbf16>
    %496 = arith.truncf %493 : vector<16x32xf32> to vector<16x32xbf16>
    %cst_216 = arith.constant dense<0.000000e+00> : vector<16x64xf32>
    %497 = tpu.matmul %496, %495, %cst_216 {dimension_numbers = #tpu.dot_dimension_numbers<[1], [0], [0], [1], [0, 0, 1, 1], [], []>} : vector<16x32xbf16>, vector<32x64xbf16>, vector<16x64xf32> -> vector<16x64xf32>
    %c38 = arith.constant 38 : index
    %c0_217 = arith.constant 0 : index
    %498 = vector.load %arg6[%c38, %c0_217] : memref<64x128xf32, #tpu.memory_space<vmem>>, vector<1x64xf32>
    %499 = vector.broadcast %498 : vector<1x64xf32> to vector<16x64xf32>
    %500 = arith.addf %497, %499 : vector<16x64xf32>
    %cst_218 = arith.constant 5.000000e-01 : f32
    %501 = vector.broadcast %cst_218 : f32 to vector<16x64xf32>
    %502 = arith.mulf %501, %500 : vector<16x64xf32>
    %503 = arith.mulf %500, %500 : vector<16x64xf32>
    %cst_219 = arith.constant 4.471500e-02 : f32
    %504 = vector.broadcast %cst_219 : f32 to vector<16x64xf32>
    %505 = arith.mulf %504, %503 : vector<16x64xf32>
    %506 = arith.mulf %505, %500 : vector<16x64xf32>
    %507 = arith.addf %500, %506 : vector<16x64xf32>
    %cst_220 = arith.constant 0.797884583 : f32
    %508 = vector.broadcast %cst_220 : f32 to vector<16x64xf32>
    %509 = arith.mulf %508, %507 : vector<16x64xf32>
    %510 = math.tanh %509 : vector<16x64xf32>
    %cst_221 = arith.constant 1.000000e+00 : f32
    %511 = vector.broadcast %cst_221 : f32 to vector<16x64xf32>
    %512 = arith.addf %511, %510 : vector<16x64xf32>
    %513 = arith.mulf %502, %512 : vector<16x64xf32>
    %c0_222 = arith.constant 0 : index
    %c0_223 = arith.constant 0 : index
    %c0_224 = arith.constant 0 : index
    %514 = vector.load %arg19[%c0_222, %c0_223, %c0_224] : memref<2x64x32xbf16, #tpu.memory_space<vmem>>, vector<1x64x32xbf16>
    %515 = vector.shape_cast %514 : vector<1x64x32xbf16> to vector<64x32xbf16>
    %516 = arith.truncf %513 : vector<16x64xf32> to vector<16x64xbf16>
    %cst_225 = arith.constant dense<0.000000e+00> : vector<16x32xf32>
    %517 = tpu.matmul %516, %515, %cst_225 {dimension_numbers = #tpu.dot_dimension_numbers<[1], [0], [0], [1], [0, 0, 1, 1], [], []>} : vector<16x64xbf16>, vector<64x32xbf16>, vector<16x32xf32> -> vector<16x32xf32>
    %c39 = arith.constant 39 : index
    %c0_226 = arith.constant 0 : index
    %518 = vector.load %arg6[%c39, %c0_226] : memref<64x128xf32, #tpu.memory_space<vmem>>, vector<1x32xf32>
    %519 = vector.broadcast %518 : vector<1x32xf32> to vector<16x32xf32>
    %520 = arith.addf %517, %519 : vector<16x32xf32>
    %521 = arith.addf %467, %520 : vector<16x32xf32>
    %c49 = arith.constant 49 : index
    %c0_227 = arith.constant 0 : index
    %522 = vector.load %arg6[%c49, %c0_227] : memref<64x128xf32, #tpu.memory_space<vmem>>, vector<1x32xf32>
    %c50 = arith.constant 50 : index
    %c0_228 = arith.constant 0 : index
    %523 = vector.load %arg6[%c50, %c0_228] : memref<64x128xf32, #tpu.memory_space<vmem>>, vector<1x32xf32>
    %cst_229 = arith.constant dense<0.000000e+00> : vector<16xf32>
    %524 = vector.multi_reduction <add>, %521, %cst_229 [1] : vector<16x32xf32> to vector<16xf32>
    %525 = vector.shape_cast %524 : vector<16xf32> to vector<16x1xf32>
    %cst_230 = arith.constant 3.200000e+01 : f32
    %526 = vector.broadcast %cst_230 : f32 to vector<16x1xf32>
    %527 = arith.divf %525, %526 : vector<16x1xf32>
    %528 = vector.broadcast %527 : vector<16x1xf32> to vector<16x32xf32>
    %529 = arith.subf %521, %528 : vector<16x32xf32>
    %530 = vector.broadcast %527 : vector<16x1xf32> to vector<16x32xf32>
    %531 = arith.subf %521, %530 : vector<16x32xf32>
    %532 = arith.mulf %529, %531 : vector<16x32xf32>
    %cst_231 = arith.constant dense<0.000000e+00> : vector<16xf32>
    %533 = vector.multi_reduction <add>, %532, %cst_231 [1] : vector<16x32xf32> to vector<16xf32>
    %534 = vector.shape_cast %533 : vector<16xf32> to vector<16x1xf32>
    %cst_232 = arith.constant 3.200000e+01 : f32
    %535 = vector.broadcast %cst_232 : f32 to vector<16x1xf32>
    %536 = arith.divf %534, %535 : vector<16x1xf32>
    %537 = vector.broadcast %527 : vector<16x1xf32> to vector<16x32xf32>
    %538 = arith.subf %521, %537 : vector<16x32xf32>
    %cst_233 = arith.constant 9.99999997E-7 : f32
    %539 = vector.broadcast %cst_233 : f32 to vector<16x1xf32>
    %540 = arith.addf %536, %539 : vector<16x1xf32>
    %541 = math.rsqrt %540 : vector<16x1xf32>
    %542 = vector.broadcast %541 : vector<16x1xf32> to vector<16x32xf32>
    %543 = arith.mulf %538, %542 : vector<16x32xf32>
    %544 = vector.broadcast %522 : vector<1x32xf32> to vector<16x32xf32>
    %545 = arith.mulf %543, %544 : vector<16x32xf32>
    %546 = vector.broadcast %523 : vector<1x32xf32> to vector<16x32xf32>
    %547 = arith.addf %545, %546 : vector<16x32xf32>
    %548 = arith.truncf %547 : vector<16x32xf32> to vector<16x32xbf16>
    %c2_234 = arith.constant 2 : index
    %c0_235 = arith.constant 0 : index
    %c0_236 = arith.constant 0 : index
    %549 = vector.load %arg15[%c2_234, %c0_235, %c0_236] : memref<4x32x16xbf16, #tpu.memory_space<vmem>>, vector<1x32x16xbf16>
    %550 = vector.shape_cast %549 : vector<1x32x16xbf16> to vector<32x16xbf16>
    %cst_237 = arith.constant dense<0.000000e+00> : vector<16x16xf32>
    %551 = tpu.matmul %548, %550, %cst_237 {dimension_numbers = #tpu.dot_dimension_numbers<[1], [0], [0], [1], [0, 0, 1, 1], [], []>} : vector<16x32xbf16>, vector<32x16xbf16>, vector<16x16xf32> -> vector<16x16xf32>
    %c42 = arith.constant 42 : index
    %c0_238 = arith.constant 0 : index
    %552 = vector.load %arg6[%c42, %c0_238] : memref<64x128xf32, #tpu.memory_space<vmem>>, vector<1x16xf32>
    %553 = vector.broadcast %552 : vector<1x16xf32> to vector<16x16xf32>
    %554 = arith.addf %551, %553 : vector<16x16xf32>
    %c2_239 = arith.constant 2 : index
    %c0_240 = arith.constant 0 : index
    %c0_241 = arith.constant 0 : index
    %555 = vector.load %arg16[%c2_239, %c0_240, %c0_241] : memref<4x32x16xbf16, #tpu.memory_space<vmem>>, vector<1x32x16xbf16>
    %556 = vector.shape_cast %555 : vector<1x32x16xbf16> to vector<32x16xbf16>
    %cst_242 = arith.constant dense<0.000000e+00> : vector<16x16xf32>
    %557 = tpu.matmul %548, %556, %cst_242 {dimension_numbers = #tpu.dot_dimension_numbers<[1], [0], [0], [1], [0, 0, 1, 1], [], []>} : vector<16x32xbf16>, vector<32x16xbf16>, vector<16x16xf32> -> vector<16x16xf32>
    %c43 = arith.constant 43 : index
    %c0_243 = arith.constant 0 : index
    %558 = vector.load %arg6[%c43, %c0_243] : memref<64x128xf32, #tpu.memory_space<vmem>>, vector<1x16xf32>
    %559 = vector.broadcast %558 : vector<1x16xf32> to vector<16x16xf32>
    %560 = arith.addf %557, %559 : vector<16x16xf32>
    %c2_244 = arith.constant 2 : index
    %c0_245 = arith.constant 0 : index
    %c0_246 = arith.constant 0 : index
    %561 = vector.load %arg17[%c2_244, %c0_245, %c0_246] : memref<4x32x32xbf16, #tpu.memory_space<vmem>>, vector<1x32x32xbf16>
    %562 = vector.shape_cast %561 : vector<1x32x32xbf16> to vector<32x32xbf16>
    %cst_247 = arith.constant dense<0.000000e+00> : vector<16x32xf32>
    %563 = tpu.matmul %548, %562, %cst_247 {dimension_numbers = #tpu.dot_dimension_numbers<[1], [0], [0], [1], [0, 0, 1, 1], [], []>} : vector<16x32xbf16>, vector<32x32xbf16>, vector<16x32xf32> -> vector<16x32xf32>
    %c44 = arith.constant 44 : index
    %c0_248 = arith.constant 0 : index
    %564 = vector.load %arg6[%c44, %c0_248] : memref<64x128xf32, #tpu.memory_space<vmem>>, vector<1x32xf32>
    %565 = vector.broadcast %564 : vector<1x32xf32> to vector<16x32xf32>
    %566 = arith.addf %563, %565 : vector<16x32xf32>
    %567 = arith.truncf %554 : vector<16x16xf32> to vector<16x16xbf16>
    %568 = arith.truncf %560 : vector<16x16xf32> to vector<16x16xbf16>
    "tpu.trace_start"() <{level = 10 : i32, message = "qd,kd->qk"}> : () -> ()
    %cst_249 = arith.constant dense<0.000000e+00> : vector<16x16xf32>
    %569 = tpu.matmul %567, %568, %cst_249 {dimension_numbers = #tpu.dot_dimension_numbers<[1], [1], [0], [0], [0, 0, 1, 0], [], []>} : vector<16x16xbf16>, vector<16x16xbf16>, vector<16x16xf32> -> vector<16x16xf32>
    "tpu.trace_stop"() : () -> ()
    %570 = arith.addf %569, %365 : vector<16x16xf32>
    %cst_250 = arith.constant dense<0xFF800000> : vector<16xf32>
    %571 = vector.multi_reduction <maximumf>, %570, %cst_250 [1] : vector<16x16xf32> to vector<16xf32>
    %572 = vector.shape_cast %571 : vector<16xf32> to vector<16x1xf32>
    %573 = vector.broadcast %572 : vector<16x1xf32> to vector<16x16xf32>
    %574 = arith.subf %570, %573 : vector<16x16xf32>
    %575 = math.exp %574 : vector<16x16xf32>
    %cst_251 = arith.constant dense<0.000000e+00> : vector<16xf32>
    %576 = vector.multi_reduction <add>, %575, %cst_251 [1] : vector<16x16xf32> to vector<16xf32>
    %577 = vector.shape_cast %576 : vector<16xf32> to vector<16x1xf32>
    %578 = tpu.reciprocal %577 {approx = true} : vector<16x1xf32> -> vector<16x1xf32>
    %579 = vector.broadcast %578 : vector<16x1xf32> to vector<16x16xf32>
    %580 = arith.mulf %575, %579 : vector<16x16xf32>
    %581 = arith.truncf %566 : vector<16x32xf32> to vector<16x32xbf16>
    %582 = arith.truncf %580 : vector<16x16xf32> to vector<16x16xbf16>
    %cst_252 = arith.constant dense<0.000000e+00> : vector<16x32xf32>
    %583 = tpu.matmul %582, %581, %cst_252 {dimension_numbers = #tpu.dot_dimension_numbers<[1], [0], [0], [1], [0, 0, 1, 1], [], []>} : vector<16x16xbf16>, vector<16x32xbf16>, vector<16x32xf32> -> vector<16x32xf32>
    %c3_253 = arith.constant 3 : index
    %c0_254 = arith.constant 0 : index
    %c0_255 = arith.constant 0 : index
    %584 = vector.load %arg15[%c3_253, %c0_254, %c0_255] : memref<4x32x16xbf16, #tpu.memory_space<vmem>>, vector<1x32x16xbf16>
    %585 = vector.shape_cast %584 : vector<1x32x16xbf16> to vector<32x16xbf16>
    %cst_256 = arith.constant dense<0.000000e+00> : vector<16x16xf32>
    %586 = tpu.matmul %548, %585, %cst_256 {dimension_numbers = #tpu.dot_dimension_numbers<[1], [0], [0], [1], [0, 0, 1, 1], [], []>} : vector<16x32xbf16>, vector<32x16xbf16>, vector<16x16xf32> -> vector<16x16xf32>
    %c45 = arith.constant 45 : index
    %c0_257 = arith.constant 0 : index
    %587 = vector.load %arg6[%c45, %c0_257] : memref<64x128xf32, #tpu.memory_space<vmem>>, vector<1x16xf32>
    %588 = vector.broadcast %587 : vector<1x16xf32> to vector<16x16xf32>
    %589 = arith.addf %586, %588 : vector<16x16xf32>
    %c3_258 = arith.constant 3 : index
    %c0_259 = arith.constant 0 : index
    %c0_260 = arith.constant 0 : index
    %590 = vector.load %arg16[%c3_258, %c0_259, %c0_260] : memref<4x32x16xbf16, #tpu.memory_space<vmem>>, vector<1x32x16xbf16>
    %591 = vector.shape_cast %590 : vector<1x32x16xbf16> to vector<32x16xbf16>
    %cst_261 = arith.constant dense<0.000000e+00> : vector<16x16xf32>
    %592 = tpu.matmul %548, %591, %cst_261 {dimension_numbers = #tpu.dot_dimension_numbers<[1], [0], [0], [1], [0, 0, 1, 1], [], []>} : vector<16x32xbf16>, vector<32x16xbf16>, vector<16x16xf32> -> vector<16x16xf32>
    %c46 = arith.constant 46 : index
    %c0_262 = arith.constant 0 : index
    %593 = vector.load %arg6[%c46, %c0_262] : memref<64x128xf32, #tpu.memory_space<vmem>>, vector<1x16xf32>
    %594 = vector.broadcast %593 : vector<1x16xf32> to vector<16x16xf32>
    %595 = arith.addf %592, %594 : vector<16x16xf32>
    %c3_263 = arith.constant 3 : index
    %c0_264 = arith.constant 0 : index
    %c0_265 = arith.constant 0 : index
    %596 = vector.load %arg17[%c3_263, %c0_264, %c0_265] : memref<4x32x32xbf16, #tpu.memory_space<vmem>>, vector<1x32x32xbf16>
    %597 = vector.shape_cast %596 : vector<1x32x32xbf16> to vector<32x32xbf16>
    %cst_266 = arith.constant dense<0.000000e+00> : vector<16x32xf32>
    %598 = tpu.matmul %548, %597, %cst_266 {dimension_numbers = #tpu.dot_dimension_numbers<[1], [0], [0], [1], [0, 0, 1, 1], [], []>} : vector<16x32xbf16>, vector<32x32xbf16>, vector<16x32xf32> -> vector<16x32xf32>
    %c47 = arith.constant 47 : index
    %c0_267 = arith.constant 0 : index
    %599 = vector.load %arg6[%c47, %c0_267] : memref<64x128xf32, #tpu.memory_space<vmem>>, vector<1x32xf32>
    %600 = vector.broadcast %599 : vector<1x32xf32> to vector<16x32xf32>
    %601 = arith.addf %598, %600 : vector<16x32xf32>
    %602 = arith.truncf %589 : vector<16x16xf32> to vector<16x16xbf16>
    %603 = arith.truncf %595 : vector<16x16xf32> to vector<16x16xbf16>
    "tpu.trace_start"() <{level = 10 : i32, message = "qd,kd->qk"}> : () -> ()
    %cst_268 = arith.constant dense<0.000000e+00> : vector<16x16xf32>
    %604 = tpu.matmul %602, %603, %cst_268 {dimension_numbers = #tpu.dot_dimension_numbers<[1], [1], [0], [0], [0, 0, 1, 0], [], []>} : vector<16x16xbf16>, vector<16x16xbf16>, vector<16x16xf32> -> vector<16x16xf32>
    "tpu.trace_stop"() : () -> ()
    %605 = arith.addf %604, %365 : vector<16x16xf32>
    %cst_269 = arith.constant dense<0xFF800000> : vector<16xf32>
    %606 = vector.multi_reduction <maximumf>, %605, %cst_269 [1] : vector<16x16xf32> to vector<16xf32>
    %607 = vector.shape_cast %606 : vector<16xf32> to vector<16x1xf32>
    %608 = vector.broadcast %607 : vector<16x1xf32> to vector<16x16xf32>
    %609 = arith.subf %605, %608 : vector<16x16xf32>
    %610 = math.exp %609 : vector<16x16xf32>
    %cst_270 = arith.constant dense<0.000000e+00> : vector<16xf32>
    %611 = vector.multi_reduction <add>, %610, %cst_270 [1] : vector<16x16xf32> to vector<16xf32>
    %612 = vector.shape_cast %611 : vector<16xf32> to vector<16x1xf32>
    %613 = tpu.reciprocal %612 {approx = true} : vector<16x1xf32> -> vector<16x1xf32>
    %614 = vector.broadcast %613 : vector<16x1xf32> to vector<16x16xf32>
    %615 = arith.mulf %610, %614 : vector<16x16xf32>
    %616 = arith.truncf %601 : vector<16x32xf32> to vector<16x32xbf16>
    %617 = arith.truncf %615 : vector<16x16xf32> to vector<16x16xbf16>
    %cst_271 = arith.constant dense<0.000000e+00> : vector<16x32xf32>
    %618 = tpu.matmul %617, %616, %cst_271 {dimension_numbers = #tpu.dot_dimension_numbers<[1], [0], [0], [1], [0, 0, 1, 1], [], []>} : vector<16x16xbf16>, vector<16x32xbf16>, vector<16x32xf32> -> vector<16x32xf32>
    %619 = arith.addf %583, %618 : vector<16x32xf32>
    %c48 = arith.constant 48 : index
    %c0_272 = arith.constant 0 : index
    %620 = vector.load %arg6[%c48, %c0_272] : memref<64x128xf32, #tpu.memory_space<vmem>>, vector<1x32xf32>
    %621 = vector.broadcast %620 : vector<1x32xf32> to vector<16x32xf32>
    %622 = arith.addf %619, %621 : vector<16x32xf32>
    %623 = arith.addf %521, %622 : vector<16x32xf32>
    %c53 = arith.constant 53 : index
    %c0_273 = arith.constant 0 : index
    %624 = vector.load %arg6[%c53, %c0_273] : memref<64x128xf32, #tpu.memory_space<vmem>>, vector<1x32xf32>
    %c54 = arith.constant 54 : index
    %c0_274 = arith.constant 0 : index
    %625 = vector.load %arg6[%c54, %c0_274] : memref<64x128xf32, #tpu.memory_space<vmem>>, vector<1x32xf32>
    %cst_275 = arith.constant dense<0.000000e+00> : vector<16xf32>
    %626 = vector.multi_reduction <add>, %623, %cst_275 [1] : vector<16x32xf32> to vector<16xf32>
    %627 = vector.shape_cast %626 : vector<16xf32> to vector<16x1xf32>
    %cst_276 = arith.constant 3.200000e+01 : f32
    %628 = vector.broadcast %cst_276 : f32 to vector<16x1xf32>
    %629 = arith.divf %627, %628 : vector<16x1xf32>
    %630 = vector.broadcast %629 : vector<16x1xf32> to vector<16x32xf32>
    %631 = arith.subf %623, %630 : vector<16x32xf32>
    %632 = vector.broadcast %629 : vector<16x1xf32> to vector<16x32xf32>
    %633 = arith.subf %623, %632 : vector<16x32xf32>
    %634 = arith.mulf %631, %633 : vector<16x32xf32>
    %cst_277 = arith.constant dense<0.000000e+00> : vector<16xf32>
    %635 = vector.multi_reduction <add>, %634, %cst_277 [1] : vector<16x32xf32> to vector<16xf32>
    %636 = vector.shape_cast %635 : vector<16xf32> to vector<16x1xf32>
    %cst_278 = arith.constant 3.200000e+01 : f32
    %637 = vector.broadcast %cst_278 : f32 to vector<16x1xf32>
    %638 = arith.divf %636, %637 : vector<16x1xf32>
    %639 = vector.broadcast %629 : vector<16x1xf32> to vector<16x32xf32>
    %640 = arith.subf %623, %639 : vector<16x32xf32>
    %cst_279 = arith.constant 9.99999997E-7 : f32
    %641 = vector.broadcast %cst_279 : f32 to vector<16x1xf32>
    %642 = arith.addf %638, %641 : vector<16x1xf32>
    %643 = math.rsqrt %642 : vector<16x1xf32>
    %644 = vector.broadcast %643 : vector<16x1xf32> to vector<16x32xf32>
    %645 = arith.mulf %640, %644 : vector<16x32xf32>
    %646 = vector.broadcast %624 : vector<1x32xf32> to vector<16x32xf32>
    %647 = arith.mulf %645, %646 : vector<16x32xf32>
    %648 = vector.broadcast %625 : vector<1x32xf32> to vector<16x32xf32>
    %649 = arith.addf %647, %648 : vector<16x32xf32>
    %c1_280 = arith.constant 1 : index
    %c0_281 = arith.constant 0 : index
    %c0_282 = arith.constant 0 : index
    %650 = vector.load %arg18[%c1_280, %c0_281, %c0_282] : memref<2x32x64xbf16, #tpu.memory_space<vmem>>, vector<1x32x64xbf16>
    %651 = vector.shape_cast %650 : vector<1x32x64xbf16> to vector<32x64xbf16>
    %652 = arith.truncf %649 : vector<16x32xf32> to vector<16x32xbf16>
    %cst_283 = arith.constant dense<0.000000e+00> : vector<16x64xf32>
    %653 = tpu.matmul %652, %651, %cst_283 {dimension_numbers = #tpu.dot_dimension_numbers<[1], [0], [0], [1], [0, 0, 1, 1], [], []>} : vector<16x32xbf16>, vector<32x64xbf16>, vector<16x64xf32> -> vector<16x64xf32>
    %c51 = arith.constant 51 : index
    %c0_284 = arith.constant 0 : index
    %654 = vector.load %arg6[%c51, %c0_284] : memref<64x128xf32, #tpu.memory_space<vmem>>, vector<1x64xf32>
    %655 = vector.broadcast %654 : vector<1x64xf32> to vector<16x64xf32>
    %656 = arith.addf %653, %655 : vector<16x64xf32>
    %cst_285 = arith.constant 5.000000e-01 : f32
    %657 = vector.broadcast %cst_285 : f32 to vector<16x64xf32>
    %658 = arith.mulf %657, %656 : vector<16x64xf32>
    %659 = arith.mulf %656, %656 : vector<16x64xf32>
    %cst_286 = arith.constant 4.471500e-02 : f32
    %660 = vector.broadcast %cst_286 : f32 to vector<16x64xf32>
    %661 = arith.mulf %660, %659 : vector<16x64xf32>
    %662 = arith.mulf %661, %656 : vector<16x64xf32>
    %663 = arith.addf %656, %662 : vector<16x64xf32>
    %cst_287 = arith.constant 0.797884583 : f32
    %664 = vector.broadcast %cst_287 : f32 to vector<16x64xf32>
    %665 = arith.mulf %664, %663 : vector<16x64xf32>
    %666 = math.tanh %665 : vector<16x64xf32>
    %cst_288 = arith.constant 1.000000e+00 : f32
    %667 = vector.broadcast %cst_288 : f32 to vector<16x64xf32>
    %668 = arith.addf %667, %666 : vector<16x64xf32>
    %669 = arith.mulf %658, %668 : vector<16x64xf32>
    %c1_289 = arith.constant 1 : index
    %c0_290 = arith.constant 0 : index
    %c0_291 = arith.constant 0 : index
    %670 = vector.load %arg19[%c1_289, %c0_290, %c0_291] : memref<2x64x32xbf16, #tpu.memory_space<vmem>>, vector<1x64x32xbf16>
    %671 = vector.shape_cast %670 : vector<1x64x32xbf16> to vector<64x32xbf16>
    %672 = arith.truncf %669 : vector<16x64xf32> to vector<16x64xbf16>
    %cst_292 = arith.constant dense<0.000000e+00> : vector<16x32xf32>
    %673 = tpu.matmul %672, %671, %cst_292 {dimension_numbers = #tpu.dot_dimension_numbers<[1], [0], [0], [1], [0, 0, 1, 1], [], []>} : vector<16x64xbf16>, vector<64x32xbf16>, vector<16x32xf32> -> vector<16x32xf32>
    %c52 = arith.constant 52 : index
    %c0_293 = arith.constant 0 : index
    %674 = vector.load %arg6[%c52, %c0_293] : memref<64x128xf32, #tpu.memory_space<vmem>>, vector<1x32xf32>
    %675 = vector.broadcast %674 : vector<1x32xf32> to vector<16x32xf32>
    %676 = arith.addf %673, %675 : vector<16x32xf32>
    %677 = arith.addf %623, %676 : vector<16x32xf32>
    %c55 = arith.constant 55 : index
    %c0_294 = arith.constant 0 : index
    %678 = vector.load %arg6[%c55, %c0_294] : memref<64x128xf32, #tpu.memory_space<vmem>>, vector<1x32xf32>
    %c56 = arith.constant 56 : index
    %c0_295 = arith.constant 0 : index
    %679 = vector.load %arg6[%c56, %c0_295] : memref<64x128xf32, #tpu.memory_space<vmem>>, vector<1x32xf32>
    %cst_296 = arith.constant dense<0.000000e+00> : vector<16xf32>
    %680 = vector.multi_reduction <add>, %677, %cst_296 [1] : vector<16x32xf32> to vector<16xf32>
    %681 = vector.shape_cast %680 : vector<16xf32> to vector<16x1xf32>
    %cst_297 = arith.constant 3.200000e+01 : f32
    %682 = vector.broadcast %cst_297 : f32 to vector<16x1xf32>
    %683 = arith.divf %681, %682 : vector<16x1xf32>
    %684 = vector.broadcast %683 : vector<16x1xf32> to vector<16x32xf32>
    %685 = arith.subf %677, %684 : vector<16x32xf32>
    %686 = vector.broadcast %683 : vector<16x1xf32> to vector<16x32xf32>
    %687 = arith.subf %677, %686 : vector<16x32xf32>
    %688 = arith.mulf %685, %687 : vector<16x32xf32>
    %cst_298 = arith.constant dense<0.000000e+00> : vector<16xf32>
    %689 = vector.multi_reduction <add>, %688, %cst_298 [1] : vector<16x32xf32> to vector<16xf32>
    %690 = vector.shape_cast %689 : vector<16xf32> to vector<16x1xf32>
    %cst_299 = arith.constant 3.200000e+01 : f32
    %691 = vector.broadcast %cst_299 : f32 to vector<16x1xf32>
    %692 = arith.divf %690, %691 : vector<16x1xf32>
    %693 = vector.broadcast %683 : vector<16x1xf32> to vector<16x32xf32>
    %694 = arith.subf %677, %693 : vector<16x32xf32>
    %cst_300 = arith.constant 9.99999997E-7 : f32
    %695 = vector.broadcast %cst_300 : f32 to vector<16x1xf32>
    %696 = arith.addf %692, %695 : vector<16x1xf32>
    %697 = math.rsqrt %696 : vector<16x1xf32>
    %698 = vector.broadcast %697 : vector<16x1xf32> to vector<16x32xf32>
    %699 = arith.mulf %694, %698 : vector<16x32xf32>
    %700 = vector.broadcast %678 : vector<1x32xf32> to vector<16x32xf32>
    %701 = arith.mulf %699, %700 : vector<16x32xf32>
    %702 = vector.broadcast %679 : vector<1x32xf32> to vector<16x32xf32>
    %703 = arith.addf %701, %702 : vector<16x32xf32>
    %704 = tpu.iota {dimensions = array<i32: 0>} : vector<2x16xi32>
    %705 = tpu.iota {dimensions = array<i32: 1>} : vector<2x16xi32>
    %c8_i32_301 = arith.constant 8 : i32
    %706 = vector.broadcast %c8_i32_301 : i32 to vector<2x16xi32>
    %707 = arith.muli %704, %706 : vector<2x16xi32>
    %708 = arith.cmpi eq, %705, %707 : vector<2x16xi32>
    %709 = arith.extui %708 : vector<2x16xi1> to vector<2x16xi32>
    %710 = arith.sitofp %709 : vector<2x16xi32> to vector<2x16xf32>
    %711 = arith.truncf %710 : vector<2x16xf32> to vector<2x16xbf16>
    %712 = arith.truncf %703 : vector<16x32xf32> to vector<16x32xbf16>
    %cst_302 = arith.constant dense<0.000000e+00> : vector<2x32xf32>
    %713 = tpu.matmul %711, %712, %cst_302 {dimension_numbers = #tpu.dot_dimension_numbers<[1], [0], [0], [1], [0, 0, 1, 1], [], []>} : vector<2x16xbf16>, vector<16x32xbf16>, vector<2x32xf32> -> vector<2x32xf32>
    %c0_303 = arith.constant 0 : index
    %c0_304 = arith.constant 0 : index
    %714 = vector.load %arg20[%c0_303, %c0_304] : memref<32x32xbf16, #tpu.memory_space<vmem>>, vector<32x32xbf16>
    %715 = arith.truncf %713 : vector<2x32xf32> to vector<2x32xbf16>
    %cst_305 = arith.constant dense<0.000000e+00> : vector<2x32xf32>
    %716 = tpu.matmul %715, %714, %cst_305 {dimension_numbers = #tpu.dot_dimension_numbers<[1], [0], [0], [1], [0, 0, 1, 1], [], []>} : vector<2x32xbf16>, vector<32x32xbf16>, vector<2x32xf32> -> vector<2x32xf32>
    %c57 = arith.constant 57 : index
    %c0_306 = arith.constant 0 : index
    %717 = vector.load %arg6[%c57, %c0_306] : memref<64x128xf32, #tpu.memory_space<vmem>>, vector<1x32xf32>
    %718 = vector.broadcast %717 : vector<1x32xf32> to vector<2x32xf32>
    %719 = arith.addf %716, %718 : vector<2x32xf32>
    %c0_307 = arith.constant 0 : index
    %c0_308 = arith.constant 0 : index
    %720 = vector.load %arg21[%c0_307, %c0_308] : memref<32x512xbf16, #tpu.memory_space<vmem>>, vector<32x512xbf16>
    %721 = arith.truncf %358 : vector<2x32xf32> to vector<2x32xbf16>
    %cst_309 = arith.constant dense<0.000000e+00> : vector<2x512xf32>
    %722 = tpu.matmul %721, %720, %cst_309 {dimension_numbers = #tpu.dot_dimension_numbers<[1], [0], [0], [1], [0, 0, 1, 1], [], []>} : vector<2x32xbf16>, vector<32x512xbf16>, vector<2x512xf32> -> vector<2x512xf32>
    %c0_310 = arith.constant 0 : index
    %c0_311 = arith.constant 0 : index
    %723 = vector.load %arg22[%c0_310, %c0_311] : memref<32x512xbf16, #tpu.memory_space<vmem>>, vector<32x512xbf16>
    %724 = arith.truncf %719 : vector<2x32xf32> to vector<2x32xbf16>
    %cst_312 = arith.constant dense<0.000000e+00> : vector<2x512xf32>
    %725 = tpu.matmul %724, %723, %cst_312 {dimension_numbers = #tpu.dot_dimension_numbers<[1], [0], [0], [1], [0, 0, 1, 1], [], []>} : vector<2x32xbf16>, vector<32x512xbf16>, vector<2x512xf32> -> vector<2x512xf32>
    %726 = arith.addf %722, %725 : vector<2x512xf32>
    %c0_313 = arith.constant 0 : index
    %c0_314 = arith.constant 0 : index
    %727 = vector.load %arg7[%c0_313, %c0_314] : memref<1x512xf32, #tpu.memory_space<vmem>>, vector<1x512xf32>
    %728 = vector.broadcast %727 : vector<1x512xf32> to vector<2x512xf32>
    %729 = arith.addf %726, %728 : vector<2x512xf32>
    %cst_315 = arith.constant 0.000000e+00 : f32
    %730 = vector.broadcast %cst_315 : f32 to vector<2x512xf32>
    %731 = arith.maximumf %729, %730 : vector<2x512xf32>
    %c0_316 = arith.constant 0 : index
    %c0_317 = arith.constant 0 : index
    %732 = vector.load %arg23[%c0_316, %c0_317] : memref<512x128xbf16, #tpu.memory_space<vmem>>, vector<512x128xbf16>
    %733 = arith.truncf %731 : vector<2x512xf32> to vector<2x512xbf16>
    %cst_318 = arith.constant dense<0.000000e+00> : vector<2x128xf32>
    %734 = tpu.matmul %733, %732, %cst_318 {dimension_numbers = #tpu.dot_dimension_numbers<[1], [0], [0], [1], [0, 0, 1, 1], [], []>} : vector<2x512xbf16>, vector<512x128xbf16>, vector<2x128xf32> -> vector<2x128xf32>
    %c58 = arith.constant 58 : index
    %c0_319 = arith.constant 0 : index
    %735 = vector.load %arg6[%c58, %c0_319] : memref<64x128xf32, #tpu.memory_space<vmem>>, vector<1x128xf32>
    %736 = vector.broadcast %735 : vector<1x128xf32> to vector<2x128xf32>
    %737 = arith.addf %734, %736 : vector<2x128xf32>
    %c0_320 = arith.constant 0 : index
    %c0_321 = arith.constant 0 : index
    %c0_322 = arith.constant 0 : index
    %738 = vector.load %arg24[%c0_320, %c0_321, %c0_322] : memref<1x2x128xf32, #tpu.memory_space<vmem>>, vector<1x2x128xf32>
    %739 = vector.shape_cast %738 : vector<1x2x128xf32> to vector<2x128xf32>
    %740 = vector.shape_cast %737 : vector<2x128xf32> to vector<1x2x128xf32>
    tpu.vector_store %arg24[%c0_320, %c0_321, %c0_322], %740 {strides = array<i32>} : memref<1x2x128xf32, #tpu.memory_space<vmem>>, vector<1x2x128xf32>,
    return
  }
  func.func @transform_0(%arg0: i32) -> (i32, i32) {
    %c0_i32 = arith.constant 0 : i32
    %c0_i32_0 = arith.constant 0 : i32
    return %arg0, %c0_i32 : i32, i32
  }
  func.func @transform_1(%arg0: i32) -> (i32, i32, i32) {
    %c0_i32 = arith.constant 0 : i32
    %c0_i32_0 = arith.constant 0 : i32
    %c0_i32_1 = arith.constant 0 : i32
    return %arg0, %c0_i32, %c0_i32_0 : i32, i32, i32
  }
  func.func @transform_2(%arg0: i32) -> (i32, i32) {
    %c0_i32 = arith.constant 0 : i32
    %c0_i32_0 = arith.constant 0 : i32
    return %arg0, %c0_i32 : i32, i32
  }
  func.func @transform_3(%arg0: i32) -> (i32, i32, i32) {
    %c0_i32 = arith.constant 0 : i32
    %c0_i32_0 = arith.constant 0 : i32
    %c0_i32_1 = arith.constant 0 : i32
    return %arg0, %c0_i32, %c0_i32_0 : i32, i32, i32
  }
  func.func @transform_4(%arg0: i32) -> (i32, i32) {
    %c0_i32 = arith.constant 0 : i32
    %c0_i32_0 = arith.constant 0 : i32
    %c0_i32_1 = arith.constant 0 : i32
    return %c0_i32, %c0_i32_0 : i32, i32
  }
  func.func @transform_5(%arg0: i32) -> (i32, i32) {
    %c0_i32 = arith.constant 0 : i32
    %c0_i32_0 = arith.constant 0 : i32
    %c0_i32_1 = arith.constant 0 : i32
    return %c0_i32, %c0_i32_0 : i32, i32
  }
  func.func @transform_6(%arg0: i32) -> (i32, i32) {
    %c0_i32 = arith.constant 0 : i32
    %c0_i32_0 = arith.constant 0 : i32
    %c0_i32_1 = arith.constant 0 : i32
    return %c0_i32, %c0_i32_0 : i32, i32
  }
  func.func @transform_7(%arg0: i32) -> (i32, i32, i32) {
    %c0_i32 = arith.constant 0 : i32
    %c0_i32_0 = arith.constant 0 : i32
    %c0_i32_1 = arith.constant 0 : i32
    %c0_i32_2 = arith.constant 0 : i32
    return %c0_i32, %c0_i32_0, %c0_i32_1 : i32, i32, i32
  }
  func.func @transform_8(%arg0: i32) -> (i32, i32, i32) {
    %c0_i32 = arith.constant 0 : i32
    %c0_i32_0 = arith.constant 0 : i32
    %c0_i32_1 = arith.constant 0 : i32
    %c0_i32_2 = arith.constant 0 : i32
    return %c0_i32, %c0_i32_0, %c0_i32_1 : i32, i32, i32
  }
  func.func @transform_9(%arg0: i32) -> (i32, i32, i32) {
    %c0_i32 = arith.constant 0 : i32
    %c0_i32_0 = arith.constant 0 : i32
    %c0_i32_1 = arith.constant 0 : i32
    %c0_i32_2 = arith.constant 0 : i32
    return %c0_i32, %c0_i32_0, %c0_i32_1 : i32, i32, i32
  }
  func.func @transform_10(%arg0: i32) -> (i32, i32, i32) {
    %c0_i32 = arith.constant 0 : i32
    %c0_i32_0 = arith.constant 0 : i32
    %c0_i32_1 = arith.constant 0 : i32
    %c0_i32_2 = arith.constant 0 : i32
    return %c0_i32, %c0_i32_0, %c0_i32_1 : i32, i32, i32
  }
  func.func @transform_11(%arg0: i32) -> (i32, i32, i32) {
    %c0_i32 = arith.constant 0 : i32
    %c0_i32_0 = arith.constant 0 : i32
    %c0_i32_1 = arith.constant 0 : i32
    %c0_i32_2 = arith.constant 0 : i32
    return %c0_i32, %c0_i32_0, %c0_i32_1 : i32, i32, i32
  }
  func.func @transform_12(%arg0: i32) -> (i32, i32) {
    %c0_i32 = arith.constant 0 : i32
    %c0_i32_0 = arith.constant 0 : i32
    %c0_i32_1 = arith.constant 0 : i32
    return %c0_i32, %c0_i32_0 : i32, i32
  }
  func.func @transform_13(%arg0: i32) -> (i32, i32) {
    %c0_i32 = arith.constant 0 : i32
    %c0_i32_0 = arith.constant 0 : i32
    %c0_i32_1 = arith.constant 0 : i32
    return %c0_i32, %c0_i32_0 : i32, i32
  }
  func.func @transform_14(%arg0: i32) -> (i32, i32, i32) {
    %c0_i32 = arith.constant 0 : i32
    %c0_i32_0 = arith.constant 0 : i32
    %c0_i32_1 = arith.constant 0 : i32
    %c0_i32_2 = arith.constant 0 : i32
    return %c0_i32, %c0_i32_0, %c0_i32_1 : i32, i32, i32
  }
  func.func @transform_15(%arg0: i32) -> (i32, i32, i32) {
    %c0_i32 = arith.constant 0 : i32
    %c0_i32_0 = arith.constant 0 : i32
    %c0_i32_1 = arith.constant 0 : i32
    %c0_i32_2 = arith.constant 0 : i32
    return %c0_i32, %c0_i32_0, %c0_i32_1 : i32, i32, i32
  }
  func.func @transform_16(%arg0: i32) -> (i32, i32, i32) {
    %c0_i32 = arith.constant 0 : i32
    %c0_i32_0 = arith.constant 0 : i32
    %c0_i32_1 = arith.constant 0 : i32
    %c0_i32_2 = arith.constant 0 : i32
    return %c0_i32, %c0_i32_0, %c0_i32_1 : i32, i32, i32
  }
  func.func @transform_17(%arg0: i32) -> (i32, i32, i32) {
    %c0_i32 = arith.constant 0 : i32
    %c0_i32_0 = arith.constant 0 : i32
    %c0_i32_1 = arith.constant 0 : i32
    %c0_i32_2 = arith.constant 0 : i32
    return %c0_i32, %c0_i32_0, %c0_i32_1 : i32, i32, i32
  }
  func.func @transform_18(%arg0: i32) -> (i32, i32, i32) {
    %c0_i32 = arith.constant 0 : i32
    %c0_i32_0 = arith.constant 0 : i32
    %c0_i32_1 = arith.constant 0 : i32
    %c0_i32_2 = arith.constant 0 : i32
    return %c0_i32, %c0_i32_0, %c0_i32_1 : i32, i32, i32
  }
  func.func @transform_19(%arg0: i32) -> (i32, i32) {
    %c0_i32 = arith.constant 0 : i32
    %c0_i32_0 = arith.constant 0 : i32
    %c0_i32_1 = arith.constant 0 : i32
    return %c0_i32, %c0_i32_0 : i32, i32
  }
  func.func @transform_20(%arg0: i32) -> (i32, i32) {
    %c0_i32 = arith.constant 0 : i32
    %c0_i32_0 = arith.constant 0 : i32
    %c0_i32_1 = arith.constant 0 : i32
    return %c0_i32, %c0_i32_0 : i32, i32
  }
  func.func @transform_21(%arg0: i32) -> (i32, i32) {
    %c0_i32 = arith.constant 0 : i32
    %c0_i32_0 = arith.constant 0 : i32
    %c0_i32_1 = arith.constant 0 : i32
    return %c0_i32, %c0_i32_0 : i32, i32
  }
  func.func @transform_22(%arg0: i32) -> (i32, i32) {
    %c0_i32 = arith.constant 0 : i32
    %c0_i32_0 = arith.constant 0 : i32
    %c0_i32_1 = arith.constant 0 : i32
    return %c0_i32, %c0_i32_0 : i32, i32
  }
  func.func @transform_23(%arg0: i32) -> (i32, i32, i32) {
    %c0_i32 = arith.constant 0 : i32
    %c0_i32_0 = arith.constant 0 : i32
    %c0_i32_1 = arith.constant 0 : i32
    return %arg0, %c0_i32, %c0_i32_0 : i32, i32, i32
  }
}

</mosaic_0001>

<bundles_post_ra>
// kernel: forward.1
= control target key start
LH: loop header
LB: loop body
LE: loop exit
PB: predicated region body
PF: predicated region fallthrough
CT: control target
= control target key end

     0   :  { %s7181_s0 = inlined_call_operand.vmem [shape: bf16[16,32], index: 0, kind: input, shape index: {}]   ;;  %s7182_s1 = inlined_call_operand.vmem [shape: f32[1,16,16], index: 1, kind: input, shape index: {}]   ;;  %s7183_s2 = inlined_call_operand.vmem [shape: bf16[16,192], index: 2, kind: input, shape index: {}]   ;;  %s7184_s3 = inlined_call_operand.vmem [shape: f32[1,16,16], index: 3, kind: input, shape index: {}]   ;;  %s7185_s4 = inlined_call_operand.vmem [shape: f32[16,32], index: 4, kind: input, shape index: {}]   ;;  %s7186_s5 = inlined_call_operand.vmem [shape: f32[64,128], index: 5, kind: input, shape index: {}]   ;;  %s7187_s6 = inlined_call_operand.vmem [shape: f32[1,512], index: 6, kind: input, shape index: {}]   ;;  %s7188_s7 = inlined_call_operand.vmem [shape: bf16[4,32,16], index: 7, kind: input, shape index: {}]   ;;  %s7189_s8 = inlined_call_operand.vmem [shape: bf16[4,32,16], index: 8, kind: input, shape index: {}]   ;;  %s7190_s9 = inlined_call_operand.vmem [shape: bf16[4,32,32], index: 9, kind: input, shape index: {}]   ;;  %s7191_s10 = inlined_call_operand.vmem [shape: bf16[2,32,64], index: 10, kind: input, shape index: {}]   ;;  %s7192_s11 = inlined_call_operand.vmem [shape: bf16[2,64,32], index: 11, kind: input, shape index: {}]   ;;  %s7193_s12 = inlined_call_operand.vmem [shape: bf16[32,32], index: 12, kind: input, shape index: {}]   ;;  %s7194_s13 = inlined_call_operand.vmem [shape: bf16[192,32], index: 13, kind: input, shape index: {}]   ;;  %s7195_s14 = inlined_call_operand.vmem [shape: bf16[4,32,16], index: 14, kind: input, shape index: {}]   ;;  %s7196_s15 = inlined_call_operand.vmem [shape: bf16[4,32,16], index: 15, kind: input, shape index: {}]   ;;  %s7197_s16 = inlined_call_operand.vmem [shape: bf16[4,32,32], index: 16, kind: input, shape index: {}]   ;;  %s7198_s17 = inlined_call_operand.vmem [shape: bf16[2,32,64], index: 17, kind: input, shape index: {}]   ;;  %s7199_s18 = inlined_call_operand.vmem [shape: bf16[2,64,32], index: 18, kind: input, shape index: {}]   ;;  %s7200_s19 = inlined_call_operand.vmem [shape: bf16[32,32], index: 19, kind: input, shape index: {}]   ;;  %s7201_s20 = inlined_call_operand.vmem [shape: bf16[32,512], index: 20, kind: input, shape index: {}]   ;;  %s7202_s21 = inlined_call_operand.vmem [shape: bf16[32,512], index: 21, kind: input, shape index: {}]   ;;  %s7203_s22 = inlined_call_operand.vmem [shape: bf16[512,128], index: 22, kind: input, shape index: {}]   ;;  %s7204_s23 = inlined_call_operand.hbm [shape: f32[1,2,128], index: 23, kind: output, shape index: {}]  }
   0x1   :  { %7211 = sst [smem:[#allocation5_spill]] %s7181_s0 }
   0x2   :  { %7212 = sst [smem:[#allocation6_spill]] %s7182_s1 }
   0x3   :  { %7213 = sst [smem:[#allocation7_spill]] %s7183_s2 }
   0x4   :  { %7214 = sst [smem:[#allocation8_spill]] %s7184_s3 }
   0x5   :  { %7215 = sst [smem:[#allocation9_spill]] %s7185_s4 }
   0x6   :  { %7216 = sst [smem:[#allocation10_spill]] %s7186_s5 }
   0x7   :  { %7217 = sst [smem:[#allocation11_spill]] %s7187_s6 }
   0x8   :  { %7218 = sst [smem:[#allocation12_spill]] %s7188_s7 }
   0x9   :  { %s7219_s24 = sld [smem:[#allocation5_spill]]  ;;  %vm82_vm0 = vcmask 261120  }
   0xf   :  { %v5046_v0 = vld [vmem:[%s7219_s24] sm:$0xff]  }
  0x10   :  { %v5047_v1 = vunpack.c.l.bf16 %v5046_v0  ;;  %v5048_v2 = vunpack.c.h.bf16 %v5046_v0 }
  0x12   :  { %v83_v3 = vsel %vm82_vm0, %v5047_v1, 0.0  ;;  %v86_v4 = vsel %vm82_vm0, %v5048_v2, 0.0 }
  0x13   :  { %84 = vadd.xlane.f32.xlu0 %v83_v3 }
  0x17   :  { %87 = vadd.xlane.f32.xlu0 %v86_v4 }
  0x18   :  { %28 = vsyncpa [#allocation3], 0  ;;  %s7220_s1 = sld [smem:[#allocation12_spill]]  ;;  %v5640_v16 = vld [vmem:[%s7189_s8] sm:$0xff]   ;;  %v5932_v17 = vmov 0.0   ;;  %v5642_v19 = vld [vmem:[%s7189_s8 + $0x8] sm:$0xff]  }
  0x19   :  { %5239 = vmatprep.subr.bf16.mxu0 %v5932_v17  ;;  %5247 = vmatprep.subr.bf16.mxu1 %v5932_v17  ;;  %vm5933_vm1 = vmmov 0   ;;  %s7221_s0 = sld [smem:[#allocation10_spill]]  ;;  %v5643_v36 = vld [vmem:[%s7190_s9] sm:$0xff]   ;;  %v5644_v38 = vld [vmem:[%s7190_s9 + $0x8] sm:$0xff]   ;;  %v5647_v41 = vld [vmem:[%s7190_s9 + $0x10] sm:$0xff]   ;;  %vm316_vm2 = vcmask 130048  }
  0x1a   :  { %5248 = vmatpush3.bf16.msra.mxu1 %v5640_v16  ;;  %5243 = vmatprep.mubr.msk.bf16.mxu0 %vm5933_vm1, %v5932_v17  ;;  %v5648_v42 = vld [vmem:[%s7190_s9 + $0x18] sm:$0xff]   ;;  %v5649_v3 = vld [vmem:[%s7189_s8 + $0x10] sm:$0xff]   ;;  %s7222_s5 = sld [smem:[#allocation6_spill]]  ;;  %vm909_vm3 = vcmask 523264   ;;  %s7223_s6 = sld [smem:[#allocation7_spill]] }
  0x1b   :  { %5249 = vmatprep.subr.bf16.mxu1 %v5932_v17  ;;  %5251 = vmatprep.mubr.msk.bf16.mxu1 %vm5933_vm1, %v5932_v17  ;;  %s7224_s30 = sld [smem:[#allocation9_spill]]  ;;  %s7226_s3 = sld [smem:[#allocation11_spill]] }
  0x1c   :  { %s5935_s4 = smov [#allocation2]  }
  0x1e   :  { %v5639_v15 = vld [vmem:[%s7220_s1] sm:$0xff]   ;;  %v5641_v18 = vld [vmem:[%s7220_s1 + $0x8] sm:$0xff]   ;;  %5250 = vmatpush3.bf16.msra.mxu1 %v5642_v19  ;;  %v5645_v39 = vld [vmem:[%s7220_s1 + $0x10] sm:$0xff]  }
  0x1f   :  { %5240 = vmatpush3.bf16.msra.mxu0 %v5639_v15  ;;  %5263 = vmatprep.subr.bf16.mxu1 %v5932_v17  ;;  %v4694_v28 = vld [vmem:[%s7221_s0] ss:$0 sm:$0xff]  ;;  %v4695_v32 = vld [vmem:[%s7221_s0 + $0x1] ss:$0 sm:$0xff]  ;;  %v5646_v40 = vld [vmem:[%s7220_s1 + $0x18] sm:$0xff]  }
  0x20   :  { %5241 = vmatprep.subr.bf16.mxu0 %v5932_v17  ;;  %v4696_v43 = vld [vmem:[%s7221_s0 + $0x2] ss:$0 sm:$0xff]  ;;  %v4700_v45 = vld [vmem:[%s7221_s0 + $0x3] ss:$0 sm:$0xff]  ;;  %v4704_v60 = vld [vmem:[%s7221_s0 + $0x4] ss:$0 sm:$0xff] }
  0x23   :  { %5242 = vmatpush3.bf16.msra.mxu0 %v5641_v18 }
  0x24   :  { %5255 = vmatprep.subr.bf16.mxu0 %v5932_v17 }
  0xa0   :  { %v85_v5 = vpop.xlane.xlu0 %84 }
  0xa1   :  { %v90_v6 = vmul.f32 0.03125, %v85_v5  ;;  %v4713_v5 = vld [vmem:[%s7221_s0 + $0x5] ss:$0 sm:$0xff] }
  0xa3   :  { %v92_v7 = vsub.f32 %v5047_v1, %v90_v6 }
  0xa4   :  { %v88_v8 = vpop.xlane.xlu0 %87 }
  0xa5   :  { %v91_v9 = vmul.f32 0.03125, %v88_v8  ;;  %v94_v10 = vmul.f32 %v92_v7, %v92_v7 }
  0xa7   :  { %v93_v11 = vsub.f32 %v5048_v2, %v91_v9  ;;  %v96_v12 = vsel %vm82_vm0, %v94_v10, 0.0 }
  0xa8   :  { %97 = vadd.xlane.f32.xlu1 %v96_v12 }
  0xa9   :  { %v95_v13 = vmul.f32 %v93_v11, %v93_v11 }
  0xab   :  { %v99_v14 = vsel %vm82_vm0, %v95_v13, 0.0 }
  0xac   :  { %100 = vadd.xlane.f32.xlu1 %v99_v14  ;;  %v4729_v14 = vld [vmem:[%s7221_s0 + $0x7] ss:$0 sm:$0xff] }
 0x135   :  { %v98_v20 = vpop.xlane.xlu1 %97 }
 0x136   :  { %v102_v21 = vmul.f32 0.03125, %v98_v20 }
 0x138   :  { %v104_v22 = vadd.f32 1e-12, %v102_v21 }
 0x139   :  { %v101_v23 = vpop.xlane.xlu1 %100 }
 0x13a   :  { %5786 = vrsqrt.f32 %v104_v22  ;;  %v103_v24 = vmul.f32 0.03125, %v101_v23  ;;  %v6179_v23 = vld [vmem:[%s7222_s5] sm:$0xff] }
 0x13c   :  { %v105_v25 = vadd.f32 1e-12, %v103_v24 }
 0x13e   :  { %5788 = vrsqrt.f32 %v105_v25  ;;  %v6184_v25 = vld [vmem:[%s7222_s5 + $0x8] sm:$0xff] }
 0x144   :  { %v5787_v26 = vpop.eup %5786 }
 0x145   :  { %v108_v27 = vmul.f32 %v5787_v26, %v92_v7  ;;  %v5650_v7 = vld [vmem:[%s7189_s8 + $0x18] sm:$0xff]  }
 0x147   :  { %v114_v30 = vmul.f32 %v4694_v28, %v108_v27 }
 0x148   :  { %v5789_v29 = vpop.eup %5788 }
 0x149   :  { %v109_v31 = vmul.f32 %v5789_v29, %v93_v11  ;;  %v6091_v34 = vadd.f32 %v4695_v32, %v114_v30 }
 0x14b   :  { %v115_v33 = vmul.f32 %v4694_v28, %v109_v31 }
 0x14d   :  { %v6093_v35 = vadd.f32 %v4695_v32, %v115_v33  ;;  %v4721_v33 = vld [vmem:[%s7221_s0 + $0x6] ss:$0 sm:$0xff] }
 0x14f   :  { %v6100_v37 = vpack.c.bf16 %v6093_v35, %v6091_v34 }
 0x151   :  { %5244 = vmatmul.mubr.msk.bf16.vlgmr.msra.gmra.mrb[0].mxu0 %vm82_vm0, %v6100_v37  ;;  %5252 = vmatmul.mubr.msk.bf16.vlgmr.msra.gmra.mrb[0].mxu1 %vm82_vm0, %v6100_v37 }
 0x152   :  { %5256 = vmatpush3.bf16.msra.mxu0 %v5643_v36  ;;  %5259 = vmatprep.mubr.msk.bf16.mxu0 %vm5933_vm1, %v5932_v17 }
 0x153   :  { %5257 = vmatprep.subr.bf16.mxu0 %v5932_v17  ;;  %5265 = vmatprep.mubr.msk.bf16.mxu1 %vm5933_vm1, %v5932_v17 }
 0x156   :  { %5258 = vmatpush3.bf16.msra.mxu0 %v5644_v38 }
 0x157   :  { %5269 = vmatprep.subr.bf16.mxu0 %v5932_v17 }
 0x159   :  { %5260 = vmatmul.mubr.msk.bf16.vlgmr.msra.gmra.mrb[4].mxu0 %vm82_vm0, %v6100_v37 }
 0x15a   :  { %5270 = vmatpush3.bf16.msra.mxu0 %v5645_v39  ;;  %5273 = vmatprep.mubr.msk.bf16.mxu0 %vm5933_vm1, %v5932_v17 }
 0x15b   :  { %5271 = vmatprep.subr.bf16.mxu0 %v5932_v17 }
 0x15e   :  { %5272 = vmatpush3.bf16.msra.mxu0 %v5646_v40 }
 0x15f   :  { %5285 = vmatprep.subr.bf16.mxu0 %v5932_v17 }
 0x161   :  { %5274 = vmatmul.mubr.msk.bf16.vlgmr.msra.gmra.mrb[8].mxu0 %vm82_vm0, %v6100_v37 }
 0x162   :  { %5286 = vmatpush3.bf16.msra.mxu0 %v5647_v41  ;;  %5289 = vmatprep.mubr.msk.bf16.mxu0 %vm5933_vm1, %v5932_v17 }
 0x163   :  { %5287 = vmatprep.subr.bf16.mxu0 %v5932_v17 }
 0x166   :  { %5288 = vmatpush3.bf16.msra.mxu0 %v5648_v42 }
 0x167   :  { %5299 = vmatprep.subr.bf16.mxu0 %v5932_v17 }
 0x169   :  { %5290 = vmatmul.mubr.msk.bf16.vlgmr.msra.gmra.mrb[12].mxu0 %vm82_vm0, %v6100_v37 }
 0x16a   :  { %5301 = vmatprep.mubr.msk.bf16.mxu0 %vm5933_vm1, %v5932_v17 }
 0x224   :  { %v183_v44 = vpop.f32.mrb[0].mxu0  ;;  %v245_v46 = vpop.f32.mrb[0].mxu1 }
 0x225   :  { %v5245_v47 = vpop.f32.mrb[1].mxu0  ;;  %v5253_v48 = vpop.f32.mrb[1].mxu1  ;;  %v184_v51 = vadd.f32 %v4696_v43, %v183_v44  ;;  %v246_v52 = vadd.f32 %v4700_v45, %v245_v46 }
 0x226   :  { %v186_v49 = vpop.f32.mrb[2].mxu0  ;;  %v248_v50 = vpop.f32.mrb[2].mxu1 }
 0x227   :  { %v187_v53 = vadd.f32 %v4696_v43, %v186_v49  ;;  %v249_v54 = vadd.f32 %v4700_v45, %v248_v50  ;;  %v5246_v55 = vpop.f32.mrb[3].mxu0  ;;  %v5254_v56 = vpop.f32.mrb[3].mxu1 }
 0x229   :  { %v314_v57 = vpack.c.bf16 %v187_v53, %v184_v51  ;;  %v315_v58 = vpack.c.bf16 %v249_v54, %v246_v52 }
 0x22b   :  { %v321_v59 = vsel %vm316_vm2, %v315_v58, 0 }
 0x22c   :  { %v307_v61 = vpop.f32.mrb[4].mxu0  ;;  %5264 = vmatpush3.bf16.xpose.msra.mxu1 %v321_v59 }
 0x22d   :  { %v5261_v62 = vpop.f32.mrb[5].mxu0  ;;  %5277 = vmatprep.subr.bf16.mxu1 %v5932_v17  ;;  %v308_v0 = vadd.f32 %v4704_v60, %v307_v61 }
 0x22e   :  { %v310_v63 = vpop.f32.mrb[6].mxu0 }
 0x22f   :  { %v311_v1 = vadd.f32 %v4704_v60, %v310_v63  ;;  %v5262_v2 = vpop.f32.mrb[7].mxu0 }
 0x231   :  { %v386_v4 = vpack.c.bf16 %v311_v1, %v308_v0 }
 0x233   :  { %5266 = vmatmul.mubr.msk.bf16.vlgmr.msra.gmra.mrb[4].mxu1 %vm316_vm2, %v314_v57 }
 0x234   :  { %v444_v6 = vpop.f32.mrb[8].mxu0  ;;  %5278 = vmatpush3.bf16.msra.mxu1 %v5649_v3  ;;  %5281 = vmatprep.mubr.msk.bf16.mxu1 %vm5933_vm1, %v5932_v17 }
 0x235   :  { %v5275_v8 = vpop.f32.mrb[9].mxu0  ;;  %5279 = vmatprep.subr.bf16.mxu1 %v5932_v17  ;;  %v445_v10 = vadd.f32 %v4713_v5, %v444_v6 }
 0x236   :  { %v447_v9 = vpop.f32.mrb[10].mxu0 }
 0x237   :  { %v448_v11 = vadd.f32 %v4713_v5, %v447_v9  ;;  %v5276_v12 = vpop.f32.mrb[11].mxu0 }
 0x238   :  { %5280 = vmatpush3.bf16.msra.mxu1 %v5650_v7 }
 0x239   :  { %v577_v13 = vpack.c.bf16 %v448_v11, %v445_v10  ;;  %5293 = vmatprep.subr.bf16.mxu1 %v5932_v17 }
 0x23b   :  { %5282 = vmatmul.mubr.msk.bf16.vlgmr.msra.gmra.mrb[8].mxu1 %vm82_vm0, %v6100_v37 }
 0x23c   :  { %v570_v15 = vpop.f32.mrb[12].mxu0  ;;  %5295 = vmatprep.mubr.msk.bf16.mxu1 %vm5933_vm1, %v5932_v17 }
 0x23d   :  { %v5291_v16 = vpop.f32.mrb[13].mxu0  ;;  %v571_v19 = vadd.f32 %v4729_v14, %v570_v15 }
 0x23e   :  { %v573_v18 = vpop.f32.mrb[14].mxu0 }
 0x23f   :  { %v574_v20 = vadd.f32 %v4729_v14, %v573_v18  ;;  %v5292_v21 = vpop.f32.mrb[15].mxu0 }
 0x241   :  { %v648_v22 = vpack.c.bf16 %v574_v20, %v571_v19 }
 0x243   :  { %5300 = vmatpush3.bf16.msra.mxu0 %v648_v22 }
 0x244   :  { %5311 = vmatprep.subr.bf16.mxu0 %v5932_v17 }
 0x306   :  { %v357_v24 = vpop.f32.mrb[4].mxu1 }
 0x307   :  { %v358_v26 = vadd.f32 %v357_v24, %v6179_v23  ;;  %v5267_v27 = vpop.f32.mrb[5].mxu1 }
 0x308   :  { %v360_v28 = vpop.f32.mrb[6].mxu1 }
 0x309   :  { %v361_v29 = vadd.f32 %v360_v28, %v6184_v25  ;;  %v5268_v30 = vpop.f32.mrb[7].mxu1  ;;  %v364_v31 = vsel %vm316_vm2, %v358_v26, -inf }
 0x30a   :  { %365 = vmax.xlane.f32.xlu0 %v364_v31  ;;  %v4736_v30 = vld [vmem:[%s7221_s0 + $0x8] ss:$0 sm:$0xff] }
 0x30b   :  { %v367_v32 = vsel %vm316_vm2, %v361_v29, -inf }
 0x30c   :  { %368 = vmax.xlane.f32.xlu1 %v367_v32 }
 0x30e   :  { %v507_v36 = vpop.f32.mrb[8].mxu1 }
 0x30f   :  { %v5283_v37 = vpop.f32.mrb[9].mxu1  ;;  %v508_v39 = vadd.f32 %v4721_v33, %v507_v36 }
 0x310   :  { %v510_v38 = vpop.f32.mrb[10].mxu1 }
 0x311   :  { %v511_v40 = vadd.f32 %v4721_v33, %v510_v38  ;;  %v5284_v41 = vpop.f32.mrb[11].mxu1 }
 0x313   :  { %v578_v42 = vpack.c.bf16 %v511_v40, %v508_v39 }
 0x315   :  { %v583_v43 = vsel %vm316_vm2, %v578_v42, 0 }
 0x316   :  { %5294 = vmatpush3.bf16.xpose.msra.mxu1 %v583_v43 }
 0x317   :  { %5305 = vmatprep.subr.bf16.mxu1 %v5932_v17 }
 0x31d   :  { %5296 = vmatmul.mubr.msk.bf16.vlgmr.msra.gmra.mrb[12].mxu1 %vm316_vm2, %v577_v13 }
 0x31e   :  { %5306 = vmatpush3.bf16.msra.mxu1 %v386_v4  ;;  %5307 = vmatprep.mubr.msk.bf16.mxu1 %vm5933_vm1, %v5932_v17 }
 0x31f   :  { %5319 = vmatprep.subr.bf16.mxu1 %v5932_v17 }
 0x397   :  { %v366_v44 = vpop.xlane.xlu0 %365 }
 0x398   :  { %v370_v46 = vsub.f32 %v358_v26, %v366_v44 }
 0x399   :  { %v369_v45 = vpop.xlane.xlu1 %368 }
 0x39a   :  { %v371_v47 = vsub.f32 %v361_v29, %v369_v45  ;;  %v372_v48 = vmul.f32 1.442695, %v370_v46 }
 0x39c   :  { %v374_v49 = vmul.f32 1.442695, %v371_v47  ;;  %5790 = vpow2.f32 %v372_v48 }
 0x39e   :  { %5792 = vpow2.f32 %v374_v49 }
 0x3a6   :  { %v5791_v57 = vpop.eup %5790 }
 0x3a7   :  { %v376_v60 = vsel %vm316_vm2, %v5791_v57, 0.0 }
 0x3a8   :  { %v5793_v59 = vpop.eup %5792 }
 0x3a9   :  { %v379_v61 = vsel %vm316_vm2, %v5793_v59, 0.0 }
 0x3f0   :  { %v619_v50 = vpop.f32.mrb[12].mxu1 }
 0x3f1   :  { %v620_v51 = vadd.f32 %v619_v50, %v6179_v23  ;;  %v5297_v52 = vpop.f32.mrb[13].mxu1 }
 0x3f2   :  { %v622_v53 = vpop.f32.mrb[14].mxu1 }
 0x3f3   :  { %v623_v54 = vadd.f32 %v622_v53, %v6184_v25  ;;  %v5298_v55 = vpop.f32.mrb[15].mxu1  ;;  %v626_v56 = vsel %vm316_vm2, %v620_v51, -inf  ;;  %v5652_v53 = vld [vmem:[%s7191_s10 + $0x8] sm:$0xff]  }
 0x3f4   :  { %627 = vmax.xlane.f32.xlu0 %v626_v56 }
 0x3f5   :  { %v629_v58 = vsel %vm316_vm2, %v623_v54, -inf }
 0x3f6   :  { %630 = vmax.xlane.f32.xlu1 %v629_v58 }
 0x3f8   :  { %377 = vadd.xlane.f32.xlu0 %v376_v60 }
 0x3fa   :  { %380 = vadd.xlane.f32.xlu1 %v379_v61  ;;  %v4737_v61 = vld [vmem:[%s7221_s0 + $0x9] ss:$0 sm:$0xff] }
 0x481   :  { %v628_v62 = vpop.xlane.xlu0 %627 }
 0x482   :  { %v632_v63 = vsub.f32 %v620_v51, %v628_v62 }
 0x483   :  { %v631_v0 = vpop.xlane.xlu1 %630 }
 0x484   :  { %v634_v1 = vmul.f32 1.442695, %v632_v63  ;;  %v633_v2 = vsub.f32 %v623_v54, %v631_v0 }
 0x485   :  { %v378_v3 = vpop.xlane.xlu0 %377 }
 0x486   :  { %5794 = vpow2.f32 %v634_v1  ;;  %v636_v4 = vmul.f32 1.442695, %v633_v2  ;;  %v4738_v2 = vld [vmem:[%s7221_s0 + $0xa] ss:$0 sm:$0xff] }
 0x487   :  { %5796 = vrcp.f32 %v378_v3  ;;  %v381_v5 = vpop.xlane.xlu1 %380 }
 0x488   :  { %5798 = vpow2.f32 %v636_v4 }
 0x489   :  { %5800 = vrcp.f32 %v381_v5 }
 0x490   :  { %v5795_v6 = vpop.eup %5794 }
 0x491   :  { %v5797_v7 = vpop.eup %5796  ;;  %v638_v8 = vsel %vm316_vm2, %v5795_v6, 0.0 }
 0x492   :  { %v5799_v9 = vpop.eup %5798  ;;  %639 = vadd.xlane.f32.xlu0 %v638_v8  ;;  %v384_v12 = vmul.f32 %v5797_v7, %v5791_v57  ;;  %v5653_v7 = vld [vmem:[%s7192_s11] sm:$0xff]   ;;  %v5654_v8 = vld [vmem:[%s7192_s11 + $0x8] sm:$0xff]  }
 0x493   :  { %v5801_v10 = vpop.eup %5800  ;;  %v641_v11 = vsel %vm316_vm2, %v5799_v9, 0.0 }
 0x494   :  { %v385_v13 = vmul.f32 %v5801_v10, %v5793_v59  ;;  %642 = vadd.xlane.f32.xlu1 %v641_v11  ;;  %v5656_v10 = vld [vmem:[%s7192_s11 + $0x18] sm:$0xff]   ;;  %v4739_v11 = vld [vmem:[%s7221_s0 + $0xb] ss:$0 sm:$0xff] }
 0x496   :  { %v387_v14 = vpack.c.bf16 %v385_v13, %v384_v12 }
 0x498   :  { %5308 = vmatmul.mubr.msk.bf16.vlgmr.msra.gmra.mrb[16].mxu1 %vm316_vm2, %v387_v14 }
 0x499   :  { %5327 = vmatprep.mubr.msk.bf16.mxu1 %vm5933_vm1, %v5932_v17  ;;  %5320 = vmatpush3.bf16.msra.mxu1 %v5653_v7 }
 0x49a   :  { %5321 = vmatprep.subr.bf16.mxu1 %v5932_v17 }
 0x49d   :  { %5322 = vmatpush3.bf16.msra.mxu1 %v5654_v8  ;;  %v4749_v8 = vld [vmem:[%s7221_s0 + $0xd] ss:$0 sm:$0xff] }
 0x49e   :  { %5323 = vmatprep.subr.bf16.mxu1 %v5932_v17 }
 0x51f   :  { %v640_v15 = vpop.xlane.xlu0 %639 }
 0x520   :  { %5802 = vrcp.f32 %v640_v15 }
 0x521   :  { %v643_v16 = vpop.xlane.xlu1 %642 }
 0x522   :  { %5804 = vrcp.f32 %v643_v16 }
 0x52a   :  { %v5803_v18 = vpop.eup %5802 }
 0x52b   :  { %v646_v20 = vmul.f32 %v5803_v18, %v5795_v6 }
 0x52c   :  { %v5805_v19 = vpop.eup %5804 }
 0x52d   :  { %v647_v21 = vmul.f32 %v5805_v19, %v5799_v9  ;;  %v5655_v9 = vld [vmem:[%s7192_s11 + $0x10] sm:$0xff]  }
 0x52e   :  { %5324 = vmatpush3.bf16.msra.mxu1 %v5655_v9 }
 0x52f   :  { %v649_v22 = vpack.c.bf16 %v647_v21, %v646_v20  ;;  %5325 = vmatprep.subr.bf16.mxu1 %v5932_v17 }
 0x531   :  { %5302 = vmatmul.mubr.msk.bf16.vlgmr.msra.gmra.mrb[16].mxu0 %vm316_vm2, %v649_v22 }
 0x532   :  { %5315 = vmatprep.mubr.msk.bf16.mxu0 %vm5933_vm1, %v5932_v17  ;;  %5326 = vmatpush3.bf16.msra.mxu1 %v5656_v10 }
 0x533   :  { %5347 = vmatprep.subr.bf16.mxu1 %v5932_v17 }
 0x56b   :  { %v731_v24 = vpop.f32.mrb[16].mxu1 }
 0x56c   :  { %v5309_v26 = vpop.f32.mrb[17].mxu1 }
 0x56d   :  { %v734_v27 = vpop.f32.mrb[18].mxu1 }
 0x56e   :  { %v5310_v28 = vpop.f32.mrb[19].mxu1 }
 0x604   :  { %v687_v29 = vpop.f32.mrb[16].mxu0 }
 0x605   :  { %v732_v31 = vadd.f32 %v731_v24, %v687_v29  ;;  %v5303_v32 = vpop.f32.mrb[17].mxu0 }
 0x606   :  { %v690_v33 = vpop.f32.mrb[18].mxu0 }
 0x607   :  { %v743_v36 = vadd.f32 %v4736_v30, %v732_v31  ;;  %v735_v37 = vadd.f32 %v734_v27, %v690_v33  ;;  %v5304_v38 = vpop.f32.mrb[19].mxu0 }
 0x609   :  { %v744_v39 = vadd.f32 %v4736_v30, %v735_v37  ;;  %v745_v40 = vadd.f32 %v743_v36, %v6091_v34 }
 0x60b   :  { %v749_v41 = vsel %vm82_vm0, %v745_v40, 0.0  ;;  %v746_v42 = vadd.f32 %v744_v39, %v6093_v35  ;;  %v5651_v35 = vld [vmem:[%s7191_s10] sm:$0xff]  }
 0x60c   :  { %750 = vadd.xlane.f32.xlu0 %v749_v41  ;;  %5312 = vmatpush3.bf16.msra.mxu0 %v5651_v35 }
 0x60d   :  { %v752_v43 = vsel %vm82_vm0, %v746_v42, 0.0  ;;  %5313 = vmatprep.subr.bf16.mxu0 %v5932_v17 }
 0x60e   :  { %753 = vadd.xlane.f32.xlu1 %v752_v43 }
 0x610   :  { %5314 = vmatpush3.bf16.msra.mxu0 %v5652_v53 }
 0x611   :  { %5331 = vmatprep.subr.bf16.mxu0 %v5932_v17 }
 0x699   :  { %v751_v44 = vpop.xlane.xlu0 %750 }
 0x69a   :  { %v755_v45 = vmul.f32 0.03125, %v751_v44 }
 0x69b   :  { %v754_v46 = vpop.xlane.xlu1 %753 }
 0x69c   :  { %v757_v47 = vsub.f32 %v745_v40, %v755_v45  ;;  %v756_v48 = vmul.f32 0.03125, %v754_v46 }
 0x69e   :  { %v758_v49 = vsub.f32 %v746_v42, %v756_v48  ;;  %v759_v50 = vmul.f32 %v757_v47, %v757_v47  ;;  %v4743_v42 = vld [vmem:[%s7221_s0 + $0xc] ss:$0 sm:$0xff] }
 0x6a0   :  { %v761_v51 = vsel %vm82_vm0, %v759_v50, 0.0  ;;  %v760_v52 = vmul.f32 %v758_v49, %v758_v49 }
 0x6a1   :  { %762 = vadd.xlane.f32.xlu0 %v761_v51 }
 0x6a2   :  { %v764_v34 = vsel %vm82_vm0, %v760_v52, 0.0 }
 0x6a3   :  { %765 = vadd.xlane.f32.xlu1 %v764_v34 }
 0x72e   :  { %v763_v54 = vpop.xlane.xlu0 %762 }
 0x72f   :  { %v767_v55 = vmul.f32 0.03125, %v763_v54 }
 0x730   :  { %v766_v56 = vpop.xlane.xlu1 %765 }
 0x731   :  { %v769_v57 = vadd.f32 1e-12, %v767_v55  ;;  %v768_v58 = vmul.f32 0.03125, %v766_v56 }
 0x733   :  { %5806 = vrsqrt.f32 %v769_v57  ;;  %v770_v59 = vadd.f32 1e-12, %v768_v58 }
 0x735   :  { %5808 = vrsqrt.f32 %v770_v59 }
 0x73d   :  { %v5807_v60 = vpop.eup %5806 }
 0x73e   :  { %v773_v62 = vmul.f32 %v5807_v60, %v757_v47 }
 0x73f   :  { %v5809_v63 = vpop.eup %5808 }
 0x740   :  { %v779_v0 = vmul.f32 %v4737_v61, %v773_v62  ;;  %v774_v1 = vmul.f32 %v5809_v63, %v758_v49  ;;  %v5658_v62 = vld [vmem:[%s7190_s9 + $0x20] sm:$0xff]   ;;  %v5659_v63 = vld [vmem:[%s7220_s1 + $0x28] sm:$0xff]  }
 0x742   :  { %v780_v3 = vmul.f32 %v4737_v61, %v774_v1  ;;  %v785_v4 = vadd.f32 %v4738_v2, %v779_v0  ;;  %v5657_v61 = vld [vmem:[%s7220_s1 + $0x20] sm:$0xff]   ;;  %v5660_v0 = vld [vmem:[%s7190_s9 + $0x28] sm:$0xff]  }
 0x744   :  { %v786_v5 = vadd.f32 %v4738_v2, %v780_v3 }
 0x746   :  { %v791_v6 = vpack.c.bf16 %v786_v5, %v785_v4 }
 0x748   :  { %5316 = vmatmul.mubr.msk.bf16.vlgmr.msra.gmra.mrb[20].mxu0 %vm82_vm0, %v791_v6 }
 0x749   :  { %5335 = vmatprep.mubr.msk.bf16.mxu0 %vm5933_vm1, %v5932_v17  ;;  %5332 = vmatpush3.bf16.msra.mxu0 %v5657_v61 }
 0x74a   :  { %5333 = vmatprep.subr.bf16.mxu0 %v5932_v17 }
 0x74d   :  { %5334 = vmatpush3.bf16.msra.mxu0 %v5659_v63 }
 0x74e   :  { %5339 = vmatprep.subr.bf16.mxu0 %v5932_v17 }
 0x81b   :  { %v846_v12 = vpop.f32.mrb[20].mxu0 }
 0x81c   :  { %v847_v13 = vadd.f32 %v4739_v11, %v846_v12  ;;  %v5317_v14 = vpop.f32.mrb[21].mxu0 }
 0x81d   :  { %v849_v15 = vpop.f32.mrb[22].mxu0 }
 0x81e   :  { %v855_v16 = vmul.f32 %v847_v13, %v847_v13  ;;  %v850_v18 = vadd.f32 %v4739_v11, %v849_v15  ;;  %v5318_v19 = vpop.f32.mrb[23].mxu0  ;;  %v853_v36 = vmul.f32 0.5, %v847_v13 }
 0x81f   :  { %v5662_v19 = vld [vmem:[%s7220_s1 + $0x30] sm:$0xff]  }
 0x820   :  { %v857_v20 = vmul.f32 0.044715, %v855_v16  ;;  %v856_v21 = vmul.f32 %v850_v18, %v850_v18  ;;  %v854_v37 = vmul.f32 0.5, %v850_v18 }
 0x822   :  { %v859_v22 = vmul.f32 %v857_v20, %v847_v13  ;;  %v858_v24 = vmul.f32 0.044715, %v856_v21  ;;  %v5663_v21 = vld [vmem:[%s7189_s8 + $0x28] sm:$0xff]  }
 0x824   :  { %v861_v26 = vadd.f32 %v859_v22, %v847_v13  ;;  %v860_v27 = vmul.f32 %v858_v24, %v850_v18  ;;  %v4750_v13 = vld [vmem:[%s7221_s0 + $0xe] ss:$0 sm:$0xff]  ;;  %v5664_v22 = vld [vmem:[%s7220_s1 + $0x38] sm:$0xff]   ;;  %v5665_v24 = vld [vmem:[%s7190_s9 + $0x30] sm:$0xff]   ;;  %s4686_s1 = sshll.u32 %s5935_s4, 4  ;;  %s4687_s1 = int_to_ptr.vmem [resolvable:$true] %s4686_s1 }
 0x825   :  { %p5913_p1 = scmp.lt.s32.totalorder %s4687_s1, %s4687_s1 }
 0x826   :  { %v863_v28 = vmul.f32 0.7978846, %v861_v26  ;;  %v862_v29 = vadd.f32 %v860_v27, %v850_v18  ;;  %v5661_v18 = vld [vmem:[%s7189_s8 + $0x20] sm:$0xff]   ;;  %v5666_v26 = vld [vmem:[%s7190_s9 + $0x38] sm:$0xff]   ;;  %v4755_v27 = vld [vmem:[%s7221_s0 + $0xf] ss:$0 sm:$0xff] }
 0x828   :  { %5810 = vtanh.f32 %v863_v28  ;;  %v864_v30 = vmul.f32 0.7978846, %v862_v29  ;;  %v4771_v29 = vld [vmem:[%s7221_s0 + $0x11] ss:$0 sm:$0xff] }
 0x82a   :  { %5812 = vtanh.f32 %v864_v30 }
 0x832   :  { %v5811_v31 = vpop.eup %5810 }
 0x833   :  { %v867_v32 = vadd.f32 1.0, %v5811_v31 }
 0x834   :  { %v5813_v33 = vpop.eup %5812 }
 0x835   :  { %v868_v38 = vadd.f32 1.0, %v5813_v33  ;;  %v869_v39 = vmul.f32 %v867_v32, %v853_v36 }
 0x837   :  { %v870_v40 = vmul.f32 %v868_v38, %v854_v37 }
 0x839   :  { %v879_v41 = vpack.c.bf16 %v870_v40, %v869_v39 }
 0x83b   :  { %5328 = vmatmul.mubr.msk.bf16.vlgmr.msra.gmra.mrb[20].mxu1 %vm909_vm3, %v879_v41 }
 0x83c   :  { %5351 = vmatprep.mubr.msk.bf16.mxu1 %vm5933_vm1, %v5932_v17  ;;  %5348 = vmatpush3.bf16.msra.mxu1 %v5658_v62 }
 0x83d   :  { %5349 = vmatprep.subr.bf16.mxu1 %v5932_v17 }
 0x840   :  { %5350 = vmatpush3.bf16.msra.mxu1 %v5660_v0 }
 0x841   :  { %5361 = vmatprep.subr.bf16.mxu1 %v5932_v17 }
 0x90e   :  { %v947_v43 = vpop.f32.mrb[20].mxu1 }
 0x90f   :  { %v948_v44 = vadd.f32 %v4743_v42, %v947_v43  ;;  %v5329_v45 = vpop.f32.mrb[21].mxu1 }
 0x910   :  { %v950_v46 = vpop.f32.mrb[22].mxu1  ;;  %v4763_v45 = vld [vmem:[%s7221_s0 + $0x10] ss:$0 sm:$0xff] }
 0x911   :  { %v951_v47 = vadd.f32 %v4743_v42, %v950_v46  ;;  %v5330_v48 = vpop.f32.mrb[23].mxu1  ;;  %v954_v49 = vadd.f32 %v948_v44, %v785_v4 }
 0x913   :  { %v958_v50 = vsel %vm82_vm0, %v954_v49, 0.0  ;;  %v955_v51 = vadd.f32 %v951_v47, %v786_v5  ;;  %v4780_v47 = vld [vmem:[%s7221_s0 + $0x12] ss:$0 sm:$0xff] }
 0x914   :  { %959 = vadd.xlane.f32.xlu0 %v958_v50 }
 0x915   :  { %v961_v52 = vsel %vm82_vm0, %v955_v51, 0.0 }
 0x916   :  { %962 = vadd.xlane.f32.xlu1 %v961_v52 }
 0x9a1   :  { %v960_v34 = vpop.xlane.xlu0 %959 }
 0x9a2   :  { %v964_v35 = vmul.f32 0.03125, %v960_v34 }
 0x9a3   :  { %v963_v53 = vpop.xlane.xlu1 %962 }
 0x9a4   :  { %v966_v54 = vsub.f32 %v954_v49, %v964_v35  ;;  %v965_v55 = vmul.f32 0.03125, %v963_v53 }
 0x9a6   :  { %v967_v56 = vsub.f32 %v955_v51, %v965_v55  ;;  %v968_v57 = vmul.f32 %v966_v54, %v966_v54 }
 0x9a8   :  { %v970_v58 = vsel %vm82_vm0, %v968_v57, 0.0  ;;  %v969_v59 = vmul.f32 %v967_v56, %v967_v56 }
 0x9a9   :  { %971 = vadd.xlane.f32.xlu0 %v970_v58 }
 0x9aa   :  { %v973_v60 = vsel %vm82_vm0, %v969_v59, 0.0 }
 0x9ab   :  { %974 = vadd.xlane.f32.xlu1 %v973_v60  ;;  %v4796_v60 = vld [vmem:[%s7221_s0 + $0x14] ss:$0 sm:$0xff] }
 0xa36   :  { %v972_v1 = vpop.xlane.xlu0 %971 }
 0xa37   :  { %v976_v2 = vmul.f32 0.03125, %v972_v1 }
 0xa38   :  { %v975_v3 = vpop.xlane.xlu1 %974 }
 0xa39   :  { %v978_v4 = vadd.f32 1e-12, %v976_v2  ;;  %v977_v5 = vmul.f32 0.03125, %v975_v3  ;;  %v5667_v3 = vld [vmem:[%s7189_s8 + $0x30] sm:$0xff]  }
 0xa3b   :  { %5814 = vrsqrt.f32 %v978_v4  ;;  %v979_v6 = vadd.f32 1e-12, %v977_v5  ;;  %v5668_v5 = vld [vmem:[%s7189_s8 + $0x38] sm:$0xff]  }
 0xa3d   :  { %5816 = vrsqrt.f32 %v979_v6 }
 0xa45   :  { %v5815_v7 = vpop.eup %5814 }
 0xa46   :  { %v982_v9 = vmul.f32 %v5815_v7, %v966_v54 }
 0xa47   :  { %v5817_v10 = vpop.eup %5816 }
 0xa48   :  { %v988_v11 = vmul.f32 %v4749_v8, %v982_v9  ;;  %v983_v12 = vmul.f32 %v5817_v10, %v967_v56 }
 0xa4a   :  { %v989_v14 = vmul.f32 %v4749_v8, %v983_v12  ;;  %v6290_v15 = vadd.f32 %v4750_v13, %v988_v11 }
 0xa4c   :  { %v6292_v16 = vadd.f32 %v4750_v13, %v989_v14  ;;  %v4788_v14 = vld [vmem:[%s7221_s0 + $0x13] ss:$0 sm:$0xff] }
 0xa4e   :  { %v6302_v20 = vpack.c.bf16 %v6292_v16, %v6290_v15 }
 0xa50   :  { %5336 = vmatmul.mubr.msk.bf16.vlgmr.msra.gmra.mrb[24].mxu0 %vm82_vm0, %v6302_v20  ;;  %5352 = vmatmul.mubr.msk.bf16.vlgmr.msra.gmra.mrb[24].mxu1 %vm82_vm0, %v6302_v20 }
 0xa51   :  { %5340 = vmatpush3.bf16.msra.mxu0 %v5661_v18  ;;  %5362 = vmatpush3.bf16.msra.mxu1 %v5662_v19 }
 0xa52   :  { %5341 = vmatprep.subr.bf16.mxu0 %v5932_v17  ;;  %5363 = vmatprep.subr.bf16.mxu1 %v5932_v17 }
 0xa53   :  { %5343 = vmatprep.mubr.msk.bf16.mxu0 %vm5933_vm1, %v5932_v17  ;;  %5365 = vmatprep.mubr.msk.bf16.mxu1 %vm5933_vm1, %v5932_v17 }
 0xa55   :  { %5342 = vmatpush3.bf16.msra.mxu0 %v5663_v21  ;;  %5364 = vmatpush3.bf16.msra.mxu1 %v5664_v22 }
 0xa56   :  { %5377 = vmatprep.subr.bf16.mxu1 %v5932_v17  ;;  %5355 = vmatprep.subr.bf16.mxu0 %v5932_v17 }
 0xa58   :  { %5344 = vmatmul.mubr.msk.bf16.vlgmr.msra.gmra.mrb[28].mxu0 %vm82_vm0, %v6302_v20  ;;  %5366 = vmatmul.mubr.msk.bf16.vlgmr.msra.gmra.mrb[28].mxu1 %vm82_vm0, %v6302_v20 }
 0xa59   :  { %5378 = vmatpush3.bf16.msra.mxu1 %v5665_v24  ;;  %5381 = vmatprep.mubr.msk.bf16.mxu1 %vm5933_vm1, %v5932_v17 }
 0xa5a   :  { %5379 = vmatprep.subr.bf16.mxu1 %v5932_v17  ;;  %5357 = vmatprep.mubr.msk.bf16.mxu0 %vm5933_vm1, %v5932_v17 }
 0xa5d   :  { %5380 = vmatpush3.bf16.msra.mxu1 %v5666_v26 }
 0xa5e   :  { %5391 = vmatprep.subr.bf16.mxu1 %v5932_v17 }
 0xa60   :  { %5382 = vmatmul.mubr.msk.bf16.vlgmr.msra.gmra.mrb[32].mxu1 %vm82_vm0, %v6302_v20 }
 0xa61   :  { %5393 = vmatprep.mubr.msk.bf16.mxu1 %vm5933_vm1, %v5932_v17 }
 0xb23   :  { %v1056_v28 = vpop.f32.mrb[24].mxu0  ;;  %v1182_v30 = vpop.f32.mrb[24].mxu1 }
 0xb24   :  { %v5337_v31 = vpop.f32.mrb[25].mxu0  ;;  %v5353_v32 = vpop.f32.mrb[25].mxu1  ;;  %v1057_v37 = vadd.f32 %v4755_v27, %v1056_v28  ;;  %v6348_v38 = vadd.f32 %v4771_v29, %v1182_v30 }
 0xb25   :  { %v1059_v33 = vpop.f32.mrb[26].mxu0  ;;  %v1185_v36 = vpop.f32.mrb[26].mxu1 }
 0xb26   :  { %v1060_v39 = vadd.f32 %v4755_v27, %v1059_v33  ;;  %v6350_v40 = vadd.f32 %v4771_v29, %v1185_v36  ;;  %v5338_v41 = vpop.f32.mrb[27].mxu0  ;;  %v5354_v42 = vpop.f32.mrb[27].mxu1 }
 0xb28   :  { %v1189_v43 = vpack.c.bf16 %v1060_v39, %v1057_v37  ;;  %v1260_v44 = vpack.c.bf16 %v6350_v40, %v6348_v38 }
 0xb2b   :  { %v1119_v46 = vpop.f32.mrb[28].mxu0  ;;  %v1318_v48 = vpop.f32.mrb[28].mxu1 }
 0xb2c   :  { %v5345_v49 = vpop.f32.mrb[29].mxu0  ;;  %v5367_v50 = vpop.f32.mrb[29].mxu1  ;;  %v1120_v34 = vadd.f32 %v4763_v45, %v1119_v46  ;;  %v1319_v35 = vadd.f32 %v4780_v47, %v1318_v48 }
 0xb2d   :  { %v1122_v51 = vpop.f32.mrb[30].mxu0  ;;  %v1321_v52 = vpop.f32.mrb[30].mxu1 }
 0xb2e   :  { %v1123_v53 = vadd.f32 %v4763_v45, %v1122_v51  ;;  %v1322_v54 = vadd.f32 %v4780_v47, %v1321_v52  ;;  %v5346_v55 = vpop.f32.mrb[31].mxu0  ;;  %v5368_v56 = vpop.f32.mrb[31].mxu1 }
 0xb30   :  { %v1190_v57 = vpack.c.bf16 %v1123_v53, %v1120_v34  ;;  %v1451_v58 = vpack.c.bf16 %v1322_v54, %v1319_v35 }
 0xb32   :  { %v1195_v59 = vsel %vm316_vm2, %v1190_v57, 0 }
 0xb33   :  { %5356 = vmatpush3.bf16.xpose.msra.mxu0 %v1195_v59  ;;  %v1444_v61 = vpop.f32.mrb[32].mxu1 }
 0xb34   :  { %v5383_v62 = vpop.f32.mrb[33].mxu1  ;;  %5369 = vmatprep.subr.bf16.mxu0 %v5932_v17  ;;  %v1445_v0 = vadd.f32 %v4796_v60, %v1444_v61 }
 0xb35   :  { %v1447_v63 = vpop.f32.mrb[34].mxu1 }
 0xb36   :  { %v1448_v1 = vadd.f32 %v4796_v60, %v1447_v63  ;;  %v5384_v2 = vpop.f32.mrb[35].mxu1 }
 0xb38   :  { %v1522_v4 = vpack.c.bf16 %v1448_v1, %v1445_v0 }
 0xb3a   :  { %5358 = vmatmul.mubr.msk.bf16.vlgmr.msra.gmra.mrb[32].mxu0 %vm316_vm2, %v1189_v43  ;;  %5392 = vmatpush3.bf16.msra.mxu1 %v1522_v4 }
 0xb3b   :  { %5370 = vmatpush3.bf16.msra.mxu0 %v5667_v3  ;;  %5373 = vmatprep.mubr.msk.bf16.mxu0 %vm5933_vm1, %v5932_v17 }
 0xb3c   :  { %5371 = vmatprep.subr.bf16.mxu0 %v5932_v17  ;;  %5403 = vmatprep.subr.bf16.mxu1 %v5932_v17 }
 0xb3f   :  { %5372 = vmatpush3.bf16.msra.mxu0 %v5668_v5 }
 0xb40   :  { %5385 = vmatprep.subr.bf16.mxu0 %v5932_v17 }
 0xb42   :  { %5374 = vmatmul.mubr.msk.bf16.vlgmr.msra.gmra.mrb[36].mxu0 %vm82_vm0, %v6302_v20 }
 0xb43   :  { %5387 = vmatprep.mubr.msk.bf16.mxu0 %vm5933_vm1, %v5932_v17 }
 0xc0d   :  { %v1231_v6 = vpop.f32.mrb[32].mxu0 }
 0xc0e   :  { %v1232_v7 = vadd.f32 %v1231_v6, %v6179_v23  ;;  %v5359_v8 = vpop.f32.mrb[33].mxu0 }
 0xc0f   :  { %v1234_v9 = vpop.f32.mrb[34].mxu0 }
 0xc10   :  { %v1235_v10 = vadd.f32 %v1234_v9, %v6184_v25  ;;  %v5360_v11 = vpop.f32.mrb[35].mxu0  ;;  %v1238_v12 = vsel %vm316_vm2, %v1232_v7, -inf  ;;  %v4803_v9 = vld [vmem:[%s7221_s0 + $0x15] ss:$0 sm:$0xff] }
 0xc11   :  { %1239 = vmax.xlane.f32.xlu0 %v1238_v12 }
 0xc12   :  { %v1241_v13 = vsel %vm316_vm2, %v1235_v10, -inf }
 0xc13   :  { %1242 = vmax.xlane.f32.xlu1 %v1241_v13 }
 0xc15   :  { %v1381_v18 = vpop.f32.mrb[36].mxu0 }
 0xc16   :  { %v5375_v19 = vpop.f32.mrb[37].mxu0  ;;  %v1382_v21 = vadd.f32 %v4788_v14, %v1381_v18 }
 0xc17   :  { %v1384_v20 = vpop.f32.mrb[38].mxu0 }
 0xc18   :  { %v1385_v22 = vadd.f32 %v4788_v14, %v1384_v20  ;;  %v5376_v24 = vpop.f32.mrb[39].mxu0 }
 0xc1a   :  { %v1452_v26 = vpack.c.bf16 %v1385_v22, %v1382_v21 }
 0xc1c   :  { %v1457_v27 = vsel %vm316_vm2, %v1452_v26, 0 }
 0xc1d   :  { %5386 = vmatpush3.bf16.xpose.msra.mxu0 %v1457_v27 }
 0xc1e   :  { %5397 = vmatprep.subr.bf16.mxu0 %v5932_v17 }
 0xc24   :  { %5388 = vmatmul.mubr.msk.bf16.vlgmr.msra.gmra.mrb[40].mxu0 %vm316_vm2, %v1451_v58 }
 0xc25   :  { %5398 = vmatpush3.bf16.msra.mxu0 %v1260_v44  ;;  %5399 = vmatprep.mubr.msk.bf16.mxu0 %vm5933_vm1, %v5932_v17 }
 0xc26   :  { %5411 = vmatprep.subr.bf16.mxu0 %v5932_v17 }
 0xc9e   :  { %v1240_v28 = vpop.xlane.xlu0 %1239 }
 0xc9f   :  { %v1244_v30 = vsub.f32 %v1232_v7, %v1240_v28 }
 0xca0   :  { %v1243_v29 = vpop.xlane.xlu1 %1242 }
 0xca1   :  { %v1245_v31 = vsub.f32 %v1235_v10, %v1243_v29  ;;  %v1246_v32 = vmul.f32 1.442695, %v1244_v30 }
 0xca3   :  { %v1248_v33 = vmul.f32 1.442695, %v1245_v31  ;;  %5818 = vpow2.f32 %v1246_v32 }
 0xca5   :  { %5820 = vpow2.f32 %v1248_v33 }
 0xcad   :  { %v5819_v43 = vpop.eup %5818 }
 0xcae   :  { %v1250_v46 = vsel %vm316_vm2, %v5819_v43, 0.0 }
 0xcaf   :  { %v5821_v45 = vpop.eup %5820 }
 0xcb0   :  { %v1253_v47 = vsel %vm316_vm2, %v5821_v45, 0.0 }
 0xcf7   :  { %v1493_v36 = vpop.f32.mrb[40].mxu0 }
 0xcf8   :  { %v1494_v37 = vadd.f32 %v1493_v36, %v6179_v23  ;;  %v5389_v38 = vpop.f32.mrb[41].mxu0 }
 0xcf9   :  { %v1496_v39 = vpop.f32.mrb[42].mxu0 }
 0xcfa   :  { %v1497_v40 = vadd.f32 %v1496_v39, %v6184_v25  ;;  %v5390_v41 = vpop.f32.mrb[43].mxu0  ;;  %v1500_v42 = vsel %vm316_vm2, %v1494_v37, -inf }
 0xcfb   :  { %1501 = vmax.xlane.f32.xlu0 %v1500_v42 }
 0xcfc   :  { %v1503_v44 = vsel %vm316_vm2, %v1497_v40, -inf }
 0xcfd   :  { %1504 = vmax.xlane.f32.xlu1 %v1503_v44 }
 0xcff   :  { %1251 = vadd.xlane.f32.xlu0 %v1250_v46 }
 0xd01   :  { %1254 = vadd.xlane.f32.xlu1 %v1253_v47 }
 0xd88   :  { %v1502_v23 = vpop.xlane.xlu0 %1501 }
 0xd89   :  { %v1506_v48 = vsub.f32 %v1494_v37, %v1502_v23  ;;  %v5670_v37 = vld [vmem:[%s7191_s10 + $0x18] sm:$0xff]  }
 0xd8a   :  { %v1505_v49 = vpop.xlane.xlu1 %1504 }
 0xd8b   :  { %v1508_v50 = vmul.f32 1.442695, %v1506_v48  ;;  %v1507_v25 = vsub.f32 %v1497_v40, %v1505_v49  ;;  %v4805_v49 = vld [vmem:[%s7221_s0 + $0x17] ss:$0 sm:$0xff] }
 0xd8c   :  { %v1252_v51 = vpop.xlane.xlu0 %1251 }
 0xd8d   :  { %5822 = vpow2.f32 %v1508_v50  ;;  %v1510_v52 = vmul.f32 1.442695, %v1507_v25 }
 0xd8e   :  { %5824 = vrcp.f32 %v1252_v51  ;;  %v1255_v34 = vpop.xlane.xlu1 %1254 }
 0xd8f   :  { %5826 = vpow2.f32 %v1510_v52 }
 0xd90   :  { %5828 = vrcp.f32 %v1255_v34  ;;  %v5671_v34 = vld [vmem:[%s7192_s11 + $0x20] sm:$0xff]  }
 0xd97   :  { %v5823_v35 = vpop.eup %5822 }
 0xd98   :  { %v5825_v53 = vpop.eup %5824  ;;  %v1512_v54 = vsel %vm316_vm2, %v5823_v35, 0.0 }
 0xd99   :  { %v5827_v55 = vpop.eup %5826  ;;  %1513 = vadd.xlane.f32.xlu0 %v1512_v54  ;;  %v1258_v58 = vmul.f32 %v5825_v53, %v5819_v43  ;;  %v5673_v53 = vld [vmem:[%s7192_s11 + $0x30] sm:$0xff]   ;;  %v5674_v54 = vld [vmem:[%s7192_s11 + $0x38] sm:$0xff]  }
 0xd9a   :  { %v5829_v56 = vpop.eup %5828  ;;  %v1515_v57 = vsel %vm316_vm2, %v5827_v55, 0.0 }
 0xd9b   :  { %v1259_v59 = vmul.f32 %v5829_v56, %v5821_v45  ;;  %1516 = vadd.xlane.f32.xlu1 %v1515_v57  ;;  %v4804_v45 = vld [vmem:[%s7221_s0 + $0x16] ss:$0 sm:$0xff]  ;;  %v4810_v56 = vld [vmem:[%s7221_s0 + $0x18] ss:$0 sm:$0xff] }
 0xd9d   :  { %v1261_v60 = vpack.c.bf16 %v1259_v59, %v1258_v58 }
 0xd9f   :  { %5400 = vmatmul.mubr.msk.bf16.vlgmr.msra.gmra.mrb[44].mxu0 %vm316_vm2, %v1261_v60 }
 0xda0   :  { %5419 = vmatprep.mubr.msk.bf16.mxu0 %vm5933_vm1, %v5932_v17  ;;  %5412 = vmatpush3.bf16.msra.mxu0 %v5671_v34 }
 0xda1   :  { %5413 = vmatprep.subr.bf16.mxu0 %v5932_v17 }
 0xe26   :  { %v1514_v61 = vpop.xlane.xlu0 %1513 }
 0xe27   :  { %5830 = vrcp.f32 %v1514_v61 }
 0xe28   :  { %v1517_v62 = vpop.xlane.xlu1 %1516 }
 0xe29   :  { %5832 = vrcp.f32 %v1517_v62 }
 0xe31   :  { %v5831_v63 = vpop.eup %5830 }
 0xe32   :  { %v1520_v1 = vmul.f32 %v5831_v63, %v5823_v35  ;;  %v5672_v35 = vld [vmem:[%s7192_s11 + $0x28] sm:$0xff]  }
 0xe33   :  { %v5833_v0 = vpop.eup %5832  ;;  %5414 = vmatpush3.bf16.msra.mxu0 %v5672_v35 }
 0xe34   :  { %v1521_v2 = vmul.f32 %v5833_v0, %v5827_v55  ;;  %5415 = vmatprep.subr.bf16.mxu0 %v5932_v17  ;;  %v5934_v55 = vmov 0  }
 0xe36   :  { %v1523_v3 = vpack.c.bf16 %v1521_v2, %v1520_v1 }
 0xe37   :  { %5416 = vmatpush3.bf16.msra.mxu0 %v5673_v53  ;;  %v2016_v53 = vld [vmem:[%s7224_s30] sm:$0xff] }
 0xe38   :  { %5394 = vmatmul.mubr.msk.bf16.vlgmr.msra.gmra.mrb[36].mxu1 %vm316_vm2, %v1523_v3  ;;  %5417 = vmatprep.subr.bf16.mxu0 %v5932_v17 }
 0xe39   :  { %5407 = vmatprep.mubr.msk.bf16.mxu1 %vm5933_vm1, %v5932_v17 }
 0xe3b   :  { %5418 = vmatpush3.bf16.msra.mxu0 %v5674_v54 }
 0xe3c   :  { %2102 = vmatprep.subr.bf16.mxu0 %v5934_v55 }
 0xe72   :  { %v1605_v4 = vpop.f32.mrb[44].mxu0 }
 0xe73   :  { %v5401_v5 = vpop.f32.mrb[45].mxu0 }
 0xe74   :  { %v1608_v6 = vpop.f32.mrb[46].mxu0 }
 0xe75   :  { %v5402_v7 = vpop.f32.mrb[47].mxu0 }
 0xf0b   :  { %v1561_v8 = vpop.f32.mrb[36].mxu1 }
 0xf0c   :  { %v1606_v10 = vadd.f32 %v1605_v4, %v1561_v8  ;;  %v5395_v11 = vpop.f32.mrb[37].mxu1 }
 0xf0d   :  { %v1564_v12 = vpop.f32.mrb[38].mxu1 }
 0xf0e   :  { %v1617_v13 = vadd.f32 %v4803_v9, %v1606_v10  ;;  %v1609_v14 = vadd.f32 %v1608_v6, %v1564_v12  ;;  %v5396_v18 = vpop.f32.mrb[39].mxu1 }
 0xf10   :  { %v1618_v19 = vadd.f32 %v4803_v9, %v1609_v14  ;;  %v1619_v20 = vadd.f32 %v1617_v13, %v6290_v15 }
 0xf12   :  { %v1623_v21 = vsel %vm82_vm0, %v1619_v20, 0.0  ;;  %v1620_v22 = vadd.f32 %v1618_v19, %v6292_v16  ;;  %v5669_v16 = vld [vmem:[%s7191_s10 + $0x10] sm:$0xff]   ;;  %s7225_s10 = sld [smem:[#allocation8_spill]] }
 0xf13   :  { %1624 = vadd.xlane.f32.xlu0 %v1623_v21  ;;  %5404 = vmatpush3.bf16.msra.mxu1 %v5669_v16  ;;  %v5687_v21 = vld [vmem:[%s7223_s6 + $0x4] ss:$8 sps:$4 sm:$0xff]   ;;  %v5689_v16 = vld [vmem:[%s7223_s6] ss:$8 sps:$4 sm:$0xff]  }
 0xf14   :  { %v1626_v24 = vsel %vm82_vm0, %v1620_v22, 0.0  ;;  %5405 = vmatprep.subr.bf16.mxu1 %v5932_v17 }
 0xf15   :  { %1627 = vadd.xlane.f32.xlu1 %v1626_v24  ;;  %v5676_v24 = vld [vmem:[%s7194_s13 + $0x8] sm:$0xff]  }
 0xf17   :  { %5406 = vmatpush3.bf16.msra.mxu1 %v5670_v37  ;;  %v4822_v37 = vld [vmem:[%s7221_s0 + $0x19] ss:$0 sm:$0xff] }
 0xf18   :  { %5423 = vmatprep.subr.bf16.mxu1 %v5932_v17 }
 0xfa0   :  { %v1625_v26 = vpop.xlane.xlu0 %1624 }
 0xfa1   :  { %v1629_v27 = vmul.f32 0.03125, %v1625_v26  ;;  %v5677_v26 = vld [vmem:[%s7194_s13 + $0x10] sm:$0xff]  }
 0xfa2   :  { %v1628_v28 = vpop.xlane.xlu1 %1627 }
 0xfa3   :  { %v1631_v29 = vsub.f32 %v1619_v20, %v1629_v27  ;;  %v1630_v30 = vmul.f32 0.03125, %v1628_v28  ;;  %v5675_v20 = vld [vmem:[%s7194_s13] sm:$0xff]   ;;  %v5678_v27 = vld [vmem:[%s7194_s13 + $0x18] sm:$0xff]  }
 0xfa4   :  { %v5679_v28 = vld [vmem:[%s7194_s13 + $0x20] sm:$0xff]  }
 0xfa5   :  { %v1632_v31 = vsub.f32 %v1620_v22, %v1630_v30  ;;  %v1633_v32 = vmul.f32 %v1631_v29, %v1631_v29  ;;  %v5681_v30 = vld [vmem:[%s7194_s13 + $0x30] sm:$0xff]  }
 0xfa7   :  { %v1635_v33 = vsel %vm82_vm0, %v1633_v32, 0.0  ;;  %v1634_v36 = vmul.f32 %v1632_v31, %v1632_v31  ;;  %v5683_v32 = vld [vmem:[%s7194_s13 + $0x40] sm:$0xff]  }
 0xfa8   :  { %1636 = vadd.xlane.f32.xlu0 %v1635_v33  ;;  %v5684_v33 = vld [vmem:[%s7194_s13 + $0x48] sm:$0xff]  }
 0xfa9   :  { %v1638_v15 = vsel %vm82_vm0, %v1634_v36, 0.0  ;;  %v5685_v36 = vld [vmem:[%s7194_s13 + $0x50] sm:$0xff]  }
 0xfaa   :  { %1639 = vadd.xlane.f32.xlu1 %v1638_v15  ;;  %v5686_v15 = vld [vmem:[%s7194_s13 + $0x58] sm:$0xff]  }
0x1035   :  { %v1637_v38 = vpop.xlane.xlu0 %1636 }
0x1036   :  { %v1641_v39 = vmul.f32 0.03125, %v1637_v38 }
0x1037   :  { %v1640_v40 = vpop.xlane.xlu1 %1639 }
0x1038   :  { %v1643_v41 = vadd.f32 1e-12, %v1641_v39  ;;  %v1642_v42 = vmul.f32 0.03125, %v1640_v40 }
0x103a   :  { %5834 = vrsqrt.f32 %v1643_v41  ;;  %v1644_v43 = vadd.f32 1e-12, %v1642_v42 }
0x103c   :  { %5836 = vrsqrt.f32 %v1644_v43 }
0x1044   :  { %v5835_v44 = vpop.eup %5834 }
0x1045   :  { %v1647_v46 = vmul.f32 %v5835_v44, %v1631_v29  ;;  %v5680_v29 = vld [vmem:[%s7194_s13 + $0x28] sm:$0xff]  }
0x1046   :  { %v5837_v47 = vpop.eup %5836 }
0x1047   :  { %v1653_v23 = vmul.f32 %v4804_v45, %v1647_v46  ;;  %v1648_v48 = vmul.f32 %v5837_v47, %v1632_v31  ;;  %v5682_v31 = vld [vmem:[%s7194_s13 + $0x38] sm:$0xff]  }
0x1049   :  { %v1654_v50 = vmul.f32 %v4804_v45, %v1648_v48  ;;  %v6431_v25 = vadd.f32 %v4805_v49, %v1653_v23 }
0x104b   :  { %v6433_v51 = vadd.f32 %v4805_v49, %v1654_v50 }
0x104d   :  { %v1666_v52 = vpack.c.bf16 %v6433_v51, %v6431_v25 }
0x104f   :  { %5408 = vmatmul.mubr.msk.bf16.vlgmr.msra.gmra.mrb[40].mxu1 %vm82_vm0, %v1666_v52 }
0x1050   :  { %5425 = vmatprep.mubr.msk.bf16.mxu1 %vm5933_vm1, %v5932_v17 }
0x1122   :  { %v1721_v57 = vpop.f32.mrb[40].mxu1 }
0x1123   :  { %v1722_v58 = vadd.f32 %v4810_v56, %v1721_v57  ;;  %v5409_v59 = vpop.f32.mrb[41].mxu1 }
0x1124   :  { %v1724_v60 = vpop.f32.mrb[42].mxu1 }
0x1125   :  { %v1730_v61 = vmul.f32 %v1722_v58, %v1722_v58  ;;  %v1725_v62 = vadd.f32 %v4810_v56, %v1724_v60  ;;  %v5410_v63 = vpop.f32.mrb[43].mxu1  ;;  %v1728_v12 = vmul.f32 0.5, %v1722_v58 }
0x1127   :  { %v1732_v0 = vmul.f32 0.044715, %v1730_v61  ;;  %v1731_v1 = vmul.f32 %v1725_v62, %v1725_v62  ;;  %v1729_v13 = vmul.f32 0.5, %v1725_v62 }
0x1129   :  { %v1734_v2 = vmul.f32 %v1732_v0, %v1722_v58  ;;  %v1733_v3 = vmul.f32 0.044715, %v1731_v1 }
0x112b   :  { %v1736_v4 = vadd.f32 %v1734_v2, %v1722_v58  ;;  %v1735_v5 = vmul.f32 %v1733_v3, %v1725_v62 }
0x112d   :  { %v1738_v6 = vmul.f32 0.7978846, %v1736_v4  ;;  %v1737_v7 = vadd.f32 %v1735_v5, %v1725_v62 }
0x112f   :  { %5838 = vtanh.f32 %v1738_v6  ;;  %v1739_v8 = vmul.f32 0.7978846, %v1737_v7 }
0x1131   :  { %5840 = vtanh.f32 %v1739_v8 }
0x1139   :  { %v5839_v9 = vpop.eup %5838 }
0x113a   :  { %v1742_v10 = vadd.f32 1.0, %v5839_v9 }
0x113b   :  { %v5841_v11 = vpop.eup %5840 }
0x113c   :  { %v1743_v14 = vadd.f32 1.0, %v5841_v11  ;;  %v1744_v18 = vmul.f32 %v1742_v10, %v1728_v12  ;;  %v1871_v12 = vlaneseq }
0x113e   :  { %v1745_v19 = vmul.f32 %v1743_v14, %v1729_v13 }
0x1140   :  { %v1755_v22 = vpack.c.bf16 %v1745_v19, %v1744_v18 }
0x1142   :  { %5420 = vmatmul.mubr.msk.bf16.vlgmr.msra.gmra.mrb[48].mxu0 %vm909_vm3, %v1755_v22 }
0x1143   :  { %2103 = vmatpush1.bf16.msra.mxu0 %v5675_v20  ;;  %4850 = vmatprep.mubr.msk.bf16.mxu0 %vm909_vm3, %v5687_v21  ;;  %v6543_v20 = vshrl.u32 %v1871_v12, 7 }
0x1144   :  { %2104 = vmatprep.subr.bf16.mxu0 %v5934_v55 }
0x1147   :  { %2105 = vmatpush1.bf16.msra.mxu0 %v5676_v24  ;;  %v4828_v24 = vld [vmem:[%s7221_s0 + $0x1a] ss:$0 sm:$0xff] }
0x1148   :  { %2106 = vmatprep.subr.bf16.mxu0 %v5934_v55 }
0x114b   :  { %2107 = vmatpush1.bf16.msra.mxu0 %v5677_v26  ;;  %v1874_v26 = vand.u32 127, %v1871_v12 }
0x114c   :  { %2108 = vmatprep.subr.bf16.mxu0 %v5934_v55 }
0x114f   :  { %2109 = vmatpush1.bf16.msra.mxu0 %v5678_v27  ;;  %v1875_v27 = vmul.u32 8, %v6543_v20 }
0x1150   :  { %2110 = vmatprep.subr.bf16.mxu0 %v5934_v55 }
0x1151   :  { %vm1876_vm4 = vcmp.eq.s32.totalorder %v1874_v26, %v1875_v27 }
0x1153   :  { %2111 = vmatpush1.bf16.msra.mxu0 %v5679_v28 }
0x1154   :  { %2112 = vmatprep.subr.bf16.mxu0 %v5934_v55 }
0x1157   :  { %2113 = vmatpush1.bf16.msra.mxu0 %v5680_v29 }
0x1158   :  { %2114 = vmatprep.subr.bf16.mxu0 %v5934_v55 }
0x115b   :  { %2115 = vmatpush1.bf16.msra.mxu0 %v5681_v30 }
0x115c   :  { %2116 = vmatprep.subr.bf16.mxu0 %v5934_v55 }
0x115f   :  { %2117 = vmatpush1.bf16.msra.mxu0 %v5682_v31 }
0x1160   :  { %2118 = vmatprep.subr.bf16.mxu0 %v5934_v55 }
0x1163   :  { %2119 = vmatpush1.bf16.msra.mxu0 %v5683_v32  ;;  %v4829_v32 = vld [vmem:[%s7221_s0 + $0x1b] ss:$0 sm:$0xff] }
0x1164   :  { %2120 = vmatprep.subr.bf16.mxu0 %v5934_v55 }
0x1167   :  { %2121 = vmatpush1.bf16.msra.mxu0 %v5684_v33 }
0x1168   :  { %2122 = vmatprep.subr.bf16.mxu0 %v5934_v55 }
0x116b   :  { %2123 = vmatpush1.bf16.msra.mxu0 %v5685_v36 }
0x116c   :  { %2124 = vmatprep.subr.bf16.mxu0 %v5934_v55 }
0x116f   :  { %2125 = vmatpush1.bf16.msra.mxu0 %v5686_v15 }
0x1170   :  { %5483 = vmatprep.subr.bf16.mxu0 %v5932_v17 }
0x1172   :  { %2135 = vmatmul.mubr.bf16.vlgmr.msra.gmra.mrb[52].mxu0 %v5689_v16  ;;  %v4830_v16 = vsel %vm1876_vm4, 1.0, %v5932_v17 }
0x1173   :  { %5487 = vmatprep.mubr.msk.bf16.mxu0 %vm5933_vm1, %v5932_v17 }
0x1215   :  { %v1822_v38 = vpop.f32.mrb[48].mxu0 }
0x1216   :  { %v1823_v39 = vadd.f32 %v4822_v37, %v1822_v38  ;;  %v5421_v40 = vpop.f32.mrb[49].mxu0  ;;  %v6554_v38 = vpack.c.bf16 %v4830_v16, %v4830_v16 }
0x1217   :  { %v1825_v41 = vpop.f32.mrb[50].mxu0  ;;  %v5691_v40 = vld [vmem:[%s7197_s16 + $0x18] sm:$0xff]  }
0x1218   :  { %v1826_v42 = vadd.f32 %v4822_v37, %v1825_v41  ;;  %v5422_v43 = vpop.f32.mrb[51].mxu0  ;;  %v1829_v44 = vadd.f32 %v1823_v39, %v6431_v25  ;;  %v5690_v39 = vld [vmem:[%s7197_s16 + $0x10] sm:$0xff]   ;;  %v5692_v41 = vld [vmem:[%s7193_s12] sm:$0xff]  }
0x1219   :  { %5484 = vmatpush3.bf16.msra.mxu0 %v5690_v39 }
0x121a   :  { %v1833_v45 = vsel %vm82_vm0, %v1829_v44, 0.0  ;;  %v1830_v46 = vadd.f32 %v1826_v42, %v6433_v51  ;;  %v2017_v51 = vld [vmem:[%s7224_s30 + $0x8] sm:$0xff]  ;;  %5485 = vmatprep.subr.bf16.mxu0 %v5932_v17 }
0x121b   :  { %1834 = vadd.xlane.f32.xlu0 %v1833_v45  ;;  %v5693_v42 = vld [vmem:[%s7193_s12 + $0x8] sm:$0xff]  }
0x121c   :  { %v1836_v47 = vsel %vm82_vm0, %v1830_v46, 0.0 }
0x121d   :  { %1837 = vadd.xlane.f32.xlu1 %v1836_v47  ;;  %5486 = vmatpush3.bf16.msra.mxu0 %v5691_v40 }
0x121e   :  { %5497 = vmatprep.subr.bf16.mxu0 %v5932_v17 }
0x1245   :  { %v2136_v23 = vpop.f32.mrb[52].mxu0 }
0x1246   :  { %v2138_v48 = vpop.f32.mrb[53].mxu0  ;;  %v6530_v58 = vadd.f32 %v2136_v23, %v2016_v53  ;;  %v4852_v53 = vld [vmem:[%s7221_s0 + $0x25] ss:$0 sm:$0xff] }
0x1247   :  { %v2139_v49 = vpop.f32.mrb[54].mxu0 }
0x1248   :  { %v2141_v50 = vpop.f32.mrb[55].mxu0  ;;  %v6533_v61 = vadd.f32 %v2139_v49, %v2017_v51  ;;  %v2147_v63 = vsel %vm82_vm0, %v6530_v58, 0.0  ;;  %v4851_v49 = vld [vmem:[%s7221_s0 + $0x24] ss:$0 sm:$0xff] }
0x124a   :  { %v2150_v0 = vsel %vm82_vm0, %v6533_v61, 0.0 }
0x12a8   :  { %v1835_v52 = vpop.xlane.xlu0 %1834 }
0x12a9   :  { %v1839_v34 = vmul.f32 0.03125, %v1835_v52 }
0x12aa   :  { %v1838_v35 = vpop.xlane.xlu1 %1837 }
0x12ab   :  { %v1841_v25 = vsub.f32 %v1829_v44, %v1839_v34  ;;  %v1840_v54 = vmul.f32 0.03125, %v1838_v35 }
0x12ad   :  { %v1842_v56 = vsub.f32 %v1830_v46, %v1840_v54  ;;  %v1843_v57 = vmul.f32 %v1841_v25, %v1841_v25 }
0x12af   :  { %v1845_v59 = vsel %vm82_vm0, %v1843_v57, 0.0  ;;  %v1844_v60 = vmul.f32 %v1842_v56, %v1842_v56 }
0x12b0   :  { %1846 = vadd.xlane.f32.xlu0 %v1845_v59  ;;  %v5694_v59 = vld [vmem:[%s7195_s14] sm:$0xff]  }
0x12b1   :  { %v1848_v62 = vsel %vm82_vm0, %v1844_v60, 0.0 }
0x12b2   :  { %1849 = vadd.xlane.f32.xlu1 %v1848_v62 }
0x12b4   :  { %2148 = vadd.xlane.f32.xlu0 %v2147_v63 }
0x12b6   :  { %2151 = vadd.xlane.f32.xlu1 %v2150_v0 }
0x133d   :  { %v1847_v1 = vpop.xlane.xlu0 %1846 }
0x133e   :  { %v1851_v2 = vmul.f32 0.03125, %v1847_v1  ;;  %v5695_v1 = vld [vmem:[%s7195_s14 + $0x8] sm:$0xff]  }
0x133f   :  { %v1850_v3 = vpop.xlane.xlu1 %1849 }
0x1340   :  { %v1853_v4 = vadd.f32 1e-12, %v1851_v2  ;;  %v1852_v5 = vmul.f32 0.03125, %v1850_v3  ;;  %v5696_v2 = vld [vmem:[%s7196_s15] sm:$0xff]   ;;  %v5697_v3 = vld [vmem:[%s7196_s15 + $0x8] sm:$0xff]  }
0x1341   :  { %v2149_v6 = vpop.xlane.xlu0 %2148 }
0x1342   :  { %5842 = vrsqrt.f32 %v1853_v4  ;;  %v1854_v7 = vadd.f32 1e-12, %v1852_v5  ;;  %v2153_v8 = vmul.f32 0.03125, %v2149_v6  ;;  %v5698_v4 = vld [vmem:[%s7197_s16] sm:$0xff]   ;;  %v5699_v5 = vld [vmem:[%s7197_s16 + $0x8] sm:$0xff]  }
0x1343   :  { %v2152_v9 = vpop.xlane.xlu1 %2151  ;;  %v4886_v6 = vld [vmem:[%s7221_s0 + $0x22] ss:$0 sm:$0xff] }
0x1344   :  { %5844 = vrsqrt.f32 %v1854_v7  ;;  %v2155_v10 = vsub.f32 %v6530_v58, %v2153_v8  ;;  %v2154_v11 = vmul.f32 0.03125, %v2152_v9 }
0x1346   :  { %v2156_v13 = vsub.f32 %v6533_v61, %v2154_v11  ;;  %v2157_v14 = vmul.f32 %v2155_v10, %v2155_v10 }
0x1348   :  { %v2159_v18 = vsel %vm82_vm0, %v2157_v14, 0.0  ;;  %v2158_v19 = vmul.f32 %v2156_v13, %v2156_v13 }
0x1349   :  { %2160 = vadd.xlane.f32.xlu0 %v2159_v18 }
0x134a   :  { %v2162_v21 = vsel %vm82_vm0, %v2158_v19, 0.0 }
0x134b   :  { %2163 = vadd.xlane.f32.xlu1 %v2162_v21 }
0x134c   :  { %v5843_v22 = vpop.eup %5842 }
0x134d   :  { %v1857_v28 = vmul.f32 %v5843_v22, %v1841_v25  ;;  %v4853_v22 = vld [vmem:[%s7221_s0 + $0x1d] ss:$0 sm:$0xff] }
0x134e   :  { %v5845_v29 = vpop.eup %5844 }
0x134f   :  { %v1858_v30 = vmul.f32 %v5845_v29, %v1842_v56  ;;  %v1863_v31 = vmul.f32 %v4828_v24, %v1857_v28 }
0x1351   :  { %v1864_v33 = vmul.f32 %v4828_v24, %v1858_v30  ;;  %v1869_v36 = vadd.f32 %v4829_v32, %v1863_v31 }
0x1353   :  { %v1870_v15 = vadd.f32 %v4829_v32, %v1864_v33  ;;  %v4857_v32 = vld [vmem:[%s7221_s0 + $0x1e] ss:$0 sm:$0xff] }
0x1355   :  { %v1880_v37 = vpack.c.bf16 %v1870_v15, %v1869_v36 }
0x1357   :  { %5424 = vmatpush3.bf16.msra.mxu1 %v1880_v37 }
0x1358   :  { %5429 = vmatprep.subr.bf16.mxu1 %v5932_v17 }
0x135a   :  { %5426 = vmatmul.mubr.msk.bf16.vlgmr.msra.gmra.mrb[44].mxu1 %vm316_vm2, %v6554_v38 }
0x135b   :  { %5433 = vmatprep.mubr.msk.bf16.mxu1 %vm5933_vm1, %v5932_v17  ;;  %5430 = vmatpush3.bf16.msra.mxu1 %v5692_v41 }
0x135c   :  { %5431 = vmatprep.subr.bf16.mxu1 %v5932_v17 }
0x135f   :  { %5432 = vmatpush3.bf16.msra.mxu1 %v5693_v42  ;;  %v4861_v42 = vld [vmem:[%s7221_s0 + $0x1f] ss:$0 sm:$0xff] }
0x1360   :  { %5437 = vmatprep.subr.bf16.mxu1 %v5932_v17 }
0x13d6   :  { %v2161_v43 = vpop.xlane.xlu0 %2160 }
0x13d7   :  { %v2165_v44 = vmul.f32 0.03125, %v2161_v43 }
0x13d8   :  { %v2164_v45 = vpop.xlane.xlu1 %2163 }
0x13d9   :  { %v2167_v46 = vadd.f32 1e-06, %v2165_v44  ;;  %v2166_v47 = vmul.f32 0.03125, %v2164_v45 }
0x13db   :  { %5846 = vrsqrt.f32 %v2167_v46  ;;  %v2168_v23 = vadd.f32 1e-06, %v2166_v47 }
0x13dd   :  { %5848 = vrsqrt.f32 %v2168_v23 }
0x13e5   :  { %v5847_v48 = vpop.eup %5846 }
0x13e6   :  { %v2171_v50 = vmul.f32 %v5847_v48, %v2155_v10  ;;  %v5700_v48 = vld [vmem:[%s7195_s14 + $0x10] sm:$0xff]  }
0x13e7   :  { %v5849_v52 = vpop.eup %5848 }
0x13e8   :  { %v2177_v34 = vmul.f32 %v4851_v49, %v2171_v50  ;;  %v2172_v35 = vmul.f32 %v5849_v52, %v2156_v13  ;;  %v5701_v50 = vld [vmem:[%s7195_s14 + $0x18] sm:$0xff]   ;;  %v5702_v52 = vld [vmem:[%s7196_s15 + $0x10] sm:$0xff]  }
0x13ea   :  { %v2178_v25 = vmul.f32 %v4851_v49, %v2172_v35  ;;  %v2183_v54 = vadd.f32 %v4852_v53, %v2177_v34  ;;  %v5703_v34 = vld [vmem:[%s7196_s15 + $0x18] sm:$0xff]   ;;  %v6675_v35 = vld [vmem:[%s7225_s10] sm:$0xff] }
0x13ec   :  { %v2184_v51 = vadd.f32 %v4852_v53, %v2178_v25  ;;  %v6680_v25 = vld [vmem:[%s7225_s10 + $0x8] sm:$0xff] }
0x13ee   :  { %v6583_v56 = vpack.c.bf16 %v2184_v51, %v2183_v54 }
0x13f0   :  { %5488 = vmatmul.mubr.msk.bf16.vlgmr.msra.gmra.mrb[56].mxu0 %vm82_vm0, %v6583_v56 }
0x13f1   :  { %5499 = vmatprep.mubr.msk.bf16.mxu0 %vm5933_vm1, %v5932_v17 }
0x142d   :  { %v1918_v57 = vpop.f32.mrb[44].mxu1 }
0x142e   :  { %v1928_v60 = vpack.c.bf16 %v1918_v57, %v1918_v57  ;;  %v5427_v62 = vpop.f32.mrb[45].mxu1 }
0x142f   :  { %v1921_v63 = vpop.f32.mrb[46].mxu1 }
0x1430   :  { %v5428_v0 = vpop.f32.mrb[47].mxu1  ;;  %5434 = vmatmul.mubr.msk.bf16.vlgmr.msra.gmra.mrb[48].mxu1 %vm82_vm0, %v1928_v60  ;;  %v4870_v63 = vld [vmem:[%s7221_s0 + $0x20] ss:$0 sm:$0xff] }
0x1431   :  { %5438 = vmatpush3.bf16.msra.mxu1 %v5694_v59  ;;  %5441 = vmatprep.mubr.msk.bf16.mxu1 %vm5933_vm1, %v5932_v17 }
0x1432   :  { %5439 = vmatprep.subr.bf16.mxu1 %v5932_v17 }
0x1435   :  { %5440 = vmatpush3.bf16.msra.mxu1 %v5695_v1 }
0x1436   :  { %5445 = vmatprep.subr.bf16.mxu1 %v5932_v17 }
0x1438   :  { %5442 = vmatmul.mubr.msk.bf16.vlgmr.msra.gmra.mrb[52].mxu1 %vm82_vm0, %v6583_v56 }
0x1439   :  { %5446 = vmatpush3.bf16.msra.mxu1 %v5696_v2  ;;  %5449 = vmatprep.mubr.msk.bf16.mxu1 %vm5933_vm1, %v5932_v17 }
0x143a   :  { %5447 = vmatprep.subr.bf16.mxu1 %v5932_v17 }
0x143d   :  { %5448 = vmatpush3.bf16.msra.mxu1 %v5697_v3 }
0x143e   :  { %5453 = vmatprep.subr.bf16.mxu1 %v5932_v17 }
0x1440   :  { %5450 = vmatmul.mubr.msk.bf16.vlgmr.msra.gmra.mrb[56].mxu1 %vm82_vm0, %v6583_v56 }
0x1441   :  { %5454 = vmatpush3.bf16.msra.mxu1 %v5698_v4  ;;  %5457 = vmatprep.mubr.msk.bf16.mxu1 %vm5933_vm1, %v5932_v17 }
0x1442   :  { %5455 = vmatprep.subr.bf16.mxu1 %v5932_v17 }
0x1445   :  { %5456 = vmatpush3.bf16.msra.mxu1 %v5699_v5 }
0x1446   :  { %5461 = vmatprep.subr.bf16.mxu1 %v5932_v17 }
0x1448   :  { %5458 = vmatmul.mubr.msk.bf16.vlgmr.msra.gmra.mrb[60].mxu1 %vm82_vm0, %v6583_v56 }
0x1449   :  { %5463 = vmatprep.mubr.msk.bf16.mxu1 %vm5933_vm1, %v5932_v17 }
0x14c3   :  { %v2630_v7 = vpop.f32.mrb[56].mxu0 }
0x14c4   :  { %v5489_v8 = vpop.f32.mrb[57].mxu0  ;;  %v2631_v10 = vadd.f32 %v4886_v6, %v2630_v7  ;;  %v4878_v7 = vld [vmem:[%s7221_s0 + $0x21] ss:$0 sm:$0xff] }
0x14c5   :  { %v2633_v9 = vpop.f32.mrb[58].mxu0 }
0x14c6   :  { %v2634_v11 = vadd.f32 %v4886_v6, %v2633_v9  ;;  %v5490_v12 = vpop.f32.mrb[59].mxu0 }
0x14c8   :  { %v2708_v13 = vpack.c.bf16 %v2634_v11, %v2631_v10 }
0x14ca   :  { %5498 = vmatpush3.bf16.msra.mxu0 %v2708_v13 }
0x14cb   :  { %5509 = vmatprep.subr.bf16.mxu0 %v5932_v17 }
0x1503   :  { %v6632_v14 = vpop.f32.mrb[48].mxu1 }
0x1504   :  { %v5435_v18 = vpop.f32.mrb[49].mxu1 }
0x1505   :  { %v1986_v19 = vpop.f32.mrb[50].mxu1 }
0x1506   :  { %v5436_v21 = vpop.f32.mrb[51].mxu1 }
0x150b   :  { %v2244_v24 = vpop.f32.mrb[52].mxu1 }
0x150c   :  { %v5443_v26 = vpop.f32.mrb[53].mxu1  ;;  %v2245_v28 = vadd.f32 %v4853_v22, %v2244_v24 }
0x150d   :  { %v2247_v27 = vpop.f32.mrb[54].mxu1 }
0x150e   :  { %v2248_v29 = vadd.f32 %v4853_v22, %v2247_v27  ;;  %v5444_v30 = vpop.f32.mrb[55].mxu1 }
0x1510   :  { %v2375_v31 = vpack.c.bf16 %v2248_v29, %v2245_v28 }
0x1513   :  { %v2306_v33 = vpop.f32.mrb[56].mxu1 }
0x1514   :  { %v5451_v36 = vpop.f32.mrb[57].mxu1  ;;  %v2307_v16 = vadd.f32 %v4857_v32, %v2306_v33 }
0x1515   :  { %v2309_v15 = vpop.f32.mrb[58].mxu1 }
0x1516   :  { %v2310_v37 = vadd.f32 %v4857_v32, %v2309_v15  ;;  %v5452_v39 = vpop.f32.mrb[59].mxu1 }
0x1518   :  { %v2376_v40 = vpack.c.bf16 %v2310_v37, %v2307_v16 }
0x151a   :  { %v2381_v41 = vsel %vm316_vm2, %v2376_v40, 0 }
0x151b   :  { %v2368_v43 = vpop.f32.mrb[60].mxu1  ;;  %5462 = vmatpush3.bf16.xpose.msra.mxu1 %v2381_v41 }
0x151c   :  { %v5459_v44 = vpop.f32.mrb[61].mxu1  ;;  %5467 = vmatprep.subr.bf16.mxu1 %v5932_v17  ;;  %v2369_v46 = vadd.f32 %v4861_v42, %v2368_v43 }
0x151d   :  { %v2371_v45 = vpop.f32.mrb[62].mxu1 }
0x151e   :  { %v2372_v47 = vadd.f32 %v4861_v42, %v2371_v45  ;;  %v5460_v23 = vpop.f32.mrb[63].mxu1 }
0x1520   :  { %v2446_v49 = vpack.c.bf16 %v2372_v47, %v2369_v46 }
0x1522   :  { %5464 = vmatmul.mubr.msk.bf16.vlgmr.msra.gmra.mrb[64].mxu1 %vm316_vm2, %v2375_v31 }
0x1523   :  { %5468 = vmatpush3.bf16.msra.mxu1 %v5700_v48  ;;  %5471 = vmatprep.mubr.msk.bf16.mxu1 %vm5933_vm1, %v5932_v17 }
0x1524   :  { %5469 = vmatprep.subr.bf16.mxu1 %v5932_v17 }
0x1527   :  { %5470 = vmatpush3.bf16.msra.mxu1 %v5701_v50 }
0x1528   :  { %5475 = vmatprep.subr.bf16.mxu1 %v5932_v17 }
0x152a   :  { %5472 = vmatmul.mubr.msk.bf16.vlgmr.msra.gmra.mrb[68].mxu1 %vm82_vm0, %v6583_v56 }
0x152b   :  { %5476 = vmatpush3.bf16.msra.mxu1 %v5702_v52  ;;  %5479 = vmatprep.mubr.msk.bf16.mxu1 %vm5933_vm1, %v5932_v17 }
0x152c   :  { %5477 = vmatprep.subr.bf16.mxu1 %v5932_v17 }
0x152f   :  { %5478 = vmatpush3.bf16.msra.mxu1 %v5703_v34 }
0x1530   :  { %5491 = vmatprep.subr.bf16.mxu1 %v5932_v17 }
0x1532   :  { %5480 = vmatmul.mubr.msk.bf16.vlgmr.msra.gmra.mrb[72].mxu1 %vm82_vm0, %v6583_v56 }
0x1533   :  { %5493 = vmatprep.mubr.msk.bf16.mxu1 %vm5933_vm1, %v5932_v17 }
0x15f5   :  { %v2417_v53 = vpop.f32.mrb[64].mxu1 }
0x15f6   :  { %v2418_v54 = vadd.f32 %v2417_v53, %v6675_v35  ;;  %v5465_v51 = vpop.f32.mrb[65].mxu1 }
0x15f7   :  { %v2420_v57 = vpop.f32.mrb[66].mxu1 }
0x15f8   :  { %v2421_v56 = vadd.f32 %v2420_v57, %v6680_v25  ;;  %v5466_v59 = vpop.f32.mrb[67].mxu1  ;;  %v2424_v60 = vsel %vm316_vm2, %v2418_v54, -inf }
0x15f9   :  { %2425 = vmax.xlane.f32.xlu0 %v2424_v60 }
0x15fa   :  { %v2427_v62 = vsel %vm316_vm2, %v2421_v56, -inf }
0x15fb   :  { %2428 = vmax.xlane.f32.xlu1 %v2427_v62 }
0x15fd   :  { %v2504_v0 = vpop.f32.mrb[68].mxu1 }
0x15fe   :  { %v5473_v1 = vpop.f32.mrb[69].mxu1  ;;  %v2505_v3 = vadd.f32 %v4870_v63, %v2504_v0 }
0x15ff   :  { %v2507_v2 = vpop.f32.mrb[70].mxu1 }
0x1600   :  { %v2508_v4 = vadd.f32 %v4870_v63, %v2507_v2  ;;  %v5474_v5 = vpop.f32.mrb[71].mxu1 }
0x1602   :  { %v2637_v6 = vpack.c.bf16 %v2508_v4, %v2505_v3 }
0x1605   :  { %v2567_v8 = vpop.f32.mrb[72].mxu1 }
0x1606   :  { %v5481_v9 = vpop.f32.mrb[73].mxu1  ;;  %v2568_v11 = vadd.f32 %v4878_v7, %v2567_v8  ;;  %v4893_v8 = vld [vmem:[%s7221_s0 + $0x23] ss:$0 sm:$0xff] }
0x1607   :  { %v2570_v10 = vpop.f32.mrb[74].mxu1 }
0x1608   :  { %v2571_v12 = vadd.f32 %v4878_v7, %v2570_v10  ;;  %v5482_v13 = vpop.f32.mrb[75].mxu1 }
0x160a   :  { %v2638_v18 = vpack.c.bf16 %v2571_v12, %v2568_v11 }
0x160c   :  { %v2643_v19 = vsel %vm316_vm2, %v2638_v18, 0 }
0x160d   :  { %5492 = vmatpush3.bf16.xpose.msra.mxu1 %v2643_v19 }
0x160e   :  { %5503 = vmatprep.subr.bf16.mxu1 %v5932_v17 }
0x1614   :  { %5494 = vmatmul.mubr.msk.bf16.vlgmr.msra.gmra.mrb[76].mxu1 %vm316_vm2, %v2637_v6 }
0x1615   :  { %5504 = vmatpush3.bf16.msra.mxu1 %v2446_v49  ;;  %5505 = vmatprep.mubr.msk.bf16.mxu1 %vm5933_vm1, %v5932_v17 }
0x1616   :  { %5517 = vmatprep.subr.bf16.mxu1 %v5932_v17 }
0x1686   :  { %v2426_v21 = vpop.xlane.xlu0 %2425 }
0x1687   :  { %v2430_v24 = vsub.f32 %v2418_v54, %v2426_v21 }
0x1688   :  { %v2429_v22 = vpop.xlane.xlu1 %2428 }
0x1689   :  { %v2431_v26 = vsub.f32 %v2421_v56, %v2429_v22  ;;  %v2432_v27 = vmul.f32 1.442695, %v2430_v24 }
0x168b   :  { %v2434_v28 = vmul.f32 1.442695, %v2431_v26  ;;  %5850 = vpow2.f32 %v2432_v27 }
0x168d   :  { %5852 = vpow2.f32 %v2434_v28 }
0x1695   :  { %v5851_v16 = vpop.eup %5850 }
0x1696   :  { %v2436_v40 = vsel %vm316_vm2, %v5851_v16, 0.0 }
0x1697   :  { %v5853_v39 = vpop.eup %5852 }
0x1698   :  { %v2439_v41 = vsel %vm316_vm2, %v5853_v39, 0.0 }
0x16e7   :  { %v2679_v29 = vpop.f32.mrb[76].mxu1 }
0x16e8   :  { %v2680_v30 = vadd.f32 %v2679_v29, %v6675_v35  ;;  %v5495_v31 = vpop.f32.mrb[77].mxu1 }
0x16e9   :  { %v2682_v32 = vpop.f32.mrb[78].mxu1 }
0x16ea   :  { %v2683_v33 = vadd.f32 %v2682_v32, %v6680_v25  ;;  %v5496_v36 = vpop.f32.mrb[79].mxu1  ;;  %v2686_v15 = vsel %vm316_vm2, %v2680_v30, -inf }
0x16eb   :  { %2687 = vmax.xlane.f32.xlu0 %v2686_v15  ;;  %v5704_v15 = vld [vmem:[%s7198_s17] sm:$0xff]  }
0x16ec   :  { %v2689_v37 = vsel %vm316_vm2, %v2683_v33, -inf }
0x16ed   :  { %2690 = vmax.xlane.f32.xlu1 %v2689_v37 }
0x16ef   :  { %2437 = vadd.xlane.f32.xlu0 %v2436_v40 }
0x16f1   :  { %2440 = vadd.xlane.f32.xlu1 %v2439_v41 }
0x1778   :  { %v2688_v42 = vpop.xlane.xlu0 %2687 }
0x1779   :  { %v2692_v43 = vsub.f32 %v2680_v30, %v2688_v42 }
0x177a   :  { %v2691_v44 = vpop.xlane.xlu1 %2690 }
0x177b   :  { %v2694_v45 = vmul.f32 1.442695, %v2692_v43  ;;  %v2693_v46 = vsub.f32 %v2683_v33, %v2691_v44 }
0x177c   :  { %v2438_v47 = vpop.xlane.xlu0 %2437 }
0x177d   :  { %5854 = vpow2.f32 %v2694_v45  ;;  %v2696_v23 = vmul.f32 1.442695, %v2693_v46  ;;  %v4894_v45 = vld [vmem:[%s7221_s0 + $0x28] ss:$0 sm:$0xff] }
0x177e   :  { %5856 = vrcp.f32 %v2438_v47  ;;  %v2441_v48 = vpop.xlane.xlu1 %2440 }
0x177f   :  { %5858 = vpow2.f32 %v2696_v23 }
0x1780   :  { %5860 = vrcp.f32 %v2441_v48 }
0x1787   :  { %v5855_v49 = vpop.eup %5854 }
0x1788   :  { %v5857_v50 = vpop.eup %5856  ;;  %v2698_v52 = vsel %vm316_vm2, %v5855_v49, 0.0 }
0x1789   :  { %v5859_v34 = vpop.eup %5858  ;;  %2699 = vadd.xlane.f32.xlu0 %v2698_v52  ;;  %v2444_v51 = vmul.f32 %v5857_v50, %v5851_v16  ;;  %v5705_v16 = vld [vmem:[%s7198_s17 + $0x8] sm:$0xff]  }
0x178a   :  { %v5861_v53 = vpop.eup %5860  ;;  %v2701_v54 = vsel %vm316_vm2, %v5859_v34, 0.0 }
0x178b   :  { %v2445_v57 = vmul.f32 %v5861_v53, %v5853_v39  ;;  %2702 = vadd.xlane.f32.xlu1 %v2701_v54  ;;  %v5706_v54 = vld [vmem:[%s7199_s18] sm:$0xff]  }
0x178d   :  { %v2447_v56 = vpack.c.bf16 %v2445_v57, %v2444_v51  ;;  %v5707_v51 = vld [vmem:[%s7199_s18 + $0x8] sm:$0xff]   ;;  %v5708_v57 = vld [vmem:[%s7199_s18 + $0x10] sm:$0xff]  }
0x178f   :  { %5506 = vmatmul.mubr.msk.bf16.vlgmr.msra.gmra.mrb[80].mxu1 %vm316_vm2, %v2447_v56  ;;  %v5709_v56 = vld [vmem:[%s7199_s18 + $0x18] sm:$0xff]  }
0x1790   :  { %5525 = vmatprep.mubr.msk.bf16.mxu1 %vm5933_vm1, %v5932_v17  ;;  %5518 = vmatpush3.bf16.msra.mxu1 %v5706_v54 }
0x1791   :  { %5519 = vmatprep.subr.bf16.mxu1 %v5932_v17 }
0x1794   :  { %5520 = vmatpush3.bf16.msra.mxu1 %v5707_v51 }
0x1795   :  { %5521 = vmatprep.subr.bf16.mxu1 %v5932_v17 }
0x1798   :  { %5522 = vmatpush3.bf16.msra.mxu1 %v5708_v57 }
0x1799   :  { %5523 = vmatprep.subr.bf16.mxu1 %v5932_v17 }
0x179c   :  { %5524 = vmatpush3.bf16.msra.mxu1 %v5709_v56 }
0x179d   :  { %5545 = vmatprep.subr.bf16.mxu1 %v5932_v17 }
0x1816   :  { %v2700_v59 = vpop.xlane.xlu0 %2699 }
0x1817   :  { %5862 = vrcp.f32 %v2700_v59  ;;  %v4896_v59 = vld [vmem:[%s7221_s0 + $0x26] ss:$0 sm:$0xff] }
0x1818   :  { %v2703_v60 = vpop.xlane.xlu1 %2702 }
0x1819   :  { %5864 = vrcp.f32 %v2703_v60 }
0x1821   :  { %v5863_v62 = vpop.eup %5862 }
0x1822   :  { %v2706_v0 = vmul.f32 %v5863_v62, %v5855_v49  ;;  %v4895_v49 = vld [vmem:[%s7221_s0 + $0x29] ss:$0 sm:$0xff] }
0x1823   :  { %v5865_v63 = vpop.eup %5864 }
0x1824   :  { %v2707_v1 = vmul.f32 %v5865_v63, %v5859_v34 }
0x1826   :  { %v2709_v2 = vpack.c.bf16 %v2707_v1, %v2706_v0 }
0x1828   :  { %5500 = vmatmul.mubr.msk.bf16.vlgmr.msra.gmra.mrb[60].mxu0 %vm316_vm2, %v2709_v2 }
0x1829   :  { %5513 = vmatprep.mubr.msk.bf16.mxu0 %vm5933_vm1, %v5932_v17  ;;  %5510 = vmatpush3.bf16.msra.mxu0 %v5704_v15 }
0x182a   :  { %5511 = vmatprep.subr.bf16.mxu0 %v5932_v17 }
0x182d   :  { %5512 = vmatpush3.bf16.msra.mxu0 %v5705_v16 }
0x182e   :  { %5529 = vmatprep.subr.bf16.mxu0 %v5932_v17 }
0x1862   :  { %v2791_v3 = vpop.f32.mrb[80].mxu1 }
0x1863   :  { %v5507_v4 = vpop.f32.mrb[81].mxu1 }
0x1864   :  { %v2794_v5 = vpop.f32.mrb[82].mxu1 }
0x1865   :  { %v5508_v6 = vpop.f32.mrb[83].mxu1 }
0x18fb   :  { %v2747_v7 = vpop.f32.mrb[60].mxu0 }
0x18fc   :  { %v2792_v9 = vadd.f32 %v2791_v3, %v2747_v7  ;;  %v5501_v10 = vpop.f32.mrb[61].mxu0 }
0x18fd   :  { %v2750_v11 = vpop.f32.mrb[62].mxu0 }
0x18fe   :  { %v2803_v12 = vadd.f32 %v4893_v8, %v2792_v9  ;;  %v2795_v13 = vadd.f32 %v2794_v5, %v2750_v11  ;;  %v5502_v18 = vpop.f32.mrb[63].mxu0 }
0x1900   :  { %v6716_v19 = vadd.f32 %v2803_v12, %v6530_v58  ;;  %v2804_v21 = vadd.f32 %v4893_v8, %v2795_v13 }
0x1902   :  { %v6719_v22 = vadd.f32 %v2804_v21, %v6533_v61  ;;  %v2809_v24 = vsel %vm82_vm0, %v6716_v19, 0.0 }
0x1903   :  { %2810 = vadd.xlane.f32.xlu0 %v2809_v24 }
0x1904   :  { %v2812_v26 = vsel %vm82_vm0, %v6719_v22, 0.0 }
0x1905   :  { %2813 = vadd.xlane.f32.xlu1 %v2812_v26 }
0x1990   :  { %v2811_v27 = vpop.xlane.xlu0 %2810 }
0x1991   :  { %v2815_v28 = vmul.f32 0.03125, %v2811_v27 }
0x1992   :  { %v2814_v29 = vpop.xlane.xlu1 %2813 }
0x1993   :  { %v2817_v30 = vsub.f32 %v6716_v19, %v2815_v28  ;;  %v2816_v31 = vmul.f32 0.03125, %v2814_v29 }
0x1995   :  { %v2818_v58 = vsub.f32 %v6719_v22, %v2816_v31  ;;  %v2819_v32 = vmul.f32 %v2817_v30, %v2817_v30  ;;  %v4900_v31 = vld [vmem:[%s7221_s0 + $0x27] ss:$0 sm:$0xff] }
0x1997   :  { %v2821_v61 = vsel %vm82_vm0, %v2819_v32, 0.0  ;;  %v2820_v33 = vmul.f32 %v2818_v58, %v2818_v58 }
0x1998   :  { %2822 = vadd.xlane.f32.xlu0 %v2821_v61 }
0x1999   :  { %v2824_v36 = vsel %vm82_vm0, %v2820_v33, 0.0 }
0x199a   :  { %2825 = vadd.xlane.f32.xlu1 %v2824_v36 }
0x1a25   :  { %v2823_v37 = vpop.xlane.xlu0 %2822 }
0x1a26   :  { %v2827_v39 = vmul.f32 0.03125, %v2823_v37 }
0x1a27   :  { %v2826_v40 = vpop.xlane.xlu1 %2825 }
0x1a28   :  { %v2829_v41 = vadd.f32 1e-06, %v2827_v39  ;;  %v2828_v42 = vmul.f32 0.03125, %v2826_v40 }
0x1a2a   :  { %5866 = vrsqrt.f32 %v2829_v41  ;;  %v2830_v43 = vadd.f32 1e-06, %v2828_v42 }
0x1a2c   :  { %5868 = vrsqrt.f32 %v2830_v43 }
0x1a34   :  { %v5867_v44 = vpop.eup %5866 }
0x1a35   :  { %v2833_v46 = vmul.f32 %v5867_v44, %v2817_v30 }
0x1a36   :  { %v5869_v47 = vpop.eup %5868 }
0x1a37   :  { %v2839_v23 = vmul.f32 %v4894_v45, %v2833_v46  ;;  %v2834_v48 = vmul.f32 %v5869_v47, %v2818_v58 }
0x1a39   :  { %v2840_v50 = vmul.f32 %v4894_v45, %v2834_v48  ;;  %v2845_v52 = vadd.f32 %v4895_v49, %v2839_v23  ;;  %v5710_v48 = vld [vmem:[%s7195_s14 + $0x20] sm:$0xff]  }
0x1a3b   :  { %v2846_v34 = vadd.f32 %v4895_v49, %v2840_v50  ;;  %v5711_v49 = vld [vmem:[%s7197_s16 + $0x20] sm:$0xff]   ;;  %v5712_v50 = vld [vmem:[%s7195_s14 + $0x28] sm:$0xff]  }
0x1a3d   :  { %v2851_v53 = vpack.c.bf16 %v2846_v34, %v2845_v52  ;;  %v5713_v52 = vld [vmem:[%s7197_s16 + $0x28] sm:$0xff]  }
0x1a3f   :  { %5514 = vmatmul.mubr.msk.bf16.vlgmr.msra.gmra.mrb[64].mxu0 %vm82_vm0, %v2851_v53 }
0x1a40   :  { %5533 = vmatprep.mubr.msk.bf16.mxu0 %vm5933_vm1, %v5932_v17  ;;  %5530 = vmatpush3.bf16.msra.mxu0 %v5710_v48 }
0x1a41   :  { %5531 = vmatprep.subr.bf16.mxu0 %v5932_v17 }
0x1a44   :  { %5532 = vmatpush3.bf16.msra.mxu0 %v5712_v50 }
0x1a45   :  { %5537 = vmatprep.subr.bf16.mxu0 %v5932_v17 }
0x1b12   :  { %v2906_v60 = vpop.f32.mrb[64].mxu0 }
0x1b13   :  { %v2907_v62 = vadd.f32 %v4896_v59, %v2906_v60  ;;  %v5515_v63 = vpop.f32.mrb[65].mxu0  ;;  %v4906_v60 = vld [vmem:[%s7221_s0 + $0x31] ss:$0 sm:$0xff] }
0x1b14   :  { %v2909_v0 = vpop.f32.mrb[66].mxu0 }
0x1b15   :  { %v2915_v1 = vmul.f32 %v2907_v62, %v2907_v62  ;;  %v2910_v2 = vadd.f32 %v4896_v59, %v2909_v0  ;;  %v5516_v3 = vpop.f32.mrb[67].mxu0  ;;  %v2913_v24 = vmul.f32 0.5, %v2907_v62 }
0x1b17   :  { %v2917_v4 = vmul.f32 0.044715, %v2915_v1  ;;  %v2916_v5 = vmul.f32 %v2910_v2, %v2910_v2  ;;  %v2914_v26 = vmul.f32 0.5, %v2910_v2 }
0x1b19   :  { %v2919_v6 = vmul.f32 %v2917_v4, %v2907_v62  ;;  %v2918_v7 = vmul.f32 0.044715, %v2916_v5 }
0x1b1b   :  { %v2921_v8 = vadd.f32 %v2919_v6, %v2907_v62  ;;  %v2920_v9 = vmul.f32 %v2918_v7, %v2910_v2  ;;  %v5714_v6 = vld [vmem:[%s7196_s15 + $0x20] sm:$0xff]   ;;  %v5715_v7 = vld [vmem:[%s7195_s14 + $0x30] sm:$0xff]  }
0x1b1d   :  { %v2923_v10 = vmul.f32 0.7978846, %v2921_v8  ;;  %v2922_v11 = vadd.f32 %v2920_v9, %v2910_v2  ;;  %v4907_v2 = vld [vmem:[%s7221_s0 + $0x32] ss:$0 sm:$0xff]  ;;  %v5716_v9 = vld [vmem:[%s7196_s15 + $0x28] sm:$0xff]  }
0x1b1f   :  { %5870 = vtanh.f32 %v2923_v10  ;;  %v2924_v12 = vmul.f32 0.7978846, %v2922_v11  ;;  %v5717_v10 = vld [vmem:[%s7195_s14 + $0x38] sm:$0xff]   ;;  %v5718_v11 = vld [vmem:[%s7197_s16 + $0x30] sm:$0xff]  }
0x1b21   :  { %5872 = vtanh.f32 %v2924_v12  ;;  %v5719_v12 = vld [vmem:[%s7197_s16 + $0x38] sm:$0xff]  }
0x1b29   :  { %v5871_v13 = vpop.eup %5870 }
0x1b2a   :  { %v2927_v18 = vadd.f32 1.0, %v5871_v13  ;;  %v4912_v13 = vld [vmem:[%s7221_s0 + $0x2a] ss:$0 sm:$0xff] }
0x1b2b   :  { %v5873_v21 = vpop.eup %5872 }
0x1b2c   :  { %v2928_v27 = vadd.f32 1.0, %v5873_v21  ;;  %v2929_v28 = vmul.f32 %v2927_v18, %v2913_v24  ;;  %v4928_v21 = vld [vmem:[%s7221_s0 + $0x2c] ss:$0 sm:$0xff] }
0x1b2e   :  { %v2930_v29 = vmul.f32 %v2928_v27, %v2914_v26 }
0x1b30   :  { %v2939_v30 = vpack.c.bf16 %v2930_v29, %v2929_v28 }
0x1b32   :  { %5526 = vmatmul.mubr.msk.bf16.vlgmr.msra.gmra.mrb[84].mxu1 %vm909_vm3, %v2939_v30 }
0x1b33   :  { %5549 = vmatprep.mubr.msk.bf16.mxu1 %vm5933_vm1, %v5932_v17  ;;  %5546 = vmatpush3.bf16.msra.mxu1 %v5711_v49 }
0x1b34   :  { %5547 = vmatprep.subr.bf16.mxu1 %v5932_v17 }
0x1b37   :  { %5548 = vmatpush3.bf16.msra.mxu1 %v5713_v52 }
0x1b38   :  { %5559 = vmatprep.subr.bf16.mxu1 %v5932_v17 }
0x1c05   :  { %v3006_v58 = vpop.f32.mrb[84].mxu1 }
0x1c06   :  { %v3007_v32 = vadd.f32 %v4900_v31, %v3006_v58  ;;  %v5527_v61 = vpop.f32.mrb[85].mxu1 }
0x1c07   :  { %v3009_v33 = vpop.f32.mrb[86].mxu1 }
0x1c08   :  { %v6772_v36 = vadd.f32 %v3007_v32, %v6716_v19  ;;  %v3010_v15 = vadd.f32 %v4900_v31, %v3009_v33  ;;  %v5528_v16 = vpop.f32.mrb[87].mxu1 }
0x1c0a   :  { %v6775_v37 = vadd.f32 %v3010_v15, %v6719_v22  ;;  %v3017_v39 = vsel %vm82_vm0, %v6772_v36, 0.0 }
0x1c0b   :  { %3018 = vadd.xlane.f32.xlu0 %v3017_v39  ;;  %v4920_v39 = vld [vmem:[%s7221_s0 + $0x2b] ss:$0 sm:$0xff] }
0x1c0c   :  { %v3020_v40 = vsel %vm82_vm0, %v6775_v37, 0.0 }
0x1c0d   :  { %3021 = vadd.xlane.f32.xlu1 %v3020_v40 }
0x1c98   :  { %v3019_v41 = vpop.xlane.xlu0 %3018 }
0x1c99   :  { %v3023_v42 = vmul.f32 0.03125, %v3019_v41  ;;  %v4937_v41 = vld [vmem:[%s7221_s0 + $0x2d] ss:$0 sm:$0xff] }
0x1c9a   :  { %v3022_v43 = vpop.xlane.xlu1 %3021 }
0x1c9b   :  { %v3025_v44 = vsub.f32 %v6772_v36, %v3023_v42  ;;  %v3024_v19 = vmul.f32 0.03125, %v3022_v43 }
0x1c9d   :  { %v3026_v45 = vsub.f32 %v6775_v37, %v3024_v19  ;;  %v3027_v46 = vmul.f32 %v3025_v44, %v3025_v44 }
0x1c9f   :  { %v3029_v22 = vsel %vm82_vm0, %v3027_v46, 0.0  ;;  %v3028_v47 = vmul.f32 %v3026_v45, %v3026_v45 }
0x1ca0   :  { %3030 = vadd.xlane.f32.xlu0 %v3029_v22 }
0x1ca1   :  { %v3032_v23 = vsel %vm82_vm0, %v3028_v47, 0.0 }
0x1ca2   :  { %3033 = vadd.xlane.f32.xlu1 %v3032_v23 }
0x1d2d   :  { %v3031_v34 = vpop.xlane.xlu0 %3030 }
0x1d2e   :  { %v3035_v53 = vmul.f32 0.03125, %v3031_v34 }
0x1d2f   :  { %v3034_v54 = vpop.xlane.xlu1 %3033 }
0x1d30   :  { %v3037_v51 = vadd.f32 1e-06, %v3035_v53  ;;  %v3036_v57 = vmul.f32 0.03125, %v3034_v54  ;;  %v4953_v53 = vld [vmem:[%s7221_s0 + $0x2f] ss:$0 sm:$0xff] }
0x1d32   :  { %5874 = vrsqrt.f32 %v3037_v51  ;;  %v3038_v56 = vadd.f32 1e-06, %v3036_v57 }
0x1d34   :  { %5876 = vrsqrt.f32 %v3038_v56 }
0x1d3c   :  { %v5875_v59 = vpop.eup %5874 }
0x1d3d   :  { %v3041_v62 = vmul.f32 %v5875_v59, %v3025_v44 }
0x1d3e   :  { %v5877_v63 = vpop.eup %5876 }
0x1d3f   :  { %v3047_v0 = vmul.f32 %v4906_v60, %v3041_v62  ;;  %v3042_v1 = vmul.f32 %v5877_v63, %v3026_v45  ;;  %v5720_v62 = vld [vmem:[%s7196_s15 + $0x30] sm:$0xff]  }
0x1d41   :  { %v3048_v3 = vmul.f32 %v4906_v60, %v3042_v1  ;;  %v3053_v4 = vadd.f32 %v4907_v2, %v3047_v0  ;;  %v5721_v0 = vld [vmem:[%s7196_s15 + $0x38] sm:$0xff]  }
0x1d43   :  { %v3054_v5 = vadd.f32 %v4907_v2, %v3048_v3 }
0x1d45   :  { %v6813_v8 = vpack.c.bf16 %v3054_v5, %v3053_v4 }
0x1d47   :  { %5534 = vmatmul.mubr.msk.bf16.vlgmr.msra.gmra.mrb[68].mxu0 %vm82_vm0, %v6813_v8  ;;  %5550 = vmatmul.mubr.msk.bf16.vlgmr.msra.gmra.mrb[88].mxu1 %vm82_vm0, %v6813_v8 }
0x1d48   :  { %5538 = vmatpush3.bf16.msra.mxu0 %v5714_v6  ;;  %5560 = vmatpush3.bf16.msra.mxu1 %v5715_v7 }
0x1d49   :  { %5539 = vmatprep.subr.bf16.mxu0 %v5932_v17  ;;  %5561 = vmatprep.subr.bf16.mxu1 %v5932_v17 }
0x1d4a   :  { %5541 = vmatprep.mubr.msk.bf16.mxu0 %vm5933_vm1, %v5932_v17  ;;  %5563 = vmatprep.mubr.msk.bf16.mxu1 %vm5933_vm1, %v5932_v17 }
0x1d4c   :  { %5540 = vmatpush3.bf16.msra.mxu0 %v5716_v9  ;;  %5562 = vmatpush3.bf16.msra.mxu1 %v5717_v10 }
0x1d4d   :  { %5575 = vmatprep.subr.bf16.mxu1 %v5932_v17  ;;  %5553 = vmatprep.subr.bf16.mxu0 %v5932_v17 }
0x1d4f   :  { %5542 = vmatmul.mubr.msk.bf16.vlgmr.msra.gmra.mrb[72].mxu0 %vm82_vm0, %v6813_v8  ;;  %5564 = vmatmul.mubr.msk.bf16.vlgmr.msra.gmra.mrb[92].mxu1 %vm82_vm0, %v6813_v8 }
0x1d50   :  { %5576 = vmatpush3.bf16.msra.mxu1 %v5718_v11  ;;  %5579 = vmatprep.mubr.msk.bf16.mxu1 %vm5933_vm1, %v5932_v17 }
0x1d51   :  { %5577 = vmatprep.subr.bf16.mxu1 %v5932_v17  ;;  %5555 = vmatprep.mubr.msk.bf16.mxu0 %vm5933_vm1, %v5932_v17 }
0x1d54   :  { %5578 = vmatpush3.bf16.msra.mxu1 %v5719_v12 }
0x1d55   :  { %5589 = vmatprep.subr.bf16.mxu1 %v5932_v17 }
0x1d57   :  { %5580 = vmatmul.mubr.msk.bf16.vlgmr.msra.gmra.mrb[96].mxu1 %vm82_vm0, %v6813_v8 }
0x1d58   :  { %5591 = vmatprep.mubr.msk.bf16.mxu1 %vm5933_vm1, %v5932_v17 }
0x1e1a   :  { %v3115_v18 = vpop.f32.mrb[68].mxu0  ;;  %v3241_v24 = vpop.f32.mrb[88].mxu1 }
0x1e1b   :  { %v5535_v26 = vpop.f32.mrb[69].mxu0  ;;  %v5551_v27 = vpop.f32.mrb[89].mxu1  ;;  %v3116_v30 = vadd.f32 %v4912_v13, %v3115_v18  ;;  %v6859_v31 = vadd.f32 %v4928_v21, %v3241_v24 }
0x1e1c   :  { %v3118_v28 = vpop.f32.mrb[70].mxu0  ;;  %v3244_v29 = vpop.f32.mrb[90].mxu1 }
0x1e1d   :  { %v3119_v58 = vadd.f32 %v4912_v13, %v3118_v28  ;;  %v6861_v32 = vadd.f32 %v4928_v21, %v3244_v29  ;;  %v5536_v61 = vpop.f32.mrb[71].mxu0  ;;  %v5552_v33 = vpop.f32.mrb[91].mxu1 }
0x1e1f   :  { %v3248_v15 = vpack.c.bf16 %v3119_v58, %v3116_v30  ;;  %v3319_v16 = vpack.c.bf16 %v6861_v32, %v6859_v31 }
0x1e22   :  { %v3178_v40 = vpop.f32.mrb[72].mxu0  ;;  %v3377_v42 = vpop.f32.mrb[92].mxu1 }
0x1e23   :  { %v5543_v43 = vpop.f32.mrb[73].mxu0  ;;  %v5565_v44 = vpop.f32.mrb[93].mxu1  ;;  %v3179_v46 = vadd.f32 %v4920_v39, %v3178_v40  ;;  %v3378_v22 = vadd.f32 %v4937_v41, %v3377_v42 }
0x1e24   :  { %v3181_v19 = vpop.f32.mrb[74].mxu0  ;;  %v3380_v45 = vpop.f32.mrb[94].mxu1 }
0x1e25   :  { %v3182_v47 = vadd.f32 %v4920_v39, %v3181_v19  ;;  %v3381_v23 = vadd.f32 %v4937_v41, %v3380_v45  ;;  %v5544_v48 = vpop.f32.mrb[75].mxu0  ;;  %v5566_v49 = vpop.f32.mrb[95].mxu1 }
0x1e27   :  { %v3249_v50 = vpack.c.bf16 %v3182_v47, %v3179_v46  ;;  %v3510_v52 = vpack.c.bf16 %v3381_v23, %v3378_v22 }
0x1e29   :  { %v3254_v34 = vsel %vm316_vm2, %v3249_v50, 0 }
0x1e2a   :  { %5554 = vmatpush3.bf16.xpose.msra.mxu0 %v3254_v34  ;;  %v3503_v54 = vpop.f32.mrb[96].mxu1 }
0x1e2b   :  { %v5581_v51 = vpop.f32.mrb[97].mxu1  ;;  %5567 = vmatprep.subr.bf16.mxu0 %v5932_v17  ;;  %v3504_v56 = vadd.f32 %v4953_v53, %v3503_v54 }
0x1e2c   :  { %v3506_v57 = vpop.f32.mrb[98].mxu1 }
0x1e2d   :  { %v3507_v59 = vadd.f32 %v4953_v53, %v3506_v57  ;;  %v5582_v60 = vpop.f32.mrb[99].mxu1 }
0x1e2f   :  { %v3581_v63 = vpack.c.bf16 %v3507_v59, %v3504_v56 }
0x1e31   :  { %5556 = vmatmul.mubr.msk.bf16.vlgmr.msra.gmra.mrb[76].mxu0 %vm316_vm2, %v3248_v15  ;;  %5590 = vmatpush3.bf16.msra.mxu1 %v3581_v63 }
0x1e32   :  { %5568 = vmatpush3.bf16.msra.mxu0 %v5720_v62  ;;  %5571 = vmatprep.mubr.msk.bf16.mxu0 %vm5933_vm1, %v5932_v17 }
0x1e33   :  { %5569 = vmatprep.subr.bf16.mxu0 %v5932_v17  ;;  %5601 = vmatprep.subr.bf16.mxu1 %v5932_v17 }
0x1e36   :  { %5570 = vmatpush3.bf16.msra.mxu0 %v5721_v0 }
0x1e37   :  { %5583 = vmatprep.subr.bf16.mxu0 %v5932_v17 }
0x1e39   :  { %5572 = vmatmul.mubr.msk.bf16.vlgmr.msra.gmra.mrb[80].mxu0 %vm82_vm0, %v6813_v8  ;;  %v4945_v8 = vld [vmem:[%s7221_s0 + $0x2e] ss:$0 sm:$0xff] }
0x1e3a   :  { %5585 = vmatprep.mubr.msk.bf16.mxu0 %vm5933_vm1, %v5932_v17 }
0x1f04   :  { %v3290_v1 = vpop.f32.mrb[76].mxu0 }
0x1f05   :  { %v3291_v2 = vadd.f32 %v3290_v1, %v6675_v35  ;;  %v5557_v3 = vpop.f32.mrb[77].mxu0 }
0x1f06   :  { %v3293_v4 = vpop.f32.mrb[78].mxu0 }
0x1f07   :  { %v3294_v5 = vadd.f32 %v3293_v4, %v6680_v25  ;;  %v5558_v6 = vpop.f32.mrb[79].mxu0  ;;  %v3297_v7 = vsel %vm316_vm2, %v3291_v2, -inf }
0x1f08   :  { %3298 = vmax.xlane.f32.xlu0 %v3297_v7 }
0x1f09   :  { %v3300_v9 = vsel %vm316_vm2, %v3294_v5, -inf }
0x1f0a   :  { %3301 = vmax.xlane.f32.xlu1 %v3300_v9  ;;  %v4960_v9 = vld [vmem:[%s7221_s0 + $0x30] ss:$0 sm:$0xff] }
0x1f0c   :  { %v3440_v10 = vpop.f32.mrb[80].mxu0 }
0x1f0d   :  { %v5573_v11 = vpop.f32.mrb[81].mxu0  ;;  %v3441_v13 = vadd.f32 %v4945_v8, %v3440_v10 }
0x1f0e   :  { %v3443_v12 = vpop.f32.mrb[82].mxu0 }
0x1f0f   :  { %v3444_v18 = vadd.f32 %v4945_v8, %v3443_v12  ;;  %v5574_v21 = vpop.f32.mrb[83].mxu0 }
0x1f11   :  { %v3511_v24 = vpack.c.bf16 %v3444_v18, %v3441_v13 }
0x1f13   :  { %v3516_v26 = vsel %vm316_vm2, %v3511_v24, 0 }
0x1f14   :  { %5584 = vmatpush3.bf16.xpose.msra.mxu0 %v3516_v26 }
0x1f15   :  { %5595 = vmatprep.subr.bf16.mxu0 %v5932_v17 }
0x1f1b   :  { %5586 = vmatmul.mubr.msk.bf16.vlgmr.msra.gmra.mrb[84].mxu0 %vm316_vm2, %v3510_v52 }
0x1f1c   :  { %5596 = vmatpush3.bf16.msra.mxu0 %v3319_v16  ;;  %5597 = vmatprep.mubr.msk.bf16.mxu0 %vm5933_vm1, %v5932_v17 }
0x1f1d   :  { %5609 = vmatprep.subr.bf16.mxu0 %v5932_v17 }
0x1f95   :  { %v3299_v27 = vpop.xlane.xlu0 %3298 }
0x1f96   :  { %v3303_v29 = vsub.f32 %v3291_v2, %v3299_v27 }
0x1f97   :  { %v3302_v28 = vpop.xlane.xlu1 %3301 }
0x1f98   :  { %v3304_v30 = vsub.f32 %v3294_v5, %v3302_v28  ;;  %v3305_v31 = vmul.f32 1.442695, %v3303_v29 }
0x1f9a   :  { %v3307_v58 = vmul.f32 1.442695, %v3304_v30  ;;  %5878 = vpow2.f32 %v3305_v31 }
0x1f9c   :  { %5880 = vpow2.f32 %v3307_v58 }
0x1fa4   :  { %v5879_v41 = vpop.eup %5878 }
0x1fa5   :  { %v3309_v44 = vsel %vm316_vm2, %v5879_v41, 0.0 }
0x1fa6   :  { %v5881_v43 = vpop.eup %5880 }
0x1fa7   :  { %v3312_v19 = vsel %vm316_vm2, %v5881_v43, 0.0 }
0x1fee   :  { %v3552_v32 = vpop.f32.mrb[84].mxu0 }
0x1fef   :  { %v3553_v61 = vadd.f32 %v3552_v32, %v6675_v35  ;;  %v5587_v33 = vpop.f32.mrb[85].mxu0 }
0x1ff0   :  { %v3555_v15 = vpop.f32.mrb[86].mxu0 }
0x1ff1   :  { %v3556_v16 = vadd.f32 %v3555_v15, %v6680_v25  ;;  %v5588_v39 = vpop.f32.mrb[87].mxu0  ;;  %v3559_v40 = vsel %vm316_vm2, %v3553_v61, -inf }
0x1ff2   :  { %3560 = vmax.xlane.f32.xlu0 %v3559_v40  ;;  %v5723_v39 = vld [vmem:[%s7198_s17 + $0x18] sm:$0xff]  }
0x1ff3   :  { %v3562_v42 = vsel %vm316_vm2, %v3556_v16, -inf }
0x1ff4   :  { %3563 = vmax.xlane.f32.xlu1 %v3562_v42 }
0x1ff6   :  { %3310 = vadd.xlane.f32.xlu0 %v3309_v44 }
0x1ff8   :  { %3313 = vadd.xlane.f32.xlu1 %v3312_v19 }
0x207f   :  { %v3561_v35 = vpop.xlane.xlu0 %3560 }
0x2080   :  { %v3565_v45 = vsub.f32 %v3553_v61, %v3561_v35 }
0x2081   :  { %v3564_v46 = vpop.xlane.xlu1 %3563 }
0x2082   :  { %v3567_v22 = vmul.f32 1.442695, %v3565_v45  ;;  %v3566_v25 = vsub.f32 %v3556_v16, %v3564_v46  ;;  %v5722_v16 = vld [vmem:[%s7198_s17 + $0x10] sm:$0xff]  }
0x2083   :  { %v3311_v47 = vpop.xlane.xlu0 %3310  ;;  %v4961_v45 = vld [vmem:[%s7221_s0 + $0x35] ss:$0 sm:$0xff] }
0x2084   :  { %5882 = vpow2.f32 %v3567_v22  ;;  %v3569_v23 = vmul.f32 1.442695, %v3566_v25 }
0x2085   :  { %5884 = vrcp.f32 %v3311_v47  ;;  %v3314_v48 = vpop.xlane.xlu1 %3313 }
0x2086   :  { %5886 = vpow2.f32 %v3569_v23  ;;  %v4962_v23 = vld [vmem:[%s7221_s0 + $0x36] ss:$0 sm:$0xff] }
0x2087   :  { %5888 = vrcp.f32 %v3314_v48 }
0x208e   :  { %v5883_v49 = vpop.eup %5882 }
0x208f   :  { %v5885_v50 = vpop.eup %5884  ;;  %v3571_v52 = vsel %vm316_vm2, %v5883_v49, 0.0 }
0x2090   :  { %v5887_v34 = vpop.eup %5886  ;;  %3572 = vadd.xlane.f32.xlu0 %v3571_v52  ;;  %v3317_v51 = vmul.f32 %v5885_v50, %v5879_v41 }
0x2091   :  { %v5889_v53 = vpop.eup %5888  ;;  %v3574_v54 = vsel %vm316_vm2, %v5887_v34, 0.0 }
0x2092   :  { %v3318_v57 = vmul.f32 %v5889_v53, %v5881_v43  ;;  %3575 = vadd.xlane.f32.xlu1 %v3574_v54  ;;  %v5725_v53 = vld [vmem:[%s7199_s18 + $0x28] sm:$0xff]   ;;  %v5726_v54 = vld [vmem:[%s7199_s18 + $0x30] sm:$0xff]  }
0x2094   :  { %v3320_v56 = vpack.c.bf16 %v3318_v57, %v3317_v51  ;;  %v5727_v51 = vld [vmem:[%s7199_s18 + $0x38] sm:$0xff]   ;;  %v4967_v57 = vld [vmem:[%s7221_s0 + $0x33] ss:$0 sm:$0xff] }
0x2096   :  { %5598 = vmatmul.mubr.msk.bf16.vlgmr.msra.gmra.mrb[88].mxu0 %vm316_vm2, %v3320_v56 }
0x2097   :  { %5617 = vmatprep.mubr.msk.bf16.mxu0 %vm5933_vm1, %v5932_v17 }
0x211d   :  { %v3573_v59 = vpop.xlane.xlu0 %3572 }
0x211e   :  { %5890 = vrcp.f32 %v3573_v59 }
0x211f   :  { %v3576_v60 = vpop.xlane.xlu1 %3575 }
0x2120   :  { %5892 = vrcp.f32 %v3576_v60 }
0x2128   :  { %v5891_v62 = vpop.eup %5890 }
0x2129   :  { %v3579_v0 = vmul.f32 %v5891_v62, %v5883_v49 }
0x212a   :  { %v5893_v63 = vpop.eup %5892 }
0x212b   :  { %v3580_v1 = vmul.f32 %v5893_v63, %v5887_v34  ;;  %v5724_v34 = vld [vmem:[%s7199_s18 + $0x20] sm:$0xff]  }
0x212c   :  { %5610 = vmatpush3.bf16.msra.mxu0 %v5724_v34 }
0x212d   :  { %v3582_v2 = vpack.c.bf16 %v3580_v1, %v3579_v0  ;;  %5611 = vmatprep.subr.bf16.mxu0 %v5932_v17 }
0x212f   :  { %5592 = vmatmul.mubr.msk.bf16.vlgmr.msra.gmra.mrb[100].mxu1 %vm316_vm2, %v3582_v2 }
0x2130   :  { %5605 = vmatprep.mubr.msk.bf16.mxu1 %vm5933_vm1, %v5932_v17  ;;  %5602 = vmatpush3.bf16.msra.mxu1 %v5722_v16 }
0x2131   :  { %5603 = vmatprep.subr.bf16.mxu1 %v5932_v17  ;;  %5612 = vmatpush3.bf16.msra.mxu0 %v5725_v53 }
0x2132   :  { %5613 = vmatprep.subr.bf16.mxu0 %v5932_v17 }
0x2134   :  { %5604 = vmatpush3.bf16.msra.mxu1 %v5723_v39 }
0x2135   :  { %5621 = vmatprep.subr.bf16.mxu1 %v5932_v17  ;;  %5614 = vmatpush3.bf16.msra.mxu0 %v5726_v54 }
0x2136   :  { %5615 = vmatprep.subr.bf16.mxu0 %v5932_v17 }
0x2139   :  { %5616 = vmatpush3.bf16.msra.mxu0 %v5727_v51 }
0x2169   :  { %v3664_v3 = vpop.f32.mrb[88].mxu0 }
0x216a   :  { %v5599_v4 = vpop.f32.mrb[89].mxu0 }
0x216b   :  { %v3667_v5 = vpop.f32.mrb[90].mxu0 }
0x216c   :  { %v5600_v6 = vpop.f32.mrb[91].mxu0 }
0x2202   :  { %v3620_v7 = vpop.f32.mrb[100].mxu1 }
0x2203   :  { %v3665_v8 = vadd.f32 %v3664_v3, %v3620_v7  ;;  %v5593_v10 = vpop.f32.mrb[101].mxu1 }
0x2204   :  { %v3623_v11 = vpop.f32.mrb[102].mxu1 }
0x2205   :  { %v3676_v12 = vadd.f32 %v4960_v9, %v3665_v8  ;;  %v3668_v13 = vadd.f32 %v3667_v5, %v3623_v11  ;;  %v5594_v18 = vpop.f32.mrb[103].mxu1 }
0x2207   :  { %v6923_v21 = vadd.f32 %v3676_v12, %v6772_v36  ;;  %v3677_v24 = vadd.f32 %v4960_v9, %v3668_v13 }
0x2209   :  { %v6926_v26 = vadd.f32 %v3677_v24, %v6775_v37  ;;  %v3682_v27 = vsel %vm82_vm0, %v6923_v21, 0.0 }
0x220a   :  { %3683 = vadd.xlane.f32.xlu0 %v3682_v27 }
0x220b   :  { %v3685_v28 = vsel %vm82_vm0, %v6926_v26, 0.0 }
0x220c   :  { %3686 = vadd.xlane.f32.xlu1 %v3685_v28 }
0x2297   :  { %v3684_v29 = vpop.xlane.xlu0 %3683 }
0x2298   :  { %v3688_v30 = vmul.f32 0.03125, %v3684_v29 }
0x2299   :  { %v3687_v31 = vpop.xlane.xlu1 %3686 }
0x229a   :  { %v3690_v58 = vsub.f32 %v6923_v21, %v3688_v30  ;;  %v3689_v32 = vmul.f32 0.03125, %v3687_v31  ;;  %v4979_v31 = vld [vmem:[%s7221_s0 + $0x34] ss:$0 sm:$0xff] }
0x229c   :  { %v3691_v36 = vsub.f32 %v6926_v26, %v3689_v32  ;;  %v3692_v61 = vmul.f32 %v3690_v58, %v3690_v58 }
0x229e   :  { %v3694_v37 = vsel %vm82_vm0, %v3692_v61, 0.0  ;;  %v3693_v33 = vmul.f32 %v3691_v36, %v3691_v36 }
0x229f   :  { %3695 = vadd.xlane.f32.xlu0 %v3694_v37 }
0x22a0   :  { %v3697_v15 = vsel %vm82_vm0, %v3693_v33, 0.0 }
0x22a1   :  { %3698 = vadd.xlane.f32.xlu1 %v3697_v15 }
0x232c   :  { %v3696_v40 = vpop.xlane.xlu0 %3695 }
0x232d   :  { %v3700_v41 = vmul.f32 0.03125, %v3696_v40 }
0x232e   :  { %v3699_v42 = vpop.xlane.xlu1 %3698 }
0x232f   :  { %v3702_v43 = vadd.f32 1e-06, %v3700_v41  ;;  %v3701_v44 = vmul.f32 0.03125, %v3699_v42 }
0x2331   :  { %5894 = vrsqrt.f32 %v3702_v43  ;;  %v3703_v19 = vadd.f32 1e-06, %v3701_v44 }
0x2333   :  { %5896 = vrsqrt.f32 %v3703_v19 }
0x233b   :  { %v5895_v35 = vpop.eup %5894 }
0x233c   :  { %v3706_v46 = vmul.f32 %v5895_v35, %v3690_v58 }
0x233d   :  { %v5897_v22 = vpop.eup %5896 }
0x233e   :  { %v3712_v25 = vmul.f32 %v4961_v45, %v3706_v46  ;;  %v3707_v47 = vmul.f32 %v5897_v22, %v3691_v36 }
0x2340   :  { %v3713_v48 = vmul.f32 %v4961_v45, %v3707_v47  ;;  %v3718_v49 = vadd.f32 %v4962_v23, %v3712_v25 }
0x2342   :  { %v3719_v50 = vadd.f32 %v4962_v23, %v3713_v48 }
0x2344   :  { %v3725_v52 = vpack.c.bf16 %v3719_v50, %v3718_v49 }
0x2346   :  { %5606 = vmatmul.mubr.msk.bf16.vlgmr.msra.gmra.mrb[104].mxu1 %vm82_vm0, %v3725_v52  ;;  %v4985_v52 = vld [vmem:[%s7221_s0 + $0x37] ss:$0 sm:$0xff] }
0x2347   :  { %5623 = vmatprep.mubr.msk.bf16.mxu1 %vm5933_vm1, %v5932_v17 }
0x2419   :  { %v3780_v56 = vpop.f32.mrb[104].mxu1 }
0x241a   :  { %v3781_v59 = vadd.f32 %v4967_v57, %v3780_v56  ;;  %v5607_v60 = vpop.f32.mrb[105].mxu1 }
0x241b   :  { %v3783_v62 = vpop.f32.mrb[106].mxu1 }
0x241c   :  { %v3789_v63 = vmul.f32 %v3781_v59, %v3781_v59  ;;  %v3784_v0 = vadd.f32 %v4967_v57, %v3783_v62  ;;  %v5608_v1 = vpop.f32.mrb[107].mxu1  ;;  %v3787_v18 = vmul.f32 0.5, %v3781_v59  ;;  %v4986_v57 = vld [vmem:[%s7221_s0 + $0x38] ss:$0 sm:$0xff] }
0x241d   :  { %v5730_v1 = vld [vmem:[%s7202_s21] ss:$16 sps:$4 sm:$0xff]  }
0x241e   :  { %v3791_v2 = vmul.f32 0.044715, %v3789_v63  ;;  %v3790_v3 = vmul.f32 %v3784_v0, %v3784_v0  ;;  %v3788_v24 = vmul.f32 0.5, %v3784_v0  ;;  %v5728_v63 = vld [vmem:[%s7200_s19] sm:$0xff]  }
0x2420   :  { %v3793_v4 = vmul.f32 %v3791_v2, %v3781_v59  ;;  %v3792_v5 = vmul.f32 0.044715, %v3790_v3  ;;  %v5732_v2 = vld [vmem:[%s7202_s21 + $0x4] ss:$16 sps:$4 sm:$0xff]   ;;  %v5733_v3 = vld [vmem:[%s7202_s21 + $0x8] ss:$16 sps:$4 sm:$0xff]  }
0x2421   :  { %4097 = vmatprep.subr.bf16.mxu0 %v5732_v2 }
0x2422   :  { %v3795_v6 = vadd.f32 %v3793_v4, %v3781_v59  ;;  %v3794_v7 = vmul.f32 %v3792_v5, %v3784_v0 }
0x2424   :  { %v3797_v9 = vmul.f32 0.7978846, %v3795_v6  ;;  %v3796_v8 = vadd.f32 %v3794_v7, %v3784_v0  ;;  %v5729_v0 = vld [vmem:[%s7200_s19 + $0x8] sm:$0xff]  }
0x2426   :  { %5898 = vtanh.f32 %v3797_v9  ;;  %v3798_v10 = vmul.f32 0.7978846, %v3796_v8  ;;  %v5738_v9 = vld [vmem:[%s7202_s21 + $0x24] ss:$16 sps:$4 sm:$0xff]   ;;  %v5741_v8 = vld [vmem:[%s7202_s21 + $0x2c] ss:$16 sps:$4 sm:$0xff]  }
0x2428   :  { %5900 = vtanh.f32 %v3798_v10  ;;  %v5736_v10 = vld [vmem:[%s7202_s21 + $0x20] ss:$16 sps:$4 sm:$0xff]  }
0x2430   :  { %v5899_v11 = vpop.eup %5898 }
0x2431   :  { %v3801_v12 = vadd.f32 1.0, %v5899_v11  ;;  %v5739_v11 = vld [vmem:[%s7202_s21 + $0x28] ss:$16 sps:$4 sm:$0xff]  }
0x2432   :  { %v5901_v13 = vpop.eup %5900 }
0x2433   :  { %v3802_v27 = vadd.f32 1.0, %v5901_v13  ;;  %v3803_v28 = vmul.f32 %v3801_v12, %v3787_v18  ;;  %v5744_v12 = vld [vmem:[%s7201_s20 + $0x4] ss:$16 sps:$4 sm:$0xff]   ;;  %v5747_v13 = vld [vmem:[%s7201_s20 + $0xc] ss:$16 sps:$4 sm:$0xff]  }
0x2434   :  { %v4832_v18 = vld [vmem:[%s7221_s0 + $0x1c] ss:$0 sm:$0xff] }
0x2435   :  { %v3804_v29 = vmul.f32 %v3802_v27, %v3788_v24  ;;  %v1984_v24 = vadd.f32 %v4832_v18, %v6632_v14  ;;  %v4988_v27 = vld [vmem:[%s7221_s0 + $0x39] ss:$0 sm:$0xff]  ;;  %v5750_v14 = vld [vmem:[%s7201_s20 + $0x24] ss:$16 sps:$4 sm:$0xff]  }
0x2437   :  { %v3814_v30 = vpack.c.bf16 %v3804_v29, %v3803_v28 }
0x2439   :  { %5618 = vmatmul.mubr.msk.bf16.vlgmr.msra.gmra.mrb[92].mxu0 %vm909_vm3, %v3814_v30 }
0x243a   :  { %4129 = vmatprep.mubr.bf16.mxu0 %v5934_v55  ;;  %4098 = vmatpush1.bf16.msra.mxu0 %v5730_v1  ;;  %v5785_v1 = vld [vmem:[%s7203_s22 + $0xb8] sm:$0xff]  }
0x243b   :  { %4099 = vmatprep.subr.bf16.mxu0 %v5738_v9  ;;  %v4308_v9 = vsub.s32 0, %v6543_v20 }
0x243e   :  { %4100 = vmatpush1.bf16.msra.mxu0 %v5736_v10  ;;  %v4304_v10 = vld [vmem:[%s7226_s3] sm:$0xf] }
0x243f   :  { %4222 = vmatprep.subr.bf16.mxu0 %v5744_v12  ;;  %v4320_v12 = vsub.s32 3, %v6543_v20 }
0x250c   :  { %v3881_v58 = vpop.f32.mrb[92].mxu0 }
0x250d   :  { %v3882_v32 = vadd.f32 %v4979_v31, %v3881_v58  ;;  %v5619_v36 = vpop.f32.mrb[93].mxu0  ;;  %v5742_v58 = vld [vmem:[%s7201_s20] ss:$16 sps:$4 sm:$0xff]  }
0x250e   :  { %v3884_v61 = vpop.f32.mrb[94].mxu0 }
0x250f   :  { %v3885_v37 = vadd.f32 %v4979_v31, %v3884_v61  ;;  %v5620_v33 = vpop.f32.mrb[95].mxu0  ;;  %v3888_v15 = vadd.f32 %v3882_v32, %v6923_v21  ;;  %v5745_v32 = vld [vmem:[%s7201_s20 + $0x8] ss:$16 sps:$4 sm:$0xff]  }
0x2510   :  { %v5748_v33 = vld [vmem:[%s7201_s20 + $0x20] ss:$16 sps:$4 sm:$0xff]  }
0x2511   :  { %v3892_v16 = vsel %vm82_vm0, %v3888_v15, 0.0  ;;  %v3889_v39 = vadd.f32 %v3885_v37, %v6926_v26  ;;  %v5753_v37 = vld [vmem:[%s7201_s20 + $0x2c] ss:$16 sps:$4 sm:$0xff]  }
0x2512   :  { %3893 = vadd.xlane.f32.xlu0 %v3892_v16  ;;  %v5754_v16 = vld [vmem:[%s7203_s22 + $0x40] sm:$0xff]  }
0x2513   :  { %v3895_v40 = vsel %vm82_vm0, %v3889_v39, 0.0 }
0x2514   :  { %3896 = vadd.xlane.f32.xlu1 %v3895_v40 }
0x259f   :  { %v3894_v41 = vpop.xlane.xlu0 %3893 }
0x25a0   :  { %v3898_v42 = vmul.f32 0.03125, %v3894_v41  ;;  %v5756_v41 = vld [vmem:[%s7203_s22] sm:$0xff]  }
0x25a1   :  { %v3897_v43 = vpop.xlane.xlu1 %3896 }
0x25a2   :  { %v3900_v44 = vsub.f32 %v3888_v15, %v3898_v42  ;;  %v3899_v19 = vmul.f32 0.03125, %v3897_v43  ;;  %v5751_v15 = vld [vmem:[%s7201_s20 + $0x28] ss:$16 sps:$4 sm:$0xff]   ;;  %v5757_v42 = vld [vmem:[%s7203_s22 + $0x80] sm:$0xff]  }
0x25a4   :  { %v3901_v35 = vsub.f32 %v3889_v39, %v3899_v19  ;;  %v3902_v45 = vmul.f32 %v3900_v44, %v3900_v44  ;;  %v5755_v39 = vld [vmem:[%s7203_s22 + $0xc0] sm:$0xff]   ;;  %v5760_v19 = vld [vmem:[%s7203_s22 + $0x8] sm:$0xff]  }
0x25a6   :  { %v3904_v46 = vsel %vm82_vm0, %v3902_v45, 0.0  ;;  %v3903_v22 = vmul.f32 %v3901_v35, %v3901_v35  ;;  %v5762_v45 = vld [vmem:[%s7203_s22 + $0x50] sm:$0xff]  }
0x25a7   :  { %3905 = vadd.xlane.f32.xlu0 %v3904_v46  ;;  %v5763_v46 = vld [vmem:[%s7203_s22 + $0xd0] sm:$0xff]  }
0x25a8   :  { %v3907_v21 = vsel %vm82_vm0, %v3903_v22, 0.0  ;;  %v5764_v22 = vld [vmem:[%s7203_s22 + $0x10] sm:$0xff]  }
0x25a9   :  { %3908 = vadd.xlane.f32.xlu1 %v3907_v21  ;;  %v5765_v21 = vld [vmem:[%s7203_s22 + $0x90] sm:$0xff]  }
0x2634   :  { %v3906_v25 = vpop.xlane.xlu0 %3905 }
0x2635   :  { %v3910_v26 = vmul.f32 0.03125, %v3906_v25  ;;  %v5766_v25 = vld [vmem:[%s7203_s22 + $0x58] sm:$0xff]  }
0x2636   :  { %v3909_v47 = vpop.xlane.xlu1 %3908 }
0x2637   :  { %v3912_v23 = vadd.f32 1e-06, %v3910_v26  ;;  %v3911_v48 = vmul.f32 0.03125, %v3909_v47  ;;  %v5767_v26 = vld [vmem:[%s7203_s22 + $0xd8] sm:$0xff]  }
0x2638   :  { %v5768_v47 = vld [vmem:[%s7203_s22 + $0x18] sm:$0xff]  }
0x2639   :  { %5902 = vrsqrt.f32 %v3912_v23  ;;  %v3913_v49 = vadd.f32 1e-06, %v3911_v48  ;;  %v5769_v23 = vld [vmem:[%s7203_s22 + $0x98] sm:$0xff]   ;;  %v5770_v48 = vld [vmem:[%s7203_s22 + $0x60] sm:$0xff]  }
0x263b   :  { %5904 = vrsqrt.f32 %v3913_v49  ;;  %v5771_v49 = vld [vmem:[%s7203_s22 + $0xe0] sm:$0xff]  }
0x263c   :  { %5906 = vtanh.f32 %v1984_v24 }
0x2643   :  { %v5903_v50 = vpop.eup %5902 }
0x2644   :  { %v3916_v34 = vmul.f32 %v5903_v50, %v3900_v44  ;;  %v5758_v44 = vld [vmem:[%s7203_s22 + $0x48] sm:$0xff]   ;;  %v5772_v50 = vld [vmem:[%s7203_s22 + $0x20] sm:$0xff]  }
0x2645   :  { %v5905_v53 = vpop.eup %5904 }
0x2646   :  { %v3917_v54 = vmul.f32 %v5905_v53, %v3901_v35  ;;  %v3922_v51 = vmul.f32 %v4985_v52, %v3916_v34  ;;  %v5907_v40 = vpop.eup %5906  ;;  %v5761_v35 = vld [vmem:[%s7203_s22 + $0x88] sm:$0xff]  }
0x2647   :  { %v4044_v43 = vpack.c.bf16 %v5907_v40, %v5907_v40  ;;  %v5774_v34 = vld [vmem:[%s7203_s22 + $0x68] sm:$0xff]  }
0x2648   :  { %v3923_v56 = vmul.f32 %v4985_v52, %v3917_v54  ;;  %v3928_v59 = vadd.f32 %v4986_v57, %v3922_v51  ;;  %v5773_v52 = vld [vmem:[%s7203_s22 + $0xa0] sm:$0xff]   ;;  %v5775_v53 = vld [vmem:[%s7203_s22 + $0xe8] sm:$0xff]  }
0x2649   :  { %v5776_v54 = vld [vmem:[%s7203_s22 + $0x28] sm:$0xff]  }
0x264a   :  { %v3929_v60 = vadd.f32 %v4986_v57, %v3923_v56  ;;  %v5777_v51 = vld [vmem:[%s7203_s22 + $0xa8] sm:$0xff]   ;;  %v5778_v57 = vld [vmem:[%s7203_s22 + $0x70] sm:$0xff]  }
0x264b   :  { %v5779_v56 = vld [vmem:[%s7203_s22 + $0xf0] sm:$0xff]  }
0x264c   :  { %v3930_v62 = vpack.c.bf16 %v3929_v60, %v3928_v59  ;;  %v5780_v59 = vld [vmem:[%s7203_s22 + $0x30] sm:$0xff]  }
0x264d   :  { %v5781_v60 = vld [vmem:[%s7203_s22 + $0xb0] sm:$0xff]  }
0x264e   :  { %5622 = vmatpush3.bf16.msra.mxu1 %v3930_v62  ;;  %v5782_v62 = vld [vmem:[%s7203_s22 + $0x78] sm:$0xff]  }
0x264f   :  { %5627 = vmatprep.subr.bf16.mxu1 %v5932_v17 }
0x2651   :  { %5624 = vmatmul.mubr.msk.bf16.vlgmr.msra.gmra.mrb[108].mxu1 %vm316_vm2, %v6554_v38  ;;  %v5735_v38 = vld [vmem:[%s7202_s21 + $0xc] ss:$16 sps:$4 sm:$0xff]   ;;  %s5908_s21 = scalar_lea.vmem %s4687_s1, 32 }
0x2652   :  { %5628 = vmatpush3.bf16.msra.mxu1 %v5728_v63  ;;  %5631 = vmatprep.mubr.msk.bf16.mxu1 %vm5933_vm1, %v5932_v17  ;;  %v5783_v63 = vld [vmem:[%s7203_s22 + $0xf8] sm:$0xff]   ;;  %p5909_p0 = scmp.ne.s32.totalorder %s4687_s1, %s5908_s21  ;;  %p5914_p2 = scmp.lt.s32.totalorder %s5908_s21, %s5908_s21 }
0x2653   :  { %5629 = vmatprep.subr.bf16.mxu1 %v5932_v17 }
0x2654   :  { %p5915_p3 = por %p5914_p2, %p5913_p1 }
0x2656   :  { %5630 = vmatpush3.bf16.msra.mxu1 %v5729_v0  ;;  %v5784_v0 = vld [vmem:[%s7203_s22 + $0x38] sm:$0xff]   ;;  %p5916_p4 = pnand %p5915_p3, %p5909_p0 }
0x2657   :  { %4138 = vmatprep.subr.bf16.mxu1 %v5735_v38 }
0x2724   :  { %v3965_v17 = vpop.f32.mrb[108].mxu1 }
0x2725   :  { %v3975_v4 = vpack.c.bf16 %v3965_v17, %v3965_v17  ;;  %v5625_v5 = vpop.f32.mrb[109].mxu1 }
0x2726   :  { %v3968_v6 = vpop.f32.mrb[110].mxu1 }
0x2727   :  { %5632 = vmatmul.mubr.msk.bf16.vlgmr.msra.gmra.mrb[112].mxu1 %vm82_vm0, %v3975_v4  ;;  %v5626_v7 = vpop.f32.mrb[111].mxu1 }
0x2728   :  { %4139 = vmatpush1.bf16.msra.mxu1 %v5733_v3  ;;  %4170 = vmatprep.mubr.bf16.mxu1 %v5934_v55 }
0x2729   :  { %4140 = vmatprep.subr.bf16.mxu1 %v5741_v8  ;;  %v4316_v8 = vsub.s32 2, %v6543_v20 }
0x272b   :  { %v4317_v18 = vrot.slane %v4304_v10, %v4316_v8 }
0x272c   :  { %4141 = vmatpush1.bf16.msra.mxu1 %v5739_v11  ;;  %v4312_v11 = vsub.s32 1, %v6543_v20 }
0x272d   :  { %4263 = vmatprep.subr.bf16.mxu1 %v5747_v13  ;;  %v4309_v13 = vrot.slane %v4304_v10, %v4308_v9 }
0x27fa   :  { %v4030_v28 = vpop.f32.mrb[112].mxu1 }
0x27fb   :  { %v4031_v29 = vadd.f32 %v4988_v27, %v4030_v28  ;;  %v5633_v30 = vpop.f32.mrb[113].mxu1  ;;  %v4313_v28 = vrot.slane %v4304_v10, %v4312_v11 }
0x27fc   :  { %v4033_v31 = vpop.f32.mrb[114].mxu1 }
0x27fd   :  { %v4053_v36 = vpack.c.bf16 %v4031_v29, %v4031_v29  ;;  %v5634_v61 = vpop.f32.mrb[115].mxu1  ;;  %v4321_v29 = vrot.slane %v4304_v10, %v4320_v12 }
0x27ff   :  { %5000 = vmatmul.mubr.msk.bf16.vlgmr.msra.gmra.mrb[96].mxu0 %vm82_vm0, %v4053_v36  ;;  %5001 = vmatmul.mubr.msk.bf16.vlgmr.msra.gmra.mrb[116].mxu1 %vm82_vm0, %v4053_v36 }
0x2800   :  { %4223 = vmatpush1.bf16.msra.mxu0 %v5742_v58  ;;  %4264 = vmatpush1.bf16.msra.mxu1 %v5745_v32 }
0x2801   :  { %4224 = vmatprep.subr.bf16.mxu0 %v5750_v14  ;;  %4265 = vmatprep.subr.bf16.mxu1 %v5753_v37 }
0x2802   :  { %4254 = vmatprep.mubr.bf16.mxu0 %v5934_v55  ;;  %4295 = vmatprep.mubr.bf16.mxu1 %v5934_v55  ;;  %v5759_v55 = vld [vmem:[%s7203_s22 + $0xc8] sm:$0xff]  }
0x2804   :  { %4225 = vmatpush1.bf16.msra.mxu0 %v5748_v33  ;;  %4266 = vmatpush1.bf16.msra.mxu1 %v5751_v15 }
0x2805   :  { %5195 = vmatprep.subr.bf16.mxu0 %v5754_v16  ;;  %5217 = vmatprep.subr.bf16.mxu1 %v5755_v39 }
0x2807   :  { %5010 = vmatmul.mubr.msk.bf16.vlgmr.msra.gmra.mrb[100].mxu0 %vm82_vm0, %v4044_v43  ;;  %5011 = vmatmul.mubr.msk.bf16.vlgmr.msra.gmra.mrb[120].mxu1 %vm82_vm0, %v4044_v43 }
0x2808   :  { %5196 = vmatpush3.bf16.msra.mxu0 %v5756_v41  ;;  %5218 = vmatpush3.bf16.msra.mxu1 %v5757_v42 }
0x2809   :  { %5197 = vmatprep.subr.bf16.mxu0 %v5758_v44  ;;  %5219 = vmatprep.subr.bf16.mxu1 %v5759_v55 }
0x280c   :  { %5198 = vmatpush3.bf16.msra.mxu0 %v5760_v19  ;;  %5220 = vmatpush3.bf16.msra.mxu1 %v5761_v35 }
0x280d   :  { %5199 = vmatprep.subr.bf16.mxu0 %v5762_v45  ;;  %5221 = vmatprep.subr.bf16.mxu1 %v5763_v46 }
0x2810   :  { %5200 = vmatpush3.bf16.msra.mxu0 %v5764_v22  ;;  %5222 = vmatpush3.bf16.msra.mxu1 %v5765_v21  ;;  %v5012_v21 = vld [vmem:[%s7221_s0 + $0x3a] ss:$0 sm:$0xff] }
0x2811   :  { %5201 = vmatprep.subr.bf16.mxu0 %v5766_v25  ;;  %5223 = vmatprep.subr.bf16.mxu1 %v5767_v26 }
0x2814   :  { %5202 = vmatpush3.bf16.msra.mxu0 %v5768_v47  ;;  %5224 = vmatpush3.bf16.msra.mxu1 %v5769_v23 }
0x2815   :  { %5203 = vmatprep.subr.bf16.mxu0 %v5770_v48  ;;  %5225 = vmatprep.subr.bf16.mxu1 %v5771_v49 }
0x2818   :  { %5204 = vmatpush3.bf16.msra.mxu0 %v5772_v50  ;;  %5226 = vmatpush3.bf16.msra.mxu1 %v5773_v52 }
0x2819   :  { %5205 = vmatprep.subr.bf16.mxu0 %v5774_v34  ;;  %5227 = vmatprep.subr.bf16.mxu1 %v5775_v53 }
0x281c   :  { %5206 = vmatpush3.bf16.msra.mxu0 %v5776_v54  ;;  %5228 = vmatpush3.bf16.msra.mxu1 %v5777_v51 }
0x281d   :  { %5207 = vmatprep.subr.bf16.mxu0 %v5778_v57  ;;  %5229 = vmatprep.subr.bf16.mxu1 %v5779_v56 }
0x2820   :  { %5208 = vmatpush3.bf16.msra.mxu0 %v5780_v59  ;;  %5230 = vmatpush3.bf16.msra.mxu1 %v5781_v60 }
0x2821   :  { %5209 = vmatprep.subr.bf16.mxu0 %v5782_v62  ;;  %5231 = vmatprep.subr.bf16.mxu1 %v5783_v63 }
0x2824   :  { %5210 = vmatpush3.bf16.msra.mxu0 %v5784_v0  ;;  %5232 = vmatpush3.bf16.msra.mxu1 %v5785_v1 }
0x28d2   :  { %v4131_v2 = vpop.f32.mrb[96].mxu0  ;;  %v4172_v38 = vpop.f32.mrb[116].mxu1 }
0x28d3   :  { %v4133_v17 = vpop.f32.mrb[97].mxu0  ;;  %v4174_v3 = vpop.f32.mrb[117].mxu1 }
0x28d4   :  { %v4135_v4 = vpop.f32.mrb[98].mxu0  ;;  %v4176_v5 = vpop.f32.mrb[118].mxu1 }
0x28d5   :  { %v4136_v6 = vpop.f32.mrb[99].mxu0  ;;  %v4177_v7 = vpop.f32.mrb[119].mxu1 }
0x28da   :  { %v4256_v24 = vpop.f32.mrb[100].mxu0  ;;  %v4297_v27 = vpop.f32.mrb[120].mxu1 }
0x28db   :  { %v4257_v30 = vadd.f32 %v4256_v24, %v4131_v2  ;;  %v4298_v31 = vadd.f32 %v4297_v27, %v4172_v38  ;;  %v4258_v58 = vpop.f32.mrb[101].mxu0  ;;  %v4299_v32 = vpop.f32.mrb[121].mxu1 }
0x28dc   :  { %v4259_v36 = vadd.f32 %v4258_v58, %v4133_v17  ;;  %v4300_v61 = vadd.f32 %v4299_v32, %v4174_v3  ;;  %v4260_v14 = vpop.f32.mrb[102].mxu0  ;;  %v4301_v37 = vpop.f32.mrb[122].mxu1 }
0x28dd   :  { %v4326_v33 = vadd.f32 %v4309_v13, %v4257_v30  ;;  %v4328_v15 = vadd.f32 %v4317_v18, %v4298_v31  ;;  %v4261_v16 = vpop.f32.mrb[103].mxu0  ;;  %v4302_v39 = vpop.f32.mrb[123].mxu1 }
0x28de   :  { %v4327_v40 = vadd.f32 %v4313_v28, %v4259_v36  ;;  %v4329_v20 = vadd.f32 %v4321_v29, %v4300_v61 }
0x28df   :  { %v4330_v41 = vmax.f32 %v4326_v33, 0.0  ;;  %v4332_v42 = vmax.f32 %v4328_v15, 0.0 }
0x28e0   :  { %v4331_v43 = vmax.f32 %v4327_v40, 0.0  ;;  %v4333_v44 = vmax.f32 %v4329_v20, 0.0 }
0x28e1   :  { %v4398_v35 = vpack.c.bf16 %v4330_v41, %v4330_v41  ;;  %v4400_v45 = vpack.c.bf16 %v4332_v42, %v4332_v42 }
0x28e2   :  { %v4399_v55 = vpack.c.bf16 %v4331_v43, %v4331_v43  ;;  %v4401_v19 = vpack.c.bf16 %v4333_v44, %v4333_v44 }
0x28e4   :  { %4631 = vmatprep.mubr.bf16.mxu0 %v4399_v55  ;;  %4671 = vmatprep.mubr.bf16.mxu1 %v4401_v19 }
0x28e5   :  { %4632 = vmatmul.mubr.bf16.vlgmr.msra.gmra.mrb[104].mxu0 %v4398_v35  ;;  %4672 = vmatmul.mubr.bf16.vlgmr.msra.gmra.mrb[124].mxu1 %v4400_v45 }
0x29b8   :  { %v5211_v46 = vpop.f32.mrb[104].mxu0  ;;  %v5233_v22 = vpop.f32.mrb[124].mxu1 }
0x29b9   :  { %v5212_v25 = vpop.f32.mrb[105].mxu0  ;;  %v5234_v26 = vpop.f32.mrb[125].mxu1 }
0x29ba   :  { %v5213_v47 = vadd.f32 %v5212_v25, %v5211_v46  ;;  %v5235_v23 = vadd.f32 %v5234_v26, %v5233_v22  ;;  %v5214_v48 = vpop.f32.mrb[106].mxu0  ;;  %v5236_v49 = vpop.f32.mrb[126].mxu1 }
0x29bb   :  { %v5215_v50 = vpop.f32.mrb[107].mxu0  ;;  %v5237_v52 = vpop.f32.mrb[127].mxu1 }
0x29bc   :  { %v4634_v34 = vadd.f32 %v5213_v47, %v5012_v21 }
0x29be   :  { %v4674_v53 = vadd.f32 %v5235_v23, %v4634_v34 }
0x29c0   :  { %4679 = vst [vmem:[#allocation2] sm:$0x3] %v4674_v53 }
0x29c1   :  { %5919 = shalt.err (!%p5916_p4)
}
0x29c2   :  { %s5920_s12 = scalar_lea.hbm %s7204_s23, 32 }
0x29c3   :  { %p5921_p5 = scmp.ne.s32.totalorder %s7204_s23, %s5920_s12  ;;  %p5924_p6 = scmp.lt.u32.totalorder %s5920_s12, %s7204_s23 }
0x29c5   :  { %p5926_p7 = pnand %p5924_p6, %p5921_p5 }
0x29c7   :  { %5929 = shalt.err (!%p5926_p7)
}
0x29c8   :  { %4689 = dma.vmem_to_hbm [thread:$0]  %s4687_s1, 32, %s7204_s23, [#allocation3]  }
0x29c9   :  { %5930 = dma.done.wait [#allocation3], 32  }
0x29ca   :  { %5931 = vsyncadd [#allocation3], 4294967264 }
0x29cb   :  { %4693 = vsyncpa [#allocation3], 1 }

</bundles_post_ra>
